<compile_context>
chip_gen: v7x
topology: tpu7x:2x2x1
jax: 0.10.0
libtpu: 0.0.40
codegen_flags: <defaults>
</compile_context>

<pallas_src>
import functools

import jax
import jax.numpy as jnp
from jax import lax
from jax.experimental import pallas as pl
from jax.experimental.pallas import tpu as pltpu


def _round_up(x, m):
    return (x + m - 1) // m * m


def _sigmoid(x):  # reference-side sigmoid
    return 1.0 / (1.0 + jnp.exp(-x))


# ----------------------------------------------------------------------------
# One-off probe: is pltpu.roll usable here, and does it follow jnp.roll
# direction?  (Keeps the main kernel correct on any backend/version.)
# ----------------------------------------------------------------------------
@functools.lru_cache(maxsize=None)
def _probe_pltpu_roll():
    n = 384
    x = jnp.broadcast_to(jnp.arange(n, dtype=jnp.float32), (8, n))

    def k(x_ref, o_ref):
        o_ref[...] = pltpu.roll(x_ref[...], 365, 1)

    try:
        y = jax.block_until_ready(
            pl.pallas_call(k, out_shape=jax.ShapeDtypeStruct((8, n), jnp.float32))(x))
    except Exception:
        return (False, True)                       # fall back to jnp.roll
    if bool(jnp.array_equal(y, jnp.roll(x, 365, axis=1))):
        return (True, True)                        # jnp.roll semantics
    if bool(jnp.array_equal(y, jnp.roll(x, -365, axis=1))):
        return (True, False)                       # opposite direction
    return (False, True)


# ----------------------------------------------------------------------------
# Fused Block kernel: one grid step = one image.  All activations are (rows,
# Lp) tiles: channels (streams stacked) on sublanes, padded flattened spatial
# dim on lanes (Lp is a multiple of 128).
# ----------------------------------------------------------------------------
def _block_kernel(*refs, C, Wp, d, n_layers, first_block, mm_dtype,
                  approx_recip, use_pltpu_roll, roll_forward):
    refs = list(refs)
    im2col_ref = refs.pop()            # VMEM scratch shared by all conv layers
    out_ref = refs.pop()               # (1, 3C, Lp): [new_RGB; new_T; new_shared]
    it = iter(refs)
    maps_ref = next(it)                # (8, Lp) packed constant index maps
    x_ref = next(it)                   # (1, S*cin_pad, Lp) stacked input
    conv_wb = [(next(it), next(it)) for _ in range(n_layers)]
    mscf_w, mscf_b = next(it), next(it)
    mscd_w, mscd_b = next(it), next(it)
    gf_w, gf_b = next(it), next(it)
    gd_w, gd_b = next(it), next(it)

    Lp = x_ref.shape[-1]               # lane-padded spatial extent (mult of 128)

    # ---- hoisted constants: compares once, broadcasts cached per shape -----
    maps = maps_ref[...]
    raw = {
        'interior': maps[0:1, :] > 0.5,
        'rw2': maps[1:2, :] > 0.5,
        'rh2': maps[2:3, :] > 0.5,
        'rw4': maps[3:4, :] > 0.5,
        'rh4': maps[4:5, :] > 0.5,
    }
    bcache = {}

    def bmask(name, rows):
        key = (name, rows)
        if key not in bcache:
            bcache[key] = jnp.broadcast_to(raw[name], (rows, Lp))
        return bcache[key]

    def mm(w_ref, x):                  # (M, K) @ (K, Lp) on the MXU, f32 acc
        return jnp.dot(w_ref[...], x.astype(mm_dtype),
                       preferred_element_type=jnp.float32)

    def lroll(x, shift):               # jnp.roll(x, shift, axis=-1) semantics
        s = shift % Lp
        if s == 0:
            return x
        if use_pltpu_roll:             # single XLU rotation
            return pltpu.roll(x, s if roll_forward else Lp - s, 1)
        return jnp.roll(x, s, axis=1)  # fallback (slice + concat)

    def sigmoid(x):
        z = 1.0 + jnp.exp(-x)          # exp on the EUP
        return pl.reciprocal(z, approx=True) if approx_recip else 1.0 / z

    def pool2_up(x, step, rname):
        # Max over lane pairs spaced `step` apart, broadcast back to the pair.
        r = bmask(rname, x.shape[0])
        s = jnp.maximum(x, lroll(x, -step))       # s[q] = max(x[q], x[q+step])
        return jnp.where(r, lroll(s, step), s)    # both members <- pair max

    # 3x3 conv taps: output at padded position q reads x_pad[q + off].
    offs = [((kh - 1) * Wp + (kw - 1)) * d for kh in range(3) for kw in range(3)]

    def conv_stack(x):
        # x: (S*ci, Lp) zero outside interior.  Whole conv3x3(pad=d, dil=d)+ReLU
        # stack of all streams at once (block-diagonal stacked weights).
        for (w_ref, b_ref) in conv_wb:
            rows = x.shape[0]
            for k, off in enumerate(offs):        # im2col into VMEM scratch
                im2col_ref[pl.ds(k * rows, rows), :] = lroll(x, -off)
            y = mm(w_ref, im2col_ref[pl.ds(0, 9 * rows), :])
            y = jnp.maximum(y + b_ref[...], 0.0)
            x = jnp.where(bmask('interior', y.shape[0]), y, 0.0)  # re-zero halo
        return x

    def msc(x, w_ref, b_ref):
        # concat([x, up(maxpool2 x), up(maxpool4 x)]) -> 1x1 conv -> ReLU
        x1 = pool2_up(pool2_up(x, 1, 'rw2'), Wp, 'rh2')        # 2x2 block max
        x2 = pool2_up(pool2_up(x1, 2, 'rw4'), 2 * Wp, 'rh4')   # 4x4 from 2x2
        cat = jnp.concatenate([x, x1, x2], axis=0)
        return jnp.maximum(mm(w_ref, cat) + b_ref[...], 0.0)

    # --- conv stacks (all streams fused) -------------------------------------
    A = conv_stack(x_ref[0])           # (S*C, Lp): [RGB; T; (shared)]
    Am = msc(A, mscf_w, mscf_b)        # stacked MSC outputs, same row layout

    RGB, T = A[0:C], A[C:2 * C]
    RGB_m, T_m = Am[0:C], Am[C:2 * C]
    if first_block:
        shared = jnp.zeros_like(RGB)
        d_rgb, d_t = RGB_m, T_m                  # shared_m == 0
    else:
        shared = A[2 * C:3 * C]
        shared_m = Am[2 * C:3 * C]
        d_rgb, d_t = RGB_m - shared_m, T_m - shared_m

    # --- fuse gates (both streams in one block-diag matmul) ------------------
    G = sigmoid(mm(gf_w, jnp.concatenate([d_rgb, d_t], axis=0)) + gf_b[...])
    new_shared = shared + d_rgb * G[0:C] + d_t * G[C:2 * C]

    # --- distribute -----------------------------------------------------------
    ns_m = msc(new_shared, mscd_w, mscd_b)
    dr, dt = ns_m - RGB_m, ns_m - T_m
    G2 = sigmoid(mm(gd_w, jnp.concatenate([dr, dt], axis=0)) + gd_b[...])
    new_RGB = RGB + dr * G2[0:C]
    new_T = T + dt * G2[C:2 * C]

    out_ref[0] = jnp.concatenate([new_RGB, new_T, new_shared], axis=0)


# ----------------------------------------------------------------------------
# Block forward (Pallas path).  RGB / T / shared are NHWC float32.
# ----------------------------------------------------------------------------
@functools.partial(jax.jit, static_argnames=("first_block", "d_rate", "mm_dtype",
                                             "use_pltpu_roll", "roll_forward"))
def _block_forward_impl(params, RGB, T, shared, *, first_block, d_rate, mm_dtype,
                        use_pltpu_roll, roll_forward):
    N, H, W, in_ch = RGB.shape
    assert H % 4 == 0 and W % 4 == 0, "MSC pooling requires H, W divisible by 4"
    d = d_rate
    Hp, Wp = H + 2 * d, W + 2 * d
    Sp = Hp * Wp
    Sp_pad = _round_up(Sp, 128)        # lane-dense stores + aligned rotates
    n_layers = len(params['rgb_conv'])
    C = params['rgb_conv'][0][0].shape[-1]
    assert params['rgb_conv'][-1][0].shape[-1] == C, "module requires cfg[0]==cfg[-1]"
    S = 2 if first_block else 3
    cin_pad = _round_up(in_ch, 8)      # sublane-align the input channels

    # ------- block-diagonal (stream-stacked) weights, built host-side --------
    stream_convs = [params['rgb_conv'], params['t_conv']]
    if not first_block:
        stream_convs.append(params['shared_conv'])

    conv_ws, conv_bs, cis = [], [], []
    ci = cin_pad
    for l in range(n_layers):
        ws, bs = [], []
        for st in stream_convs:
            w, b = st[l]
            if w.shape[2] < ci:                        # zero-pad input channels
                w = jnp.pad(w, ((0, 0), (0, 0), (0, ci - w.shape[2]), (0, 0)))
            ws.append(w)
            bs.append(b)
        co = ws[0].shape[-1]
        big = jnp.zeros((S, co, 9, S, ci), jnp.float32)
        for s, w in enumerate(ws):
            wk = jnp.transpose(w, (3, 0, 1, 2)).reshape(co, 9, ci)  # (co, k, ci)
            big = big.at[s, :, :, s, :].set(wk)
        conv_ws.append(big.reshape(S * co, 9 * S * ci).astype(mm_dtype))
        conv_bs.append(jnp.concatenate(bs).reshape(-1, 1).astype(jnp.float32))
        cis.append(ci)
        ci = co
    max_ci = max(cis)

    msc_list = [params['rgb_msc'], params['t_msc']]
    if not first_block:
        msc_list.append(params['shared_fuse_msc'])
    Smsc = len(msc_list)
    bigm = jnp.zeros((Smsc, C, 3, Smsc, C), jnp.float32)
    mbs = []
    for s, (w_io, b) in enumerate(msc_list):
        bigm = bigm.at[s, :, :, s, :].set(jnp.transpose(w_io).reshape(C, 3, C))
        mbs.append(b)
    mscf_w = bigm.reshape(Smsc * C, 3 * Smsc * C).astype(mm_dtype)
    mscf_b = jnp.concatenate(mbs).reshape(-1, 1).astype(jnp.float32)

    wd_io, bd = params['shared_distribute_msc']
    mscd_w = jnp.transpose(wd_io).astype(mm_dtype)     # (C, 3C)
    mscd_b = bd.reshape(-1, 1).astype(jnp.float32)

    def stack_gates(glist):
        big = jnp.zeros((2, C, 2, C), jnp.float32)
        gbs = []
        for s, (w_io, b) in enumerate(glist):
            big = big.at[s, :, s, :].set(jnp.transpose(w_io))
            gbs.append(b)
        return (big.reshape(2 * C, 2 * C).astype(mm_dtype),
                jnp.concatenate(gbs).reshape(-1, 1).astype(jnp.float32))

    gf_w, gf_b = stack_gates([params['rgb_fuse_1x1'], params['t_fuse_1x1']])
    gd_w, gd_b = stack_gates([params['rgb_dist_1x1'], params['t_dist_1x1']])

    # ------- packed constant index maps (1 input instead of 5) ---------------
    q = jnp.arange(Sp_pad, dtype=jnp.int32).reshape(1, Sp_pad)
    col = q % Wp - d
    row = q // Wp - d
    inside = (q < Sp) & (col >= 0) & (col < W) & (row >= 0) & (row < H)
    msk = lambda v: jnp.where(inside, v, 0).astype(jnp.float32)
    maps = jnp.concatenate([
        inside.astype(jnp.float32),
        msk(col % 2), msk(row % 2), msk((col // 2) % 2), msk((row // 2) % 2),
        jnp.zeros((3, Sp_pad), jnp.float32)], axis=0)   # (8, Sp_pad)

    # ------- inputs: zero-bordered, channel-padded, lane-padded, stacked -----
    def to_pad_flat(x):
        xc = jnp.transpose(x, (0, 3, 1, 2))
        xc = jnp.pad(xc, ((0, 0), (0, cin_pad - xc.shape[1]), (d, d), (d, d)))
        xc = xc.reshape(N, cin_pad, Sp)
        return jnp.pad(xc, ((0, 0), (0, 0), (0, Sp_pad - Sp)))

    xs = [to_pad_flat(RGB), to_pad_flat(T)]
    if not first_block:
        xs.append(to_pad_flat(shared))
    x_in = jnp.concatenate(xs, axis=1)                   # (N, S*cin_pad, Sp_pad)

    inputs = [maps, x_in]
    in_specs = [pl.BlockSpec((8, Sp_pad), lambda n: (0, 0)),
                pl.BlockSpec((1, S * cin_pad, Sp_pad), lambda n: (n, 0, 0))]

    def add_const(a):
        inputs.append(a)
        in_specs.append(pl.BlockSpec(a.shape, lambda n: (0, 0)))

    for w, b in zip(conv_ws, conv_bs):
        add_const(w)
        add_const(b)
    for a in (mscf_w, mscf_b, mscd_w, mscd_b, gf_w, gf_b, gd_w, gd_b):
        add_const(a)

    scratch_rows = 9 * S * max_ci
    # Rough per-image VMEM working set -> scoped limit (matters on v7x: 64 MiB).
    per_image = 4 * Sp_pad * (scratch_rows + 16 * S * C + 2 * S * cin_pad)
    vmem_limit = int(min(112 * 2 ** 20, max(16 * 2 ** 20, 4 * per_image)))
    # TODO(synk): for large images on v7x add a row-chunked / spatially tiled
    #             grid instead of one-image-per-step (64 MiB VMEM ceiling).
    # TODO(synk): on single-TC chips (v5e/v6e) fold 2-4 images per grid step;
    #             on v7x keep 1 image/step but ensure N is even (>=2).

    kern = functools.partial(
        _block_kernel, C=C, Wp=Wp, d=d, n_layers=n_layers,
        first_block=first_block, mm_dtype=mm_dtype,
        approx_recip=(mm_dtype != jnp.float32),
        use_pltpu_roll=use_pltpu_roll, roll_forward=roll_forward)

    out = pl.pallas_call(
        kern,
        out_shape=jax.ShapeDtypeStruct((N, 3 * C, Sp_pad), jnp.float32),
        grid=(N,),
        in_specs=in_specs,
        out_specs=pl.BlockSpec((1, 3 * C, Sp_pad), lambda n: (n, 0, 0)),
        scratch_shapes=[pltpu.VMEM((scratch_rows, Sp_pad), jnp.float32)],
        compiler_params=pltpu.CompilerParams(
            dimension_semantics=("parallel",),
            vmem_limit_bytes=vmem_limit),
    )(*inputs)

    o = out[:, :, :Sp].reshape(N, 3 * C, Hp, Wp)[:, :, d:d + H, d:d + W]
    o = jnp.transpose(o, (0, 2, 3, 1))                    # (N, H, W, 3C)
    return o[..., 0:C], o[..., C:2 * C], o[..., 2 * C:3 * C]


def block_forward(params, RGB, T, shared, first_block=False, d_rate=1,
                  mm_dtype=jnp.bfloat16):
    use_roll, roll_fwd = _probe_pltpu_roll()
    return _block_forward_impl(params, RGB, T, shared, first_block=first_block,
                               d_rate=d_rate, mm_dtype=mm_dtype,
                               use_pltpu_roll=use_roll, roll_forward=roll_fwd)


# ----------------------------------------------------------------------------
# pure-JAX reference (for correctness check)
# ----------------------------------------------------------------------------
def ref_conv3x3_relu(x, w, b, dil=1):
    out = lax.conv_general_dilated(
        x, w, window_strides=(1, 1), padding=((dil, dil), (dil, dil)),
        rhs_dilation=(dil, dil), dimension_numbers=('NHWC', 'HWIO', 'NHWC'))
    return jnp.maximum(out + b, 0.0)


def ref_pool_up(x, k):
    p = lax.reduce_window(x, -jnp.inf, lax.max, (1, k, k, 1), (1, k, k, 1), 'VALID')
    return jnp.repeat(jnp.repeat(p, k, axis=1), k, axis=2)


def ref_msc(x, w_1x1, b):
    cat = jnp.concatenate([x, ref_pool_up(x, 2), ref_pool_up(x, 4)], axis=-1)
    return jnp.maximum(jnp.einsum('nhwi,io->nhwo', cat, w_1x1) + b, 0.0)


def ref_block_forward(params, RGB, T, shared, first_block=False, d_rate=1):
    for (w, b) in params['rgb_conv']:
        RGB = ref_conv3x3_relu(RGB, w, b, dil=d_rate)
    for (w, b) in params['t_conv']:
        T = ref_conv3x3_relu(T, w, b, dil=d_rate)
    if first_block:
        shared = jnp.zeros_like(RGB)
    else:
        for (w, b) in params['shared_conv']:
            shared = ref_conv3x3_relu(shared, w, b, dil=d_rate)
    RGB_m = ref_msc(RGB, *params['rgb_msc'])
    T_m = ref_msc(T, *params['t_msc'])
    shared_m = shared if first_block else ref_msc(shared, *params['shared_fuse_msc'])
    wr, br = params['rgb_fuse_1x1']
    wt, bt = params['t_fuse_1x1']
    d_rgb = RGB_m - shared_m
    d_t = T_m - shared_m
    g_rgb = _sigmoid(jnp.einsum('nhwi,io->nhwo', d_rgb, wr) + br)
    g_t = _sigmoid(jnp.einsum('nhwi,io->nhwo', d_t, wt) + bt)
    new_shared = shared + d_rgb * g_rgb + d_t * g_t
    new_shared_m = ref_msc(new_shared, *params['shared_distribute_msc'])
    wrd, brd = params['rgb_dist_1x1']
    wtd, btd = params['t_dist_1x1']
    dr = new_shared_m - RGB_m
    dt = new_shared_m - T_m
    new_RGB = RGB + dr * _sigmoid(jnp.einsum('nhwi,io->nhwo', dr, wrd) + brd)
    new_T = T + dt * _sigmoid(jnp.einsum('nhwi,io->nhwo', dt, wtd) + btd)
    return new_RGB, new_T, new_shared


# ----------------------------------------------------------------------------
# deterministic parameter init (shapes follow Block.__init__; values synthetic)
# ----------------------------------------------------------------------------
def init_params(key, cfg, in_channels, first_block=False):
    C = cfg[0]
    keys = iter(jax.random.split(key, 64))

    def conv_layers(cin):
        layers = []
        for v in cfg:
            w = 0.1 * jax.random.normal(next(keys), (3, 3, cin, v), jnp.float32)
            b = 0.1 * jax.random.normal(next(keys), (v,), jnp.float32)
            layers.append((w, b))
            cin = v
        return layers

    def msc_params():
        w = 0.1 * jax.random.normal(next(keys), (3 * C, C), jnp.float32)
        b = 0.1 * jax.random.normal(next(keys), (C,), jnp.float32)
        return (w, b)

    def conv1x1():
        w = 0.1 * jax.random.normal(next(keys), (C, C), jnp.float32)
        b = 0.1 * jax.random.normal(next(keys), (C,), jnp.float32)
        return (w, b)

    params = {'rgb_conv': conv_layers(in_channels),
              't_conv': conv_layers(in_channels)}
    if not first_block:
        params['shared_conv'] = conv_layers(in_channels)
    params['rgb_msc'] = msc_params()
    params['t_msc'] = msc_params()
    if not first_block:
        params['shared_fuse_msc'] = msc_params()
    params['shared_distribute_msc'] = msc_params()
    params['rgb_fuse_1x1'] = conv1x1()
    params['t_fuse_1x1'] = conv1x1()
    params['rgb_dist_1x1'] = conv1x1()
    params['t_dist_1x1'] = conv1x1()
    return params


# ----------------------------------------------------------------------------
if __name__ == "__main__":
    cfg = [8, 8]              # Block(cfg=[8, 8], in_channels=3, first_block=False)
    in_channels = 3
    N, H, W = 2, 16, 16
    first_block = False

    key = jax.random.PRNGKey(0)
    kp, kr, kt, ks = jax.random.split(key, 4)
    params = init_params(kp, cfg, in_channels, first_block=first_block)

    # PyTorch-style NCHW inputs -> NHWC (wrapper layout).
    RGB_nchw = jax.random.normal(kr, (N, in_channels, H, W), jnp.float32)
    T_nchw = jax.random.normal(kt, (N, in_channels, H, W), jnp.float32)
    S_nchw = jax.random.normal(ks, (N, in_channels, H, W), jnp.float32)
    to_nhwc = lambda x: jnp.transpose(x, (0, 2, 3, 1))
    RGB, T, SHARED = to_nhwc(RGB_nchw), to_nhwc(T_nchw), to_nhwc(S_nchw)

    ref_outs = ref_block_forward(params, RGB, T, SHARED, first_block=first_block)

    # 1) f32 MXU validation run: checks layout / block-diag weight assembly.
    outs32 = block_forward(params, RGB, T, SHARED, first_block=first_block,
                           mm_dtype=jnp.float32)
    outs32 = jax.block_until_ready(outs32)
    for o, r in zip(outs32, ref_outs):
        assert o.shape == r.shape == (N, H, W, cfg[-1])
        err = float(jnp.max(jnp.abs(o - r)))
        assert jnp.allclose(o, r, rtol=5e-4, atol=5e-4), f"f32 max abs err {err}"

    # 2) performance path (default): bf16 MXU operands, f32 accumulation.
    outs = block_forward(params, RGB, T, SHARED, first_block=first_block)
    outs = jax.block_until_ready(outs)
    for o, r in zip(outs, ref_outs):
        assert o.shape == r.shape == (N, H, W, cfg[-1])
        err = float(jnp.max(jnp.abs(o - r)))
        assert jnp.allclose(o, r, rtol=1e-1, atol=1e-1), f"bf16 max abs err {err}"

    print("KERNEL_OK")
</pallas_src>

<mosaic_0001>
module attributes {stable_mosaic.version = 11 : i64} {
  func.func @k(%arg0: memref<8x384xf32, #tpu.memory_space<vmem>>, %arg1: memref<8x384xf32, #tpu.memory_space<vmem>>) attributes {dimension_semantics = [], scalar_prefetch = 0 : i64, scratch_operands = 0 : i64, tpu.core_type = #tpu.core_type<tc>} {
    %c0 = arith.constant 0 : index
    %c0_0 = arith.constant 0 : index
    %0 = vector.load %arg0[%c0, %c0_0] : memref<8x384xf32, #tpu.memory_space<vmem>>, vector<8x384xf32>
    %c365_i32 = arith.constant 365 : i32
    %1 = tpu.dynamic_rotate %0 by %c365_i32 dim 1 : vector<8x384xf32>, i32 -> vector<8x384xf32>
    %c0_1 = arith.constant 0 : index
    %c0_2 = arith.constant 0 : index
    %2 = vector.load %arg1[%c0_1, %c0_2] : memref<8x384xf32, #tpu.memory_space<vmem>>, vector<8x384xf32>
    tpu.vector_store %arg1[%c0_1, %c0_2], %1 {strides = array<i32>} : memref<8x384xf32, #tpu.memory_space<vmem>>, vector<8x384xf32>,
    return
  }
}

module attributes {stable_mosaic.version = 11 : i64} {
  func.func @_block_kernel(%arg0: i32, %arg1: memref<8x384xf32, #tpu.memory_space<vmem>>, %arg2: memref<1x24x384xf32, #tpu.memory_space<vmem>>, %arg3: memref<24x216xf32, #tpu.memory_space<vmem>>, %arg4: memref<24x1xf32, #tpu.memory_space<vmem>>, %arg5: memref<24x216xf32, #tpu.memory_space<vmem>>, %arg6: memref<24x1xf32, #tpu.memory_space<vmem>>, %arg7: memref<24x72xf32, #tpu.memory_space<vmem>>, %arg8: memref<24x1xf32, #tpu.memory_space<vmem>>, %arg9: memref<8x24xf32, #tpu.memory_space<vmem>>, %arg10: memref<8x1xf32, #tpu.memory_space<vmem>>, %arg11: memref<16x16xf32, #tpu.memory_space<vmem>>, %arg12: memref<16x1xf32, #tpu.memory_space<vmem>>, %arg13: memref<16x16xf32, #tpu.memory_space<vmem>>, %arg14: memref<16x1xf32, #tpu.memory_space<vmem>>, %arg15: memref<1x24x384xf32, #tpu.memory_space<vmem>>, %arg16: memref<216x384xf32, #tpu.memory_space<vmem>>) attributes {dimension_semantics = [#tpu.dimension_semantics<parallel>], iteration_bounds = array<i64: 2>, scalar_prefetch = 0 : i64, scratch_operands = 1 : i64, tpu.core_type = #tpu.core_type<tc>, window_params = [{pipeline_mode = #tpu.pipeline_mode<synchronous>, transform_indices = @transform_0, window_bounds = array<i64: 8, 384>}, {transform_indices = @transform_1, window_bounds = array<i64: 1, 24, 384>}, {pipeline_mode = #tpu.pipeline_mode<synchronous>, transform_indices = @transform_2, window_bounds = array<i64: 24, 216>}, {pipeline_mode = #tpu.pipeline_mode<synchronous>, transform_indices = @transform_3, window_bounds = array<i64: 24, 1>}, {pipeline_mode = #tpu.pipeline_mode<synchronous>, transform_indices = @transform_4, window_bounds = array<i64: 24, 216>}, {pipeline_mode = #tpu.pipeline_mode<synchronous>, transform_indices = @transform_5, window_bounds = array<i64: 24, 1>}, {pipeline_mode = #tpu.pipeline_mode<synchronous>, transform_indices = @transform_6, window_bounds = array<i64: 24, 72>}, {pipeline_mode = #tpu.pipeline_mode<synchronous>, transform_indices = @transform_7, window_bounds = array<i64: 24, 1>}, {pipeline_mode = #tpu.pipeline_mode<synchronous>, transform_indices = @transform_8, window_bounds = array<i64: 8, 24>}, {pipeline_mode = #tpu.pipeline_mode<synchronous>, transform_indices = @transform_9, window_bounds = array<i64: 8, 1>}, {pipeline_mode = #tpu.pipeline_mode<synchronous>, transform_indices = @transform_10, window_bounds = array<i64: 16, 16>}, {pipeline_mode = #tpu.pipeline_mode<synchronous>, transform_indices = @transform_11, window_bounds = array<i64: 16, 1>}, {pipeline_mode = #tpu.pipeline_mode<synchronous>, transform_indices = @transform_12, window_bounds = array<i64: 16, 16>}, {pipeline_mode = #tpu.pipeline_mode<synchronous>, transform_indices = @transform_13, window_bounds = array<i64: 16, 1>}, {transform_indices = @transform_14, window_bounds = array<i64: 1, 24, 384>}]} {
    %c0 = arith.constant 0 : index
    %c0_0 = arith.constant 0 : index
    %0 = vector.load %arg1[%c0, %c0_0] : memref<8x384xf32, #tpu.memory_space<vmem>>, vector<8x384xf32>
    %1 = vector.extract_strided_slice %0 {offsets = [0, 0], sizes = [1, 384], strides = [1, 1]} : vector<8x384xf32> to vector<1x384xf32>
    %cst = arith.constant 5.000000e-01 : f32
    %2 = vector.broadcast %cst : f32 to vector<1x384xf32>
    %3 = arith.cmpf ogt, %1, %2 : vector<1x384xf32>
    %4 = vector.extract_strided_slice %0 {offsets = [1, 0], sizes = [1, 384], strides = [1, 1]} : vector<8x384xf32> to vector<1x384xf32>
    %cst_1 = arith.constant 5.000000e-01 : f32
    %5 = vector.broadcast %cst_1 : f32 to vector<1x384xf32>
    %6 = arith.cmpf ogt, %4, %5 : vector<1x384xf32>
    %7 = vector.extract_strided_slice %0 {offsets = [2, 0], sizes = [1, 384], strides = [1, 1]} : vector<8x384xf32> to vector<1x384xf32>
    %cst_2 = arith.constant 5.000000e-01 : f32
    %8 = vector.broadcast %cst_2 : f32 to vector<1x384xf32>
    %9 = arith.cmpf ogt, %7, %8 : vector<1x384xf32>
    %10 = vector.extract_strided_slice %0 {offsets = [3, 0], sizes = [1, 384], strides = [1, 1]} : vector<8x384xf32> to vector<1x384xf32>
    %cst_3 = arith.constant 5.000000e-01 : f32
    %11 = vector.broadcast %cst_3 : f32 to vector<1x384xf32>
    %12 = arith.cmpf ogt, %10, %11 : vector<1x384xf32>
    %13 = vector.extract_strided_slice %0 {offsets = [4, 0], sizes = [1, 384], strides = [1, 1]} : vector<8x384xf32> to vector<1x384xf32>
    %cst_4 = arith.constant 5.000000e-01 : f32
    %14 = vector.broadcast %cst_4 : f32 to vector<1x384xf32>
    %15 = arith.cmpf ogt, %13, %14 : vector<1x384xf32>
    %c0_5 = arith.constant 0 : index
    %c0_6 = arith.constant 0 : index
    %c0_7 = arith.constant 0 : index
    %16 = vector.load %arg2[%c0_5, %c0_6, %c0_7] : memref<1x24x384xf32, #tpu.memory_space<vmem>>, vector<1x24x384xf32>
    %17 = vector.shape_cast %16 : vector<1x24x384xf32> to vector<24x384xf32>
    %18 = vector.extract_strided_slice %17 {offsets = [0, 365], sizes = [24, 19], strides = [1, 1]} : vector<24x384xf32> to vector<24x19xf32>
    %19 = vector.extract_strided_slice %17 {offsets = [0, 0], sizes = [24, 365], strides = [1, 1]} : vector<24x384xf32> to vector<24x365xf32>
    %20 = tpu.concatenate %18, %19 in 1 : vector<24x19xf32>, vector<24x365xf32> -> vector<24x384xf32>
    %c0_8 = arith.constant 0 : index
    %c0_9 = arith.constant 0 : index
    %21 = vector.load %arg16[%c0_8, %c0_9] : memref<216x384xf32, #tpu.memory_space<vmem>>, vector<24x384xf32>
    tpu.vector_store %arg16[%c0_8, %c0_9], %20 {strides = array<i32>} : memref<216x384xf32, #tpu.memory_space<vmem>>, vector<24x384xf32>,
    %22 = vector.extract_strided_slice %17 {offsets = [0, 366], sizes = [24, 18], strides = [1, 1]} : vector<24x384xf32> to vector<24x18xf32>
    %23 = vector.extract_strided_slice %17 {offsets = [0, 0], sizes = [24, 366], strides = [1, 1]} : vector<24x384xf32> to vector<24x366xf32>
    %24 = tpu.concatenate %22, %23 in 1 : vector<24x18xf32>, vector<24x366xf32> -> vector<24x384xf32>
    %c24 = arith.constant 24 : index
    %c0_10 = arith.constant 0 : index
    %25 = vector.load %arg16[%c24, %c0_10] : memref<216x384xf32, #tpu.memory_space<vmem>>, vector<24x384xf32>
    tpu.vector_store %arg16[%c24, %c0_10], %24 {strides = array<i32>} : memref<216x384xf32, #tpu.memory_space<vmem>>, vector<24x384xf32>,
    %26 = vector.extract_strided_slice %17 {offsets = [0, 367], sizes = [24, 17], strides = [1, 1]} : vector<24x384xf32> to vector<24x17xf32>
    %27 = vector.extract_strided_slice %17 {offsets = [0, 0], sizes = [24, 367], strides = [1, 1]} : vector<24x384xf32> to vector<24x367xf32>
    %28 = tpu.concatenate %26, %27 in 1 : vector<24x17xf32>, vector<24x367xf32> -> vector<24x384xf32>
    %c48 = arith.constant 48 : index
    %c0_11 = arith.constant 0 : index
    %29 = vector.load %arg16[%c48, %c0_11] : memref<216x384xf32, #tpu.memory_space<vmem>>, vector<24x384xf32>
    tpu.vector_store %arg16[%c48, %c0_11], %28 {strides = array<i32>} : memref<216x384xf32, #tpu.memory_space<vmem>>, vector<24x384xf32>,
    %30 = vector.extract_strided_slice %17 {offsets = [0, 383], sizes = [24, 1], strides = [1, 1]} : vector<24x384xf32> to vector<24x1xf32>
    %31 = vector.extract_strided_slice %17 {offsets = [0, 0], sizes = [24, 383], strides = [1, 1]} : vector<24x384xf32> to vector<24x383xf32>
    %32 = tpu.concatenate %30, %31 in 1 : vector<24x1xf32>, vector<24x383xf32> -> vector<24x384xf32>
    %c72 = arith.constant 72 : index
    %c0_12 = arith.constant 0 : index
    %33 = vector.load %arg16[%c72, %c0_12] : memref<216x384xf32, #tpu.memory_space<vmem>>, vector<24x384xf32>
    tpu.vector_store %arg16[%c72, %c0_12], %32 {strides = array<i32>} : memref<216x384xf32, #tpu.memory_space<vmem>>, vector<24x384xf32>,
    %c96 = arith.constant 96 : index
    %c0_13 = arith.constant 0 : index
    %34 = vector.load %arg16[%c96, %c0_13] : memref<216x384xf32, #tpu.memory_space<vmem>>, vector<24x384xf32>
    tpu.vector_store %arg16[%c96, %c0_13], %17 {strides = array<i32>} : memref<216x384xf32, #tpu.memory_space<vmem>>, vector<24x384xf32>,
    %35 = vector.extract_strided_slice %17 {offsets = [0, 1], sizes = [24, 383], strides = [1, 1]} : vector<24x384xf32> to vector<24x383xf32>
    %36 = vector.extract_strided_slice %17 {offsets = [0, 0], sizes = [24, 1], strides = [1, 1]} : vector<24x384xf32> to vector<24x1xf32>
    %37 = tpu.concatenate %35, %36 in 1 : vector<24x383xf32>, vector<24x1xf32> -> vector<24x384xf32>
    %c120 = arith.constant 120 : index
    %c0_14 = arith.constant 0 : index
    %38 = vector.load %arg16[%c120, %c0_14] : memref<216x384xf32, #tpu.memory_space<vmem>>, vector<24x384xf32>
    tpu.vector_store %arg16[%c120, %c0_14], %37 {strides = array<i32>} : memref<216x384xf32, #tpu.memory_space<vmem>>, vector<24x384xf32>,
    %39 = vector.extract_strided_slice %17 {offsets = [0, 17], sizes = [24, 367], strides = [1, 1]} : vector<24x384xf32> to vector<24x367xf32>
    %40 = vector.extract_strided_slice %17 {offsets = [0, 0], sizes = [24, 17], strides = [1, 1]} : vector<24x384xf32> to vector<24x17xf32>
    %41 = tpu.concatenate %39, %40 in 1 : vector<24x367xf32>, vector<24x17xf32> -> vector<24x384xf32>
    %c144 = arith.constant 144 : index
    %c0_15 = arith.constant 0 : index
    %42 = vector.load %arg16[%c144, %c0_15] : memref<216x384xf32, #tpu.memory_space<vmem>>, vector<24x384xf32>
    tpu.vector_store %arg16[%c144, %c0_15], %41 {strides = array<i32>} : memref<216x384xf32, #tpu.memory_space<vmem>>, vector<24x384xf32>,
    %43 = vector.extract_strided_slice %17 {offsets = [0, 18], sizes = [24, 366], strides = [1, 1]} : vector<24x384xf32> to vector<24x366xf32>
    %44 = vector.extract_strided_slice %17 {offsets = [0, 0], sizes = [24, 18], strides = [1, 1]} : vector<24x384xf32> to vector<24x18xf32>
    %45 = tpu.concatenate %43, %44 in 1 : vector<24x366xf32>, vector<24x18xf32> -> vector<24x384xf32>
    %c168 = arith.constant 168 : index
    %c0_16 = arith.constant 0 : index
    %46 = vector.load %arg16[%c168, %c0_16] : memref<216x384xf32, #tpu.memory_space<vmem>>, vector<24x384xf32>
    tpu.vector_store %arg16[%c168, %c0_16], %45 {strides = array<i32>} : memref<216x384xf32, #tpu.memory_space<vmem>>, vector<24x384xf32>,
    %47 = vector.extract_strided_slice %17 {offsets = [0, 19], sizes = [24, 365], strides = [1, 1]} : vector<24x384xf32> to vector<24x365xf32>
    %48 = vector.extract_strided_slice %17 {offsets = [0, 0], sizes = [24, 19], strides = [1, 1]} : vector<24x384xf32> to vector<24x19xf32>
    %49 = tpu.concatenate %47, %48 in 1 : vector<24x365xf32>, vector<24x19xf32> -> vector<24x384xf32>
    %c192 = arith.constant 192 : index
    %c0_17 = arith.constant 0 : index
    %50 = vector.load %arg16[%c192, %c0_17] : memref<216x384xf32, #tpu.memory_space<vmem>>, vector<24x384xf32>
    tpu.vector_store %arg16[%c192, %c0_17], %49 {strides = array<i32>} : memref<216x384xf32, #tpu.memory_space<vmem>>, vector<24x384xf32>,
    %c0_18 = arith.constant 0 : index
    %c0_19 = arith.constant 0 : index
    %51 = vector.load %arg16[%c0_18, %c0_19] : memref<216x384xf32, #tpu.memory_space<vmem>>, vector<216x384xf32>
    %c0_20 = arith.constant 0 : index
    %c0_21 = arith.constant 0 : index
    %52 = vector.load %arg3[%c0_20, %c0_21] : memref<24x216xf32, #tpu.memory_space<vmem>>, vector<24x216xf32>
    %cst_22 = arith.constant dense<0.000000e+00> : vector<24x384xf32>
    %53 = tpu.matmul %52, %51, %cst_22 {dimension_numbers = #tpu.dot_dimension_numbers<[1], [0], [0], [1], [0, 0, 1, 1], [], []>} : vector<24x216xf32>, vector<216x384xf32>, vector<24x384xf32> -> vector<24x384xf32>
    %c0_23 = arith.constant 0 : index
    %c0_24 = arith.constant 0 : index
    %54 = vector.load %arg4[%c0_23, %c0_24] : memref<24x1xf32, #tpu.memory_space<vmem>>, vector<24x1xf32>
    %55 = vector.broadcast %54 : vector<24x1xf32> to vector<24x384xf32>
    %56 = arith.addf %53, %55 : vector<24x384xf32>
    %cst_25 = arith.constant 0.000000e+00 : f32
    %57 = vector.broadcast %cst_25 : f32 to vector<24x384xf32>
    %58 = arith.maximumf %56, %57 : vector<24x384xf32>
    %59 = vector.shape_cast %3 : vector<1x384xi1> to vector<1x384xi1>
    %60 = vector.broadcast %59 : vector<1x384xi1> to vector<24x384xi1>
    %cst_26 = arith.constant 0.000000e+00 : f32
    %61 = vector.broadcast %cst_26 : f32 to vector<24x384xf32>
    %62 = arith.select %60, %58, %61 : vector<24x384xi1>, vector<24x384xf32>
    %63 = vector.extract_strided_slice %62 {offsets = [0, 365], sizes = [24, 19], strides = [1, 1]} : vector<24x384xf32> to vector<24x19xf32>
    %64 = vector.extract_strided_slice %62 {offsets = [0, 0], sizes = [24, 365], strides = [1, 1]} : vector<24x384xf32> to vector<24x365xf32>
    %65 = tpu.concatenate %63, %64 in 1 : vector<24x19xf32>, vector<24x365xf32> -> vector<24x384xf32>
    %c0_27 = arith.constant 0 : index
    %c0_28 = arith.constant 0 : index
    %66 = vector.load %arg16[%c0_27, %c0_28] : memref<216x384xf32, #tpu.memory_space<vmem>>, vector<24x384xf32>
    tpu.vector_store %arg16[%c0_27, %c0_28], %65 {strides = array<i32>} : memref<216x384xf32, #tpu.memory_space<vmem>>, vector<24x384xf32>,
    %67 = vector.extract_strided_slice %62 {offsets = [0, 366], sizes = [24, 18], strides = [1, 1]} : vector<24x384xf32> to vector<24x18xf32>
    %68 = vector.extract_strided_slice %62 {offsets = [0, 0], sizes = [24, 366], strides = [1, 1]} : vector<24x384xf32> to vector<24x366xf32>
    %69 = tpu.concatenate %67, %68 in 1 : vector<24x18xf32>, vector<24x366xf32> -> vector<24x384xf32>
    %c24_29 = arith.constant 24 : index
    %c0_30 = arith.constant 0 : index
    %70 = vector.load %arg16[%c24_29, %c0_30] : memref<216x384xf32, #tpu.memory_space<vmem>>, vector<24x384xf32>
    tpu.vector_store %arg16[%c24_29, %c0_30], %69 {strides = array<i32>} : memref<216x384xf32, #tpu.memory_space<vmem>>, vector<24x384xf32>,
    %71 = vector.extract_strided_slice %62 {offsets = [0, 367], sizes = [24, 17], strides = [1, 1]} : vector<24x384xf32> to vector<24x17xf32>
    %72 = vector.extract_strided_slice %62 {offsets = [0, 0], sizes = [24, 367], strides = [1, 1]} : vector<24x384xf32> to vector<24x367xf32>
    %73 = tpu.concatenate %71, %72 in 1 : vector<24x17xf32>, vector<24x367xf32> -> vector<24x384xf32>
    %c48_31 = arith.constant 48 : index
    %c0_32 = arith.constant 0 : index
    %74 = vector.load %arg16[%c48_31, %c0_32] : memref<216x384xf32, #tpu.memory_space<vmem>>, vector<24x384xf32>
    tpu.vector_store %arg16[%c48_31, %c0_32], %73 {strides = array<i32>} : memref<216x384xf32, #tpu.memory_space<vmem>>, vector<24x384xf32>,
    %75 = vector.extract_strided_slice %62 {offsets = [0, 383], sizes = [24, 1], strides = [1, 1]} : vector<24x384xf32> to vector<24x1xf32>
    %76 = vector.extract_strided_slice %62 {offsets = [0, 0], sizes = [24, 383], strides = [1, 1]} : vector<24x384xf32> to vector<24x383xf32>
    %77 = tpu.concatenate %75, %76 in 1 : vector<24x1xf32>, vector<24x383xf32> -> vector<24x384xf32>
    %c72_33 = arith.constant 72 : index
    %c0_34 = arith.constant 0 : index
    %78 = vector.load %arg16[%c72_33, %c0_34] : memref<216x384xf32, #tpu.memory_space<vmem>>, vector<24x384xf32>
    tpu.vector_store %arg16[%c72_33, %c0_34], %77 {strides = array<i32>} : memref<216x384xf32, #tpu.memory_space<vmem>>, vector<24x384xf32>,
    %c96_35 = arith.constant 96 : index
    %c0_36 = arith.constant 0 : index
    %79 = vector.load %arg16[%c96_35, %c0_36] : memref<216x384xf32, #tpu.memory_space<vmem>>, vector<24x384xf32>
    tpu.vector_store %arg16[%c96_35, %c0_36], %62 {strides = array<i32>} : memref<216x384xf32, #tpu.memory_space<vmem>>, vector<24x384xf32>,
    %80 = vector.extract_strided_slice %62 {offsets = [0, 1], sizes = [24, 383], strides = [1, 1]} : vector<24x384xf32> to vector<24x383xf32>
    %81 = vector.extract_strided_slice %62 {offsets = [0, 0], sizes = [24, 1], strides = [1, 1]} : vector<24x384xf32> to vector<24x1xf32>
    %82 = tpu.concatenate %80, %81 in 1 : vector<24x383xf32>, vector<24x1xf32> -> vector<24x384xf32>
    %c120_37 = arith.constant 120 : index
    %c0_38 = arith.constant 0 : index
    %83 = vector.load %arg16[%c120_37, %c0_38] : memref<216x384xf32, #tpu.memory_space<vmem>>, vector<24x384xf32>
    tpu.vector_store %arg16[%c120_37, %c0_38], %82 {strides = array<i32>} : memref<216x384xf32, #tpu.memory_space<vmem>>, vector<24x384xf32>,
    %84 = vector.extract_strided_slice %62 {offsets = [0, 17], sizes = [24, 367], strides = [1, 1]} : vector<24x384xf32> to vector<24x367xf32>
    %85 = vector.extract_strided_slice %62 {offsets = [0, 0], sizes = [24, 17], strides = [1, 1]} : vector<24x384xf32> to vector<24x17xf32>
    %86 = tpu.concatenate %84, %85 in 1 : vector<24x367xf32>, vector<24x17xf32> -> vector<24x384xf32>
    %c144_39 = arith.constant 144 : index
    %c0_40 = arith.constant 0 : index
    %87 = vector.load %arg16[%c144_39, %c0_40] : memref<216x384xf32, #tpu.memory_space<vmem>>, vector<24x384xf32>
    tpu.vector_store %arg16[%c144_39, %c0_40], %86 {strides = array<i32>} : memref<216x384xf32, #tpu.memory_space<vmem>>, vector<24x384xf32>,
    %88 = vector.extract_strided_slice %62 {offsets = [0, 18], sizes = [24, 366], strides = [1, 1]} : vector<24x384xf32> to vector<24x366xf32>
    %89 = vector.extract_strided_slice %62 {offsets = [0, 0], sizes = [24, 18], strides = [1, 1]} : vector<24x384xf32> to vector<24x18xf32>
    %90 = tpu.concatenate %88, %89 in 1 : vector<24x366xf32>, vector<24x18xf32> -> vector<24x384xf32>
    %c168_41 = arith.constant 168 : index
    %c0_42 = arith.constant 0 : index
    %91 = vector.load %arg16[%c168_41, %c0_42] : memref<216x384xf32, #tpu.memory_space<vmem>>, vector<24x384xf32>
    tpu.vector_store %arg16[%c168_41, %c0_42], %90 {strides = array<i32>} : memref<216x384xf32, #tpu.memory_space<vmem>>, vector<24x384xf32>,
    %92 = vector.extract_strided_slice %62 {offsets = [0, 19], sizes = [24, 365], strides = [1, 1]} : vector<24x384xf32> to vector<24x365xf32>
    %93 = vector.extract_strided_slice %62 {offsets = [0, 0], sizes = [24, 19], strides = [1, 1]} : vector<24x384xf32> to vector<24x19xf32>
    %94 = tpu.concatenate %92, %93 in 1 : vector<24x365xf32>, vector<24x19xf32> -> vector<24x384xf32>
    %c192_43 = arith.constant 192 : index
    %c0_44 = arith.constant 0 : index
    %95 = vector.load %arg16[%c192_43, %c0_44] : memref<216x384xf32, #tpu.memory_space<vmem>>, vector<24x384xf32>
    tpu.vector_store %arg16[%c192_43, %c0_44], %94 {strides = array<i32>} : memref<216x384xf32, #tpu.memory_space<vmem>>, vector<24x384xf32>,
    %c0_45 = arith.constant 0 : index
    %c0_46 = arith.constant 0 : index
    %96 = vector.load %arg16[%c0_45, %c0_46] : memref<216x384xf32, #tpu.memory_space<vmem>>, vector<216x384xf32>
    %c0_47 = arith.constant 0 : index
    %c0_48 = arith.constant 0 : index
    %97 = vector.load %arg5[%c0_47, %c0_48] : memref<24x216xf32, #tpu.memory_space<vmem>>, vector<24x216xf32>
    %cst_49 = arith.constant dense<0.000000e+00> : vector<24x384xf32>
    %98 = tpu.matmul %97, %96, %cst_49 {dimension_numbers = #tpu.dot_dimension_numbers<[1], [0], [0], [1], [0, 0, 1, 1], [], []>} : vector<24x216xf32>, vector<216x384xf32>, vector<24x384xf32> -> vector<24x384xf32>
    %c0_50 = arith.constant 0 : index
    %c0_51 = arith.constant 0 : index
    %99 = vector.load %arg6[%c0_50, %c0_51] : memref<24x1xf32, #tpu.memory_space<vmem>>, vector<24x1xf32>
    %100 = vector.broadcast %99 : vector<24x1xf32> to vector<24x384xf32>
    %101 = arith.addf %98, %100 : vector<24x384xf32>
    %cst_52 = arith.constant 0.000000e+00 : f32
    %102 = vector.broadcast %cst_52 : f32 to vector<24x384xf32>
    %103 = arith.maximumf %101, %102 : vector<24x384xf32>
    %cst_53 = arith.constant 0.000000e+00 : f32
    %104 = vector.broadcast %cst_53 : f32 to vector<24x384xf32>
    %105 = arith.select %60, %103, %104 : vector<24x384xi1>, vector<24x384xf32>
    %106 = vector.shape_cast %6 : vector<1x384xi1> to vector<1x384xi1>
    %107 = vector.broadcast %106 : vector<1x384xi1> to vector<24x384xi1>
    %108 = vector.extract_strided_slice %105 {offsets = [0, 1], sizes = [24, 383], strides = [1, 1]} : vector<24x384xf32> to vector<24x383xf32>
    %109 = vector.extract_strided_slice %105 {offsets = [0, 0], sizes = [24, 1], strides = [1, 1]} : vector<24x384xf32> to vector<24x1xf32>
    %110 = tpu.concatenate %108, %109 in 1 : vector<24x383xf32>, vector<24x1xf32> -> vector<24x384xf32>
    %111 = arith.maximumf %105, %110 : vector<24x384xf32>
    %112 = vector.extract_strided_slice %111 {offsets = [0, 383], sizes = [24, 1], strides = [1, 1]} : vector<24x384xf32> to vector<24x1xf32>
    %113 = vector.extract_strided_slice %111 {offsets = [0, 0], sizes = [24, 383], strides = [1, 1]} : vector<24x384xf32> to vector<24x383xf32>
    %114 = tpu.concatenate %112, %113 in 1 : vector<24x1xf32>, vector<24x383xf32> -> vector<24x384xf32>
    %115 = arith.select %107, %114, %111 : vector<24x384xi1>, vector<24x384xf32>
    %116 = vector.shape_cast %9 : vector<1x384xi1> to vector<1x384xi1>
    %117 = vector.broadcast %116 : vector<1x384xi1> to vector<24x384xi1>
    %118 = vector.extract_strided_slice %115 {offsets = [0, 18], sizes = [24, 366], strides = [1, 1]} : vector<24x384xf32> to vector<24x366xf32>
    %119 = vector.extract_strided_slice %115 {offsets = [0, 0], sizes = [24, 18], strides = [1, 1]} : vector<24x384xf32> to vector<24x18xf32>
    %120 = tpu.concatenate %118, %119 in 1 : vector<24x366xf32>, vector<24x18xf32> -> vector<24x384xf32>
    %121 = arith.maximumf %115, %120 : vector<24x384xf32>
    %122 = vector.extract_strided_slice %121 {offsets = [0, 366], sizes = [24, 18], strides = [1, 1]} : vector<24x384xf32> to vector<24x18xf32>
    %123 = vector.extract_strided_slice %121 {offsets = [0, 0], sizes = [24, 366], strides = [1, 1]} : vector<24x384xf32> to vector<24x366xf32>
    %124 = tpu.concatenate %122, %123 in 1 : vector<24x18xf32>, vector<24x366xf32> -> vector<24x384xf32>
    %125 = arith.select %117, %124, %121 : vector<24x384xi1>, vector<24x384xf32>
    %126 = vector.shape_cast %12 : vector<1x384xi1> to vector<1x384xi1>
    %127 = vector.broadcast %126 : vector<1x384xi1> to vector<24x384xi1>
    %128 = vector.extract_strided_slice %125 {offsets = [0, 2], sizes = [24, 382], strides = [1, 1]} : vector<24x384xf32> to vector<24x382xf32>
    %129 = vector.extract_strided_slice %125 {offsets = [0, 0], sizes = [24, 2], strides = [1, 1]} : vector<24x384xf32> to vector<24x2xf32>
    %130 = tpu.concatenate %128, %129 in 1 : vector<24x382xf32>, vector<24x2xf32> -> vector<24x384xf32>
    %131 = arith.maximumf %125, %130 : vector<24x384xf32>
    %132 = vector.extract_strided_slice %131 {offsets = [0, 382], sizes = [24, 2], strides = [1, 1]} : vector<24x384xf32> to vector<24x2xf32>
    %133 = vector.extract_strided_slice %131 {offsets = [0, 0], sizes = [24, 382], strides = [1, 1]} : vector<24x384xf32> to vector<24x382xf32>
    %134 = tpu.concatenate %132, %133 in 1 : vector<24x2xf32>, vector<24x382xf32> -> vector<24x384xf32>
    %135 = arith.select %127, %134, %131 : vector<24x384xi1>, vector<24x384xf32>
    %136 = vector.shape_cast %15 : vector<1x384xi1> to vector<1x384xi1>
    %137 = vector.broadcast %136 : vector<1x384xi1> to vector<24x384xi1>
    %138 = vector.extract_strided_slice %135 {offsets = [0, 36], sizes = [24, 348], strides = [1, 1]} : vector<24x384xf32> to vector<24x348xf32>
    %139 = vector.extract_strided_slice %135 {offsets = [0, 0], sizes = [24, 36], strides = [1, 1]} : vector<24x384xf32> to vector<24x36xf32>
    %140 = tpu.concatenate %138, %139 in 1 : vector<24x348xf32>, vector<24x36xf32> -> vector<24x384xf32>
    %141 = arith.maximumf %135, %140 : vector<24x384xf32>
    %142 = vector.extract_strided_slice %141 {offsets = [0, 348], sizes = [24, 36], strides = [1, 1]} : vector<24x384xf32> to vector<24x36xf32>
    %143 = vector.extract_strided_slice %141 {offsets = [0, 0], sizes = [24, 348], strides = [1, 1]} : vector<24x384xf32> to vector<24x348xf32>
    %144 = tpu.concatenate %142, %143 in 1 : vector<24x36xf32>, vector<24x348xf32> -> vector<24x384xf32>
    %145 = arith.select %137, %144, %141 : vector<24x384xi1>, vector<24x384xf32>
    %146 = tpu.concatenate %105, %125, %145 in 0 : vector<24x384xf32>, vector<24x384xf32>, vector<24x384xf32> -> vector<72x384xf32>
    %c0_54 = arith.constant 0 : index
    %c0_55 = arith.constant 0 : index
    %147 = vector.load %arg7[%c0_54, %c0_55] : memref<24x72xf32, #tpu.memory_space<vmem>>, vector<24x72xf32>
    %cst_56 = arith.constant dense<0.000000e+00> : vector<24x384xf32>
    %148 = tpu.matmul %147, %146, %cst_56 {dimension_numbers = #tpu.dot_dimension_numbers<[1], [0], [0], [1], [0, 0, 1, 1], [], []>} : vector<24x72xf32>, vector<72x384xf32>, vector<24x384xf32> -> vector<24x384xf32>
    %c0_57 = arith.constant 0 : index
    %c0_58 = arith.constant 0 : index
    %149 = vector.load %arg8[%c0_57, %c0_58] : memref<24x1xf32, #tpu.memory_space<vmem>>, vector<24x1xf32>
    %150 = vector.broadcast %149 : vector<24x1xf32> to vector<24x384xf32>
    %151 = arith.addf %148, %150 : vector<24x384xf32>
    %cst_59 = arith.constant 0.000000e+00 : f32
    %152 = vector.broadcast %cst_59 : f32 to vector<24x384xf32>
    %153 = arith.maximumf %151, %152 : vector<24x384xf32>
    %154 = vector.extract_strided_slice %105 {offsets = [0, 0], sizes = [8, 384], strides = [1, 1]} : vector<24x384xf32> to vector<8x384xf32>
    %155 = vector.extract_strided_slice %105 {offsets = [8, 0], sizes = [8, 384], strides = [1, 1]} : vector<24x384xf32> to vector<8x384xf32>
    %156 = vector.extract_strided_slice %153 {offsets = [0, 0], sizes = [8, 384], strides = [1, 1]} : vector<24x384xf32> to vector<8x384xf32>
    %157 = vector.extract_strided_slice %153 {offsets = [8, 0], sizes = [8, 384], strides = [1, 1]} : vector<24x384xf32> to vector<8x384xf32>
    %158 = vector.extract_strided_slice %105 {offsets = [16, 0], sizes = [8, 384], strides = [1, 1]} : vector<24x384xf32> to vector<8x384xf32>
    %159 = vector.extract_strided_slice %153 {offsets = [16, 0], sizes = [8, 384], strides = [1, 1]} : vector<24x384xf32> to vector<8x384xf32>
    %160 = arith.subf %156, %159 : vector<8x384xf32>
    %161 = arith.subf %157, %159 : vector<8x384xf32>
    %162 = tpu.concatenate %160, %161 in 0 : vector<8x384xf32>, vector<8x384xf32> -> vector<16x384xf32>
    %c0_60 = arith.constant 0 : index
    %c0_61 = arith.constant 0 : index
    %163 = vector.load %arg11[%c0_60, %c0_61] : memref<16x16xf32, #tpu.memory_space<vmem>>, vector<16x16xf32>
    %cst_62 = arith.constant dense<0.000000e+00> : vector<16x384xf32>
    %164 = tpu.matmul %163, %162, %cst_62 {dimension_numbers = #tpu.dot_dimension_numbers<[1], [0], [0], [1], [0, 0, 1, 1], [], []>} : vector<16x16xf32>, vector<16x384xf32>, vector<16x384xf32> -> vector<16x384xf32>
    %c0_63 = arith.constant 0 : index
    %c0_64 = arith.constant 0 : index
    %165 = vector.load %arg12[%c0_63, %c0_64] : memref<16x1xf32, #tpu.memory_space<vmem>>, vector<16x1xf32>
    %166 = vector.broadcast %165 : vector<16x1xf32> to vector<16x384xf32>
    %167 = arith.addf %164, %166 : vector<16x384xf32>
    %cst_65 = arith.constant 0.000000e+00 : f32
    %168 = vector.broadcast %cst_65 : f32 to vector<16x384xf32>
    %169 = arith.subf %168, %167 : vector<16x384xf32>
    %170 = math.exp %169 : vector<16x384xf32>
    %cst_66 = arith.constant 1.000000e+00 : f32
    %171 = vector.broadcast %cst_66 : f32 to vector<16x384xf32>
    %172 = arith.addf %171, %170 : vector<16x384xf32>
    %cst_67 = arith.constant 1.000000e+00 : f32
    %173 = vector.broadcast %cst_67 : f32 to vector<16x384xf32>
    %174 = arith.divf %173, %172 : vector<16x384xf32>
    %175 = vector.extract_strided_slice %174 {offsets = [0, 0], sizes = [8, 384], strides = [1, 1]} : vector<16x384xf32> to vector<8x384xf32>
    %176 = arith.mulf %160, %175 : vector<8x384xf32>
    %177 = arith.addf %158, %176 : vector<8x384xf32>
    %178 = vector.extract_strided_slice %174 {offsets = [8, 0], sizes = [8, 384], strides = [1, 1]} : vector<16x384xf32> to vector<8x384xf32>
    %179 = arith.mulf %161, %178 : vector<8x384xf32>
    %180 = arith.addf %177, %179 : vector<8x384xf32>
    %181 = vector.shape_cast %6 : vector<1x384xi1> to vector<1x384xi1>
    %182 = vector.broadcast %181 : vector<1x384xi1> to vector<8x384xi1>
    %183 = vector.extract_strided_slice %180 {offsets = [0, 1], sizes = [8, 383], strides = [1, 1]} : vector<8x384xf32> to vector<8x383xf32>
    %184 = vector.extract_strided_slice %180 {offsets = [0, 0], sizes = [8, 1], strides = [1, 1]} : vector<8x384xf32> to vector<8x1xf32>
    %185 = tpu.concatenate %183, %184 in 1 : vector<8x383xf32>, vector<8x1xf32> -> vector<8x384xf32>
    %186 = arith.maximumf %180, %185 : vector<8x384xf32>
    %187 = vector.extract_strided_slice %186 {offsets = [0, 383], sizes = [8, 1], strides = [1, 1]} : vector<8x384xf32> to vector<8x1xf32>
    %188 = vector.extract_strided_slice %186 {offsets = [0, 0], sizes = [8, 383], strides = [1, 1]} : vector<8x384xf32> to vector<8x383xf32>
    %189 = tpu.concatenate %187, %188 in 1 : vector<8x1xf32>, vector<8x383xf32> -> vector<8x384xf32>
    %190 = arith.select %182, %189, %186 : vector<8x384xi1>, vector<8x384xf32>
    %191 = vector.shape_cast %9 : vector<1x384xi1> to vector<1x384xi1>
    %192 = vector.broadcast %191 : vector<1x384xi1> to vector<8x384xi1>
    %193 = vector.extract_strided_slice %190 {offsets = [0, 18], sizes = [8, 366], strides = [1, 1]} : vector<8x384xf32> to vector<8x366xf32>
    %194 = vector.extract_strided_slice %190 {offsets = [0, 0], sizes = [8, 18], strides = [1, 1]} : vector<8x384xf32> to vector<8x18xf32>
    %195 = tpu.concatenate %193, %194 in 1 : vector<8x366xf32>, vector<8x18xf32> -> vector<8x384xf32>
    %196 = arith.maximumf %190, %195 : vector<8x384xf32>
    %197 = vector.extract_strided_slice %196 {offsets = [0, 366], sizes = [8, 18], strides = [1, 1]} : vector<8x384xf32> to vector<8x18xf32>
    %198 = vector.extract_strided_slice %196 {offsets = [0, 0], sizes = [8, 366], strides = [1, 1]} : vector<8x384xf32> to vector<8x366xf32>
    %199 = tpu.concatenate %197, %198 in 1 : vector<8x18xf32>, vector<8x366xf32> -> vector<8x384xf32>
    %200 = arith.select %192, %199, %196 : vector<8x384xi1>, vector<8x384xf32>
    %201 = vector.shape_cast %12 : vector<1x384xi1> to vector<1x384xi1>
    %202 = vector.broadcast %201 : vector<1x384xi1> to vector<8x384xi1>
    %203 = vector.extract_strided_slice %200 {offsets = [0, 2], sizes = [8, 382], strides = [1, 1]} : vector<8x384xf32> to vector<8x382xf32>
    %204 = vector.extract_strided_slice %200 {offsets = [0, 0], sizes = [8, 2], strides = [1, 1]} : vector<8x384xf32> to vector<8x2xf32>
    %205 = tpu.concatenate %203, %204 in 1 : vector<8x382xf32>, vector<8x2xf32> -> vector<8x384xf32>
    %206 = arith.maximumf %200, %205 : vector<8x384xf32>
    %207 = vector.extract_strided_slice %206 {offsets = [0, 382], sizes = [8, 2], strides = [1, 1]} : vector<8x384xf32> to vector<8x2xf32>
    %208 = vector.extract_strided_slice %206 {offsets = [0, 0], sizes = [8, 382], strides = [1, 1]} : vector<8x384xf32> to vector<8x382xf32>
    %209 = tpu.concatenate %207, %208 in 1 : vector<8x2xf32>, vector<8x382xf32> -> vector<8x384xf32>
    %210 = arith.select %202, %209, %206 : vector<8x384xi1>, vector<8x384xf32>
    %211 = vector.shape_cast %15 : vector<1x384xi1> to vector<1x384xi1>
    %212 = vector.broadcast %211 : vector<1x384xi1> to vector<8x384xi1>
    %213 = vector.extract_strided_slice %210 {offsets = [0, 36], sizes = [8, 348], strides = [1, 1]} : vector<8x384xf32> to vector<8x348xf32>
    %214 = vector.extract_strided_slice %210 {offsets = [0, 0], sizes = [8, 36], strides = [1, 1]} : vector<8x384xf32> to vector<8x36xf32>
    %215 = tpu.concatenate %213, %214 in 1 : vector<8x348xf32>, vector<8x36xf32> -> vector<8x384xf32>
    %216 = arith.maximumf %210, %215 : vector<8x384xf32>
    %217 = vector.extract_strided_slice %216 {offsets = [0, 348], sizes = [8, 36], strides = [1, 1]} : vector<8x384xf32> to vector<8x36xf32>
    %218 = vector.extract_strided_slice %216 {offsets = [0, 0], sizes = [8, 348], strides = [1, 1]} : vector<8x384xf32> to vector<8x348xf32>
    %219 = tpu.concatenate %217, %218 in 1 : vector<8x36xf32>, vector<8x348xf32> -> vector<8x384xf32>
    %220 = arith.select %212, %219, %216 : vector<8x384xi1>, vector<8x384xf32>
    %221 = tpu.concatenate %180, %200, %220 in 0 : vector<8x384xf32>, vector<8x384xf32>, vector<8x384xf32> -> vector<24x384xf32>
    %c0_68 = arith.constant 0 : index
    %c0_69 = arith.constant 0 : index
    %222 = vector.load %arg9[%c0_68, %c0_69] : memref<8x24xf32, #tpu.memory_space<vmem>>, vector<8x24xf32>
    %cst_70 = arith.constant dense<0.000000e+00> : vector<8x384xf32>
    %223 = tpu.matmul %222, %221, %cst_70 {dimension_numbers = #tpu.dot_dimension_numbers<[1], [0], [0], [1], [0, 0, 1, 1], [], []>} : vector<8x24xf32>, vector<24x384xf32>, vector<8x384xf32> -> vector<8x384xf32>
    %c0_71 = arith.constant 0 : index
    %c0_72 = arith.constant 0 : index
    %224 = vector.load %arg10[%c0_71, %c0_72] : memref<8x1xf32, #tpu.memory_space<vmem>>, vector<8x1xf32>
    %225 = vector.broadcast %224 : vector<8x1xf32> to vector<8x384xf32>
    %226 = arith.addf %223, %225 : vector<8x384xf32>
    %cst_73 = arith.constant 0.000000e+00 : f32
    %227 = vector.broadcast %cst_73 : f32 to vector<8x384xf32>
    %228 = arith.maximumf %226, %227 : vector<8x384xf32>
    %229 = arith.subf %228, %156 : vector<8x384xf32>
    %230 = arith.subf %228, %157 : vector<8x384xf32>
    %231 = tpu.concatenate %229, %230 in 0 : vector<8x384xf32>, vector<8x384xf32> -> vector<16x384xf32>
    %c0_74 = arith.constant 0 : index
    %c0_75 = arith.constant 0 : index
    %232 = vector.load %arg13[%c0_74, %c0_75] : memref<16x16xf32, #tpu.memory_space<vmem>>, vector<16x16xf32>
    %cst_76 = arith.constant dense<0.000000e+00> : vector<16x384xf32>
    %233 = tpu.matmul %232, %231, %cst_76 {dimension_numbers = #tpu.dot_dimension_numbers<[1], [0], [0], [1], [0, 0, 1, 1], [], []>} : vector<16x16xf32>, vector<16x384xf32>, vector<16x384xf32> -> vector<16x384xf32>
    %c0_77 = arith.constant 0 : index
    %c0_78 = arith.constant 0 : index
    %234 = vector.load %arg14[%c0_77, %c0_78] : memref<16x1xf32, #tpu.memory_space<vmem>>, vector<16x1xf32>
    %235 = vector.broadcast %234 : vector<16x1xf32> to vector<16x384xf32>
    %236 = arith.addf %233, %235 : vector<16x384xf32>
    %cst_79 = arith.constant 0.000000e+00 : f32
    %237 = vector.broadcast %cst_79 : f32 to vector<16x384xf32>
    %238 = arith.subf %237, %236 : vector<16x384xf32>
    %239 = math.exp %238 : vector<16x384xf32>
    %cst_80 = arith.constant 1.000000e+00 : f32
    %240 = vector.broadcast %cst_80 : f32 to vector<16x384xf32>
    %241 = arith.addf %240, %239 : vector<16x384xf32>
    %cst_81 = arith.constant 1.000000e+00 : f32
    %242 = vector.broadcast %cst_81 : f32 to vector<16x384xf32>
    %243 = arith.divf %242, %241 : vector<16x384xf32>
    %244 = vector.extract_strided_slice %243 {offsets = [0, 0], sizes = [8, 384], strides = [1, 1]} : vector<16x384xf32> to vector<8x384xf32>
    %245 = arith.mulf %229, %244 : vector<8x384xf32>
    %246 = arith.addf %154, %245 : vector<8x384xf32>
    %247 = vector.extract_strided_slice %243 {offsets = [8, 0], sizes = [8, 384], strides = [1, 1]} : vector<16x384xf32> to vector<8x384xf32>
    %248 = arith.mulf %230, %247 : vector<8x384xf32>
    %249 = arith.addf %155, %248 : vector<8x384xf32>
    %250 = tpu.concatenate %246, %249, %180 in 0 : vector<8x384xf32>, vector<8x384xf32>, vector<8x384xf32> -> vector<24x384xf32>
    %c0_82 = arith.constant 0 : index
    %c0_83 = arith.constant 0 : index
    %c0_84 = arith.constant 0 : index
    %251 = vector.load %arg15[%c0_82, %c0_83, %c0_84] : memref<1x24x384xf32, #tpu.memory_space<vmem>>, vector<1x24x384xf32>
    %252 = vector.shape_cast %251 : vector<1x24x384xf32> to vector<24x384xf32>
    %253 = vector.shape_cast %250 : vector<24x384xf32> to vector<1x24x384xf32>
    tpu.vector_store %arg15[%c0_82, %c0_83, %c0_84], %253 {strides = array<i32>} : memref<1x24x384xf32, #tpu.memory_space<vmem>>, vector<1x24x384xf32>,
    return
  }
  func.func @transform_0(%arg0: i32) -> (i32, i32) {
    %c0_i32 = arith.constant 0 : i32
    %c0_i32_0 = arith.constant 0 : i32
    %c0_i32_1 = arith.constant 0 : i32
    return %c0_i32, %c0_i32_0 : i32, i32
  }
  func.func @transform_1(%arg0: i32) -> (i32, i32, i32) {
    %c0_i32 = arith.constant 0 : i32
    %c0_i32_0 = arith.constant 0 : i32
    %c0_i32_1 = arith.constant 0 : i32
    return %arg0, %c0_i32, %c0_i32_0 : i32, i32, i32
  }
  func.func @transform_2(%arg0: i32) -> (i32, i32) {
    %c0_i32 = arith.constant 0 : i32
    %c0_i32_0 = arith.constant 0 : i32
    %c0_i32_1 = arith.constant 0 : i32
    return %c0_i32, %c0_i32_0 : i32, i32
  }
  func.func @transform_3(%arg0: i32) -> (i32, i32) {
    %c0_i32 = arith.constant 0 : i32
    %c0_i32_0 = arith.constant 0 : i32
    %c0_i32_1 = arith.constant 0 : i32
    return %c0_i32, %c0_i32_0 : i32, i32
  }
  func.func @transform_4(%arg0: i32) -> (i32, i32) {
    %c0_i32 = arith.constant 0 : i32
    %c0_i32_0 = arith.constant 0 : i32
    %c0_i32_1 = arith.constant 0 : i32
    return %c0_i32, %c0_i32_0 : i32, i32
  }
  func.func @transform_5(%arg0: i32) -> (i32, i32) {
    %c0_i32 = arith.constant 0 : i32
    %c0_i32_0 = arith.constant 0 : i32
    %c0_i32_1 = arith.constant 0 : i32
    return %c0_i32, %c0_i32_0 : i32, i32
  }
  func.func @transform_6(%arg0: i32) -> (i32, i32) {
    %c0_i32 = arith.constant 0 : i32
    %c0_i32_0 = arith.constant 0 : i32
    %c0_i32_1 = arith.constant 0 : i32
    return %c0_i32, %c0_i32_0 : i32, i32
  }
  func.func @transform_7(%arg0: i32) -> (i32, i32) {
    %c0_i32 = arith.constant 0 : i32
    %c0_i32_0 = arith.constant 0 : i32
    %c0_i32_1 = arith.constant 0 : i32
    return %c0_i32, %c0_i32_0 : i32, i32
  }
  func.func @transform_8(%arg0: i32) -> (i32, i32) {
    %c0_i32 = arith.constant 0 : i32
    %c0_i32_0 = arith.constant 0 : i32
    %c0_i32_1 = arith.constant 0 : i32
    return %c0_i32, %c0_i32_0 : i32, i32
  }
  func.func @transform_9(%arg0: i32) -> (i32, i32) {
    %c0_i32 = arith.constant 0 : i32
    %c0_i32_0 = arith.constant 0 : i32
    %c0_i32_1 = arith.constant 0 : i32
    return %c0_i32, %c0_i32_0 : i32, i32
  }
  func.func @transform_10(%arg0: i32) -> (i32, i32) {
    %c0_i32 = arith.constant 0 : i32
    %c0_i32_0 = arith.constant 0 : i32
    %c0_i32_1 = arith.constant 0 : i32
    return %c0_i32, %c0_i32_0 : i32, i32
  }
  func.func @transform_11(%arg0: i32) -> (i32, i32) {
    %c0_i32 = arith.constant 0 : i32
    %c0_i32_0 = arith.constant 0 : i32
    %c0_i32_1 = arith.constant 0 : i32
    return %c0_i32, %c0_i32_0 : i32, i32
  }
  func.func @transform_12(%arg0: i32) -> (i32, i32) {
    %c0_i32 = arith.constant 0 : i32
    %c0_i32_0 = arith.constant 0 : i32
    %c0_i32_1 = arith.constant 0 : i32
    return %c0_i32, %c0_i32_0 : i32, i32
  }
  func.func @transform_13(%arg0: i32) -> (i32, i32) {
    %c0_i32 = arith.constant 0 : i32
    %c0_i32_0 = arith.constant 0 : i32
    %c0_i32_1 = arith.constant 0 : i32
    return %c0_i32, %c0_i32_0 : i32, i32
  }
  func.func @transform_14(%arg0: i32) -> (i32, i32, i32) {
    %c0_i32 = arith.constant 0 : i32
    %c0_i32_0 = arith.constant 0 : i32
    %c0_i32_1 = arith.constant 0 : i32
    return %arg0, %c0_i32, %c0_i32_0 : i32, i32, i32
  }
}

</mosaic_0001>

<bundles_post_ra>
// kernel: tpu_custom_call.1
= control target key start
LH: loop header
LB: loop body
LE: loop exit
PB: predicated region body
PF: predicated region fallthrough
CT: control target
= control target key end

     0   :  { %6 = vsyncpa [#allocation3], 0  ;;  %s142_s0 = inlined_call_operand.hbm [shape: f32[8,384], index: 0, kind: input, shape index: {}]   ;;  %s143_s1 = inlined_call_operand.hbm [shape: f32[8,384], index: 1, kind: output, shape index: {}]  }
   0x1   :  { %7 = vsyncpa [#allocation4], 0  ;;  %s105_s6 = smov [#allocation2]   ;;  %s57_s10 = scalar_lea.hbm %s142_s0, 384 }
   0x2   :  { %s14_s7 = sshll.u32 %s105_s6, 4  ;;  %p58_p0 = scmp.ne.s32.totalorder %s142_s0, %s57_s10  ;;  %s15_s7 = int_to_ptr.vmem [resolvable:$true] %s14_s7 }
   0x3   :  { %p61_p1 = scmp.lt.u32.totalorder %s57_s10, %s142_s0 }
   0x5   :  { %p63_p2 = pnand %p61_p1, %p58_p0 }
   0x7   :  { %66 = shalt.err (!%p63_p2)
}
   0x8   :  { %s67_s15 = scalar_lea.vmem %s15_s7, 384  ;;  %p72_p4 = scmp.lt.s32.totalorder %s15_s7, %s15_s7 }
   0x9   :  { %p68_p3 = scmp.ne.s32.totalorder %s15_s7, %s67_s15  ;;  %p73_p5 = scmp.lt.s32.totalorder %s67_s15, %s67_s15 }
   0xb   :  { %p74_p6 = por %p73_p5, %p72_p4 }
   0xd   :  { %p75_p7 = pnand %p74_p6, %p68_p3 }
   0xf   :  { %78 = shalt.err (!%p75_p7)
}
  0x10   :  { %17 = dma.hbm_to_vmem [thread:$0]  %s142_s0, 384, %s15_s7, [#allocation3]  }
  0x11   :  { %101 = dma.done.wait [#allocation3], 384  }
  0x12   :  { %102 = vsyncadd [#allocation3], 4294966912  ;;  %v23_v0 = vld [vmem:[#allocation2 + $0x10] sm:$0xff]  ;;  %v21_v1 = vld [vmem:[#allocation2] sm:$0xff]  ;;  %s106_s18 = smov 109   ;;  %v30_v3 = vlaneseq  ;;  %s107_s19 = smov [#allocation5]  }
  0x13   :  { %28 = vrot.lane.b32.xlu1 %v23_v0, %s106_s18  ;;  %24 = vrot.lane.b32.xlu0 %v21_v1, %s106_s18  ;;  %v22_v2 = vld [vmem:[#allocation2 + $0x8] sm:$0xff]  ;;  %s45_s20 = sshll.u32 %s107_s19, 4  ;;  %s46_s20 = int_to_ptr.vmem [resolvable:$true] %s45_s20 }
  0x14   :  { %v31_v4 = vand.u32 127, %v30_v3  ;;  %s79_s0 = scalar_lea.vmem %s46_s20, 384  ;;  %p84_p9 = scmp.lt.s32.totalorder %s46_s20, %s46_s20 }
  0x15   :  { %p80_p8 = scmp.ne.s32.totalorder %s46_s20, %s79_s0  ;;  %p85_p10 = scmp.lt.s32.totalorder %s79_s0, %s79_s0 }
  0x16   :  { %vm32_vm0 = vcmp.lt.s32.totalorder %v31_v4, 109 }
  0x17   :  { %26 = vrot.lane.b32.xlu0 %v22_v2, %s106_s18  ;;  %p86_p11 = por %p85_p10, %p84_p9 }
  0x19   :  { %p87_p12 = pnand %p86_p11, %p80_p8 }
  0x85   :  { %v29_v5 = vpop.permute.xlu1 %28  ;;  %v25_v6 = vpop.permute.xlu0 %24 }
  0x86   :  { %v35_v7 = vsel %vm32_vm0, %v29_v5, %v25_v6 }
  0x87   :  { %38 = vst [vmem:[#allocation5 + $0x10] sm:$0xff] %v35_v7 }
  0x89   :  { %v27_v8 = vpop.permute.xlu0 %26 }
  0x8a   :  { %v33_v9 = vsel %vm32_vm0, %v27_v8, %v29_v5  ;;  %v34_v10 = vsel %vm32_vm0, %v25_v6, %v27_v8 }
  0x8b   :  { %36 = vst [vmem:[#allocation5] sm:$0xff] %v34_v10  ;;  %37 = vst [vmem:[#allocation5 + $0x8] sm:$0xff] %v33_v9 }
  0x8c   :  { %90 = shalt.err (!%p87_p12)
}
  0x8d   :  { %s91_s23 = scalar_lea.hbm %s143_s1, 384 }
  0x8e   :  { %p92_p13 = scmp.ne.s32.totalorder %s143_s1, %s91_s23  ;;  %p95_p0 = scmp.lt.u32.totalorder %s91_s23, %s143_s1 }
  0x90   :  { %p97_p1 = pnand %p95_p0, %p92_p13 }
  0x92   :  { %100 = shalt.err (!%p97_p1)
}
  0x93   :  { %48 = dma.vmem_to_hbm [thread:$0]  %s46_s20, 384, %s143_s1, [#allocation4]  }
  0x94   :  { %103 = dma.done.wait [#allocation4], 384  }
  0x95   :  { %104 = vsyncadd [#allocation4], 4294966912 }
  0x96   :  { %52 = vsyncpa [#allocation3], 1 }
  0x97   :  { %53 = vsyncpa [#allocation4], 1 }

// kernel: _block_forward_impl.1
= control target key start
LH: loop header
LB: loop body
LE: loop exit
PB: predicated region body
PF: predicated region fallthrough
CT: control target
= control target key end

     0   :  { %s4431_s29 = smov 0   ;;  %s5677_s0 = inlined_call_operand.vmem [shape: f32[8,384], index: 0, kind: input, shape index: {}]   ;;  %s5678_s1 = inlined_call_operand.vmem [shape: f32[2,24,384], index: 1, kind: input, shape index: {}]   ;;  %s5679_s2 = inlined_call_operand.vmem [shape: f32[24,216], index: 2, kind: input, shape index: {}]   ;;  %s5680_s3 = inlined_call_operand.vmem [shape: f32[24,1], index: 3, kind: input, shape index: {}]   ;;  %s5681_s4 = inlined_call_operand.vmem [shape: f32[24,216], index: 4, kind: input, shape index: {}]   ;;  %s5682_s5 = inlined_call_operand.vmem [shape: f32[24,1], index: 5, kind: input, shape index: {}]   ;;  %s5683_s6 = inlined_call_operand.vmem [shape: f32[24,72], index: 6, kind: input, shape index: {}]   ;;  %s5684_s7 = inlined_call_operand.vmem [shape: f32[24,1], index: 7, kind: input, shape index: {}]   ;;  %s5685_s8 = inlined_call_operand.vmem [shape: f32[8,24], index: 8, kind: input, shape index: {}]   ;;  %s5686_s9 = inlined_call_operand.vmem [shape: f32[8,1], index: 9, kind: input, shape index: {}]   ;;  %s5687_s10 = inlined_call_operand.vmem [shape: f32[16,16], index: 10, kind: input, shape index: {}]   ;;  %s5688_s11 = inlined_call_operand.vmem [shape: f32[16,1], index: 11, kind: input, shape index: {}]   ;;  %s5689_s12 = inlined_call_operand.vmem [shape: f32[16,16], index: 12, kind: input, shape index: {}]   ;;  %s5690_s13 = inlined_call_operand.vmem [shape: f32[16,1], index: 13, kind: input, shape index: {}]   ;;  %s5691_s14 = inlined_call_operand.vmem [shape: f32[2,24,384], index: 14, kind: output, shape index: {}]  }
   0x1 LB: > { %s3451_s30 = sadd.s32 4294967295, %s4337_s29   ;;  %p3455_p0 = scmp.ge.s32.totalorder %s4337_s29, 1  ;;  %s4337_s29 = sphi %s4431_s29, %s24_s29  }
   0x2   : > { %p412_p1 = scmp.lt.s32.totalorder %s4337_s29, 3 }
   0x4   : > { %p413_p2 = pnand %p3455_p0, %p412_p1 }
   0x5   : > { %p458_p3 = scmp.lt.s32.totalorder (!%p413_p2), %s3451_s30, 1  ;;  %v4339_v0 = vmov (!%p413_p2), 0.0|0.0   ;;  %s4340_s19 = smov (!%p413_p2), 19   ;;  %v975_v27 = vld [vmem:[%s5679_s2 + $0x8] sm:$0xff] (!%p413_p2)  ;;  %vm998_vm0 = vcmask (!%p413_p2), 719872   ;;  %v4348_v28 = vmov (!%p413_p2), 0  }
   0x6   : > { %416 = sbr.rel (%p413_p2) target bundleno = 3780 (0xec4), region = 76  ;;  %3632 = vmatprep.subr.bf16.mxu1 (!%p413_p2), %v4339_v0  ;;  %s4341_s20 = smov (!%p413_p2), 18   ;;  %3461 = vmatprep.mubr.msk.f32.mxu1 (!%p413_p2), %vm998_vm0, %v975_v27  ;;  %v980_v29 = vld [vmem:[%s5680_s3] sm:$0xff] (!%p413_p2)  ;;  %v982_v30 = vld [vmem:[%s5680_s3 + $0x10] sm:$0xff] (!%p413_p2)  ;;  %v981_v31 = vld [vmem:[%s5680_s3 + $0x8] sm:$0xff] (!%p413_p2)  ;;  %vm513_vm1 = vcmask (!%p413_p2), 154624  }
   0x7   : > { %s4342_s21 = smov (!%p413_p2), 17   ;;  %s4343_s22 = smov (!%p413_p2), 1   ;;  %3458 = vmatprep.mubr.msk.f32.mxu0 (!%p413_p2), %vm998_vm0, %v975_v27  ;;  %4006 = vset.pattern.permute.xlu1 (!%p413_p2), %v4348_v28  ;;  %vm5697_vm2 = vcmask (!%p413_p2), 146432   ;;  %vm611_vm3 = vcmask (!%p413_p2), 138240   ;;  %vm5710_vm4 = vcmask (!%p413_p2), 7168   ;;  %vm715_vm5 = vcmask (!%p413_p2), 1039360  }
   0x8   : > { %s4344_s23 = smov (!%p413_p2), 127   ;;  %s4345_s24 = smov (!%p413_p2), 111   ;;  %4007 = vset.pattern.permute.xlu0 (!%p413_p2), %v4348_v28  ;;  %vm764_vm6 = vcmask (!%p413_p2), 908288   ;;  %vm5709_vm7 = vcmask (!%p413_p2), 900096   ;;  %vm862_vm8 = vcmask (!%p413_p2), 891904  }
   0x9   : > { %s5695_s25 = smov (!%p413_p2), 110   ;;  %s5693_s26 = smov (!%p413_p2), 109  }
   0xa   : > { %s5704_s16 = smov (!%p413_p2), 126  }
   0xd   : > { %s5790_s30 = smov (!%p458_p3, %s3451_s30), 1 }
   0xe   : > { %s5692_s15 = smul.u32 72, %s5790_s30 }
  0x10   : > { %s462_s18 = scalar_lea.vmem %s5678_s1, %s5692_s15 }
  0x11   : > { %v4448_v1 = vld [vmem:[%s462_s18 + $0x10] sm:$0xff]  ;;  %v4450_v2 = vld [vmem:[%s462_s18 + $0x28] sm:$0xff]  ;;  %v4452_v3 = vld [vmem:[%s462_s18] sm:$0xff] }
  0x12   : > { %v3861_v4 = vpack.i.bf16 %v4450_v2, %v4448_v1  ;;  %v4456_v5 = vld [vmem:[%s462_s18 + $0x8] sm:$0xff]  ;;  %v4458_v6 = vld [vmem:[%s462_s18 + $0x30] sm:$0xff]  ;;  %v4460_v7 = vld [vmem:[%s462_s18 + $0x38] sm:$0xff]  ;;  %v3651_v21 = vpack.c.bf16 %v4450_v2, %v4448_v1 }
  0x13   : > { %v3851_v8 = vpack.i.bf16 %v4456_v5, %v4452_v3  ;;  %v4464_v9 = vld [vmem:[%s462_s18 + $0x18] sm:$0xff]  ;;  %v4466_v10 = vld [vmem:[%s462_s18 + $0x20] sm:$0xff]  ;;  %v3866_v11 = vpack.i.bf16 %v4460_v7, %v4458_v6  ;;  %v3991_v14 = vpack.i.bf16 %v4448_v1, %v4456_v5  ;;  %v3886_v19 = vpack.i.bf16 %v4450_v2, %v4460_v7 }
  0x14   : > { %3862 = vrot.lane.b32.xlu1 %v3861_v4, %s4340_s19  ;;  %v3856_v12 = vpack.i.bf16 %v4466_v10, %v4464_v9  ;;  %v4476_v13 = vld [vmem:[%s462_s18 + $0x40] sm:$0xff]  ;;  %v4001_v15 = vpack.i.bf16 %v4464_v9, %v4452_v3  ;;  %v3996_v16 = vpack.i.bf16 %v4450_v2, %v4466_v10  ;;  %v3881_v17 = vpack.i.bf16 %v4458_v6, %v4466_v10 }
  0x15   : > { %3852 = vrot.lane.b32.xlu0 %v3851_v8, %s4340_s19  ;;  %v3876_v18 = vpack.i.bf16 %v4464_v9, %v4448_v1  ;;  %v3604_v20 = vpack.c.bf16 %v4466_v10, %v4456_v5  ;;  %v3606_v22 = vpack.c.bf16 %v4464_v9, %v4452_v3  ;;  %v3936_v23 = vpack.i.bf16 %v4466_v10, %v4452_v3 }
  0x16   : > { %v3946_v24 = vpack.i.bf16 %v4464_v9, %v4476_v13  ;;  %v3941_v25 = vpack.i.bf16 %v4460_v7, %v4450_v2  ;;  %v3966_v26 = vpack.i.bf16 %v4476_v13, %v4460_v7 }
  0x18   : > { %3867 = vrot.lane.b32.xlu1 %v3866_v11, %s4340_s19 }
  0x19   : > { %3857 = vrot.lane.b32.xlu0 %v3856_v12, %s4340_s19 }
  0x1c   : > { %490 = vrot.lane.b32.xlu1 %v4476_v13, %s4340_s19 }
  0x1d   : > { %3872 = vrot.lane.b32.xlu0 %v3851_v8, %s4341_s20 }
  0x20   : > { %3882 = vrot.lane.b32.xlu1 %v3881_v17, %s4341_s20 }
  0x21   : > { %3877 = vrot.lane.b32.xlu0 %v3876_v18, %s4341_s20 }
  0x24   : > { %545 = vrot.lane.b32.xlu1 %v4476_v13, %s4341_s20 }
  0x25   : > { %3887 = vrot.lane.b32.xlu0 %v3886_v19, %s4341_s20 }
  0x28   : > { %3897 = vrot.lane.b32.xlu1 %v3856_v12, %s4342_s21 }
  0x29   : > { %3892 = vrot.lane.b32.xlu0 %v3851_v8, %s4342_s21 }
  0x2c   : > { %3907 = vrot.lane.b32.xlu1 %v3866_v11, %s4342_s21 }
  0x2d   : > { %3902 = vrot.lane.b32.xlu0 %v3861_v4, %s4342_s21 }
  0x30   : > { %594 = vrot.lane.b32.xlu1 %v4476_v13, %s4342_s21 }
  0x31   : > { %3912 = vrot.lane.b32.xlu0 %v3851_v8, %s4343_s22 }
  0x34   : > { %3922 = vrot.lane.b32.xlu1 %v3881_v17, %s4343_s22 }
  0x35   : > { %3917 = vrot.lane.b32.xlu0 %v3876_v18, %s4343_s22 }
  0x38   : > { %643 = vrot.lane.b32.xlu1 %v4476_v13, %s4343_s22 }
  0x39   : > { %3927 = vrot.lane.b32.xlu0 %v3886_v19, %s4343_s22 }
  0x3c   : > { %3937 = vrot.lane.b32.xlu1 %v3936_v23, %s4344_s23 }
  0x3d   : > { %3932 = vrot.lane.b32.xlu0 %v3991_v14, %s4344_s23 }
  0x40   : > { %3947 = vrot.lane.b32.xlu1 %v3946_v24, %s4344_s23 }
  0x41   : > { %3942 = vrot.lane.b32.xlu0 %v3941_v25, %s4344_s23 }
  0x44   : > { %3952 = vrot.lane.b32.xlu1 %v3991_v14, %s4345_s24 }
  0x45   : > { %709 = vrot.lane.b32.xlu0 %v4458_v6, %s4344_s23 }
  0x48   : > { %3962 = vrot.lane.b32.xlu1 %v4001_v15, %s4345_s24 }
  0x49   : > { %3957 = vrot.lane.b32.xlu0 %v3996_v16, %s4345_s24 }
  0x4c   : > { %3972 = vrot.lane.b32.xlu1 %v3991_v14, %s5695_s25 }
  0x4d   : > { %3967 = vrot.lane.b32.xlu0 %v3966_v26, %s4345_s24 }
  0x50   : > { %3977 = vrot.lane.b32.xlu1 %v3936_v23, %s5695_s25 }
  0x51   : > { %758 = vrot.lane.b32.xlu0 %v4458_v6, %s4345_s24 }
  0x54   : > { %3987 = vrot.lane.b32.xlu1 %v3946_v24, %s5695_s25 }
  0x55   : > { %3982 = vrot.lane.b32.xlu0 %v3941_v25, %s5695_s25 }
  0x58   : > { %3992 = vrot.lane.b32.xlu1 %v3991_v14, %s5693_s26 }
  0x59   : > { %807 = vrot.lane.b32.xlu0 %v4458_v6, %s5695_s25  ;;  %s5698_s25 = smov 92  }
  0x5c   : > { %4002 = vrot.lane.b32.xlu1 %v4001_v15, %s5693_s26 }
  0x5d   : > { %3997 = vrot.lane.b32.xlu0 %v3996_v16, %s5693_s26 }
  0x60   : > { %860 = vrot.lane.b32.xlu1 %v4476_v13, %s5693_s26 }
  0x61   : > { %858 = vrot.lane.b32.xlu0 %v4460_v7, %s5693_s26 }
  0x64   : > { %985 = vperm.xlu1 %4006, %v980_v29  }
  0x65   : > { %856 = vrot.lane.b32.xlu0 %v4458_v6, %s5693_s26  ;;  %s5702_s26 = smov 36  }
  0x68   : > { %995 = vperm.xlu1 %4006, %v982_v30  }
  0x69   : > { %990 = vperm.xlu0 %4007, %v981_v31  }
  0x86   : > { %v3863_v32 = vpop.permute.xlu1 %3862 }
  0x87   : > { %v3853_v33 = vpop.permute.xlu0 %3852  ;;  %v3864_v34 = vunpack.i.l.bf16 %v3863_v32  ;;  %v3865_v39 = vunpack.i.h.bf16 %v3863_v32 }
  0x88   : > { %v3855_v35 = vunpack.i.h.bf16 %v3853_v33  ;;  %v3854_v36 = vunpack.i.l.bf16 %v3853_v33 }
  0x8a   : > { %v3868_v37 = vpop.permute.xlu1 %3867  ;;  %v514_v43 = vsel %vm513_vm1, %v3854_v36, %v3855_v35  ;;  %v515_v44 = vsel %vm513_vm1, %v3855_v35, %v3864_v34  ;;  %v529_v53 = vsel %vm513_vm1, %v3864_v34, %v3854_v36 }
  0x8b   : > { %v3858_v38 = vpop.permute.xlu0 %3857  ;;  %v3870_v42 = vunpack.i.h.bf16 %v3868_v37  ;;  %v3869_v45 = vunpack.i.l.bf16 %v3868_v37 }
  0x8c   : > { %v3860_v40 = vunpack.i.h.bf16 %v3858_v38  ;;  %v3859_v41 = vunpack.i.l.bf16 %v3858_v38 }
  0x8d   : > { %v518_v58 = vsel %vm513_vm1, %v3869_v45, %v3870_v42 }
  0x8e   : > { %v491_v46 = vpop.permute.xlu1 %490  ;;  %v516_v47 = vsel %vm513_vm1, %v3859_v41, %v3860_v40  ;;  %v517_v48 = vsel %vm513_vm1, %v3860_v40, %v3865_v39  ;;  %v530_v49 = vsel %vm513_vm1, %v3865_v39, %v3859_v41 }
  0x8f   : > { %v3873_v50 = vpop.permute.xlu0 %3872  ;;  %v3580_v51 = vpack.c.bf16 %v516_v47, %v514_v43  ;;  %v3633_v52 = vpack.c.bf16 %v517_v48, %v515_v44  ;;  %v3582_v56 = vpack.c.bf16 %v530_v49, %v529_v53  ;;  %v519_v11 = vsel %vm513_vm1, %v3870_v42, %v491_v46 }
  0x90   : > { %v3875_v54 = vunpack.i.h.bf16 %v3873_v50  ;;  %v3874_v55 = vunpack.i.l.bf16 %v3873_v50  ;;  %v531_v12 = vsel %vm513_vm1, %v491_v46, %v3869_v45 }
  0x91   : > { %3581 = vmatprep.subr.bf16.mxu0 %v3580_v51  ;;  %3634 = vmatpush1.bf16.msra.mxu1 %v3633_v52 }
  0x92   : > { %3583 = vmatpush1.bf16.msra.mxu0 %v3582_v56  ;;  %v3883_v57 = vpop.permute.xlu1 %3882  ;;  %v563_v59 = vsel %vm5697_vm2, %v3874_v55, %v3875_v54  ;;  %3635 = vmatprep.subr.bf16.mxu1 %v4339_v0 }
  0x93   : > { %v3878_v60 = vpop.permute.xlu0 %3877  ;;  %v3584_v61 = vpack.c.bf16 %v563_v59, %v518_v58  ;;  %v3885_v63 = vunpack.i.h.bf16 %v3883_v57  ;;  %v3884_v4 = vunpack.i.l.bf16 %v3883_v57 }
  0x94   : > { %v3879_v62 = vunpack.i.l.bf16 %v3878_v60  ;;  %v3880_v8 = vunpack.i.h.bf16 %v3878_v60 }
  0x95   : > { %3585 = vmatprep.subr.bf16.mxu0 %v3584_v61 }
  0x96   : > { %v546_v14 = vpop.permute.xlu1 %545  ;;  %v578_v15 = vsel %vm5697_vm2, %v3879_v62, %v3874_v55  ;;  %v564_v16 = vsel %vm5697_vm2, %v3875_v54, %v3879_v62  ;;  %v565_v26 = vsel %vm5697_vm2, %v3880_v8, %v3884_v4 }
  0x97   : > { %v3888_v17 = vpop.permute.xlu0 %3887  ;;  %v3586_v18 = vpack.c.bf16 %v578_v15, %v531_v12  ;;  %v3636_v19 = vpack.c.bf16 %v564_v16, %v519_v11  ;;  %v580_v25 = vsel %vm5697_vm2, %v546_v14, %v3885_v63 }
  0x98   : > { %v3890_v23 = vunpack.i.h.bf16 %v3888_v17  ;;  %v3889_v24 = vunpack.i.l.bf16 %v3888_v17 }
  0x99   : > { %3587 = vmatpush1.bf16.msra.mxu0 %v3586_v18  ;;  %3637 = vmatpush1.bf16.msra.mxu1 %v3636_v19 }
  0x9a   : > { %v3898_v27 = vpop.permute.xlu1 %3897  ;;  %3638 = vmatprep.subr.bf16.mxu1 %v4339_v0  ;;  %v567_v29 = vsel %vm5697_vm2, %v3885_v63, %v3889_v24  ;;  %v566_v30 = vsel %vm5697_vm2, %v3884_v4, %v3890_v23  ;;  %v568_v31 = vsel %vm5697_vm2, %v3889_v24, %v546_v14  ;;  %v579_v32 = vsel %vm5697_vm2, %v3890_v23, %v3880_v8 }
  0x9b   : > { %v3900_v33 = vunpack.i.h.bf16 %v3898_v27  ;;  %v3899_v34 = vunpack.i.l.bf16 %v3898_v27  ;;  %v3893_v35 = vpop.permute.xlu0 %3892  ;;  %v3588_v36 = vpack.c.bf16 %v567_v29, %v565_v26  ;;  %v3639_v37 = vpack.c.bf16 %v568_v31, %v566_v30 }
  0x9c   : > { %v3895_v38 = vunpack.i.h.bf16 %v3893_v35  ;;  %v3894_v39 = vunpack.i.l.bf16 %v3893_v35  ;;  %v3590_v40 = vpack.c.bf16 %v580_v25, %v579_v32 }
  0x9d   : > { %3589 = vmatprep.subr.bf16.mxu0 %v3588_v36  ;;  %3640 = vmatpush1.bf16.msra.mxu1 %v3639_v37  ;;  %v614_v41 = vsel %vm611_vm3, %v3899_v34, %v3900_v33 }
  0x9e   : > { %3591 = vmatpush1.bf16.msra.mxu0 %v3590_v40  ;;  %v3908_v42 = vpop.permute.xlu1 %3907  ;;  %v612_v43 = vsel %vm611_vm3, %v3894_v39, %v3895_v38  ;;  %3641 = vmatprep.subr.bf16.mxu1 %v4339_v0 }
  0x9f   : > { %v3903_v44 = vpop.permute.xlu0 %3902  ;;  %v3592_v45 = vpack.c.bf16 %v614_v41, %v612_v43  ;;  %v3910_v48 = vunpack.i.h.bf16 %v3908_v42  ;;  %v3909_v49 = vunpack.i.l.bf16 %v3908_v42 }
  0xa0   : > { %v3905_v46 = vunpack.i.h.bf16 %v3903_v44  ;;  %v3904_v47 = vunpack.i.l.bf16 %v3903_v44 }
  0xa1   : > { %3593 = vmatprep.subr.bf16.mxu0 %v3592_v45  ;;  %v616_v61 = vsel %vm611_vm3, %v3909_v49, %v3910_v48 }
  0xa2   : > { %v595_v50 = vpop.permute.xlu1 %594  ;;  %v627_v51 = vsel %vm611_vm3, %v3904_v47, %v3894_v39  ;;  %v628_v52 = vsel %vm611_vm3, %v3905_v46, %v3899_v34  ;;  %v613_v53 = vsel %vm611_vm3, %v3895_v38, %v3904_v47  ;;  %v615_v54 = vsel %vm611_vm3, %v3900_v33, %v3905_v46 }
  0xa3   : > { %v3913_v55 = vpop.permute.xlu0 %3912  ;;  %v3594_v56 = vpack.c.bf16 %v628_v52, %v627_v51  ;;  %v3642_v57 = vpack.c.bf16 %v615_v54, %v613_v53  ;;  %v617_v14 = vsel %vm611_vm3, %v3910_v48, %v595_v50  ;;  %v629_v15 = vsel %vm611_vm3, %v595_v50, %v3909_v49 }
  0xa4   : > { %v3915_v58 = vunpack.i.h.bf16 %v3913_v55  ;;  %v3914_v59 = vunpack.i.l.bf16 %v3913_v55 }
  0xa5   : > { %3595 = vmatpush1.bf16.msra.mxu0 %v3594_v56  ;;  %3643 = vmatpush1.bf16.msra.mxu1 %v3642_v57 }
  0xa6   : > { %v3923_v60 = vpop.permute.xlu1 %3922  ;;  %v661_v62 = vsel %vm5710_vm4, %v3914_v59, %v3915_v58  ;;  %3644 = vmatprep.subr.bf16.mxu1 %v4339_v0 }
  0xa7   : > { %v3918_v63 = vpop.permute.xlu0 %3917  ;;  %v3596_v4 = vpack.c.bf16 %v661_v62, %v616_v61  ;;  %v3924_v11 = vunpack.i.l.bf16 %v3923_v60  ;;  %v3925_v19 = vunpack.i.h.bf16 %v3923_v60 }
  0xa8   : > { %v3919_v8 = vunpack.i.l.bf16 %v3918_v63  ;;  %v3920_v12 = vunpack.i.h.bf16 %v3918_v63 }
  0xa9   : > { %3597 = vmatprep.subr.bf16.mxu0 %v3596_v4 }
  0xaa   : > { %v644_v16 = vpop.permute.xlu1 %643  ;;  %v676_v17 = vsel %vm5710_vm4, %v3919_v8, %v3914_v59  ;;  %v662_v18 = vsel %vm5710_vm4, %v3915_v58, %v3919_v8  ;;  %v663_v29 = vsel %vm5710_vm4, %v3920_v12, %v3924_v11 }
  0xab   : > { %v3928_v23 = vpop.permute.xlu0 %3927  ;;  %v3598_v24 = vpack.c.bf16 %v676_v17, %v629_v15  ;;  %v3645_v25 = vpack.c.bf16 %v662_v18, %v617_v14  ;;  %v678_v35 = vsel %vm5710_vm4, %v644_v16, %v3925_v19 }
  0xac   : > { %v3930_v26 = vunpack.i.h.bf16 %v3928_v23  ;;  %v3929_v27 = vunpack.i.l.bf16 %v3928_v23 }
  0xad   : > { %3599 = vmatpush1.bf16.msra.mxu0 %v3598_v24  ;;  %3646 = vmatpush1.bf16.msra.mxu1 %v3645_v25 }
  0xae   : > { %v3938_v30 = vpop.permute.xlu1 %3937  ;;  %3647 = vmatprep.subr.bf16.mxu1 %v4339_v0  ;;  %v665_v31 = vsel %vm5710_vm4, %v3925_v19, %v3929_v27  ;;  %v664_v32 = vsel %vm5710_vm4, %v3924_v11, %v3930_v26  ;;  %v666_v33 = vsel %vm5710_vm4, %v3929_v27, %v644_v16  ;;  %v677_v34 = vsel %vm5710_vm4, %v3930_v26, %v3920_v12 }
  0xaf   : > { %v3933_v36 = vpop.permute.xlu0 %3932  ;;  %v3600_v37 = vpack.c.bf16 %v665_v31, %v663_v29  ;;  %v3648_v38 = vpack.c.bf16 %v666_v33, %v664_v32  ;;  %v3939_v39 = vunpack.i.l.bf16 %v3938_v30  ;;  %v3602_v42 = vpack.c.bf16 %v678_v35, %v677_v34 }
  0xb0   : > { %v3935_v40 = vunpack.i.h.bf16 %v3933_v36  ;;  %v3934_v41 = vunpack.i.l.bf16 %v3933_v36  ;;  %v3940_v47 = vunpack.i.h.bf16 %v3938_v30 }
  0xb1   : > { %3601 = vmatprep.subr.bf16.mxu0 %v3600_v37  ;;  %3649 = vmatpush1.bf16.msra.mxu1 %v3648_v38 }
  0xb2   : > { %3603 = vmatpush1.bf16.msra.mxu0 %v3602_v42  ;;  %v3948_v43 = vpop.permute.xlu1 %3947  ;;  %3650 = vmatprep.subr.bf16.mxu1 %v4339_v0  ;;  %v717_v44 = vsel %vm715_vm5, %v3934_v41, %v3935_v40  ;;  %v734_v50 = vsel %vm715_vm5, %v3935_v40, %v3939_v39  ;;  %v716_v52 = vsel %vm715_vm5, %v3939_v39, %v3934_v41 }
  0xb3   : > { %v3949_v45 = vunpack.i.l.bf16 %v3948_v43  ;;  %v3943_v46 = vpop.permute.xlu0 %3942  ;;  %3605 = vmatprep.subr.bf16.mxu0 %v3604_v20  ;;  %v3608_v51 = vpack.c.bf16 %v717_v44, %v4460_v7  ;;  %v3950_v53 = vunpack.i.h.bf16 %v3948_v43  ;;  %v3654_v1 = vpack.c.bf16 %v734_v50, %v4476_v13 }
  0xb4   : > { %v3945_v48 = vunpack.i.h.bf16 %v3943_v46  ;;  %v3944_v49 = vunpack.i.l.bf16 %v3943_v46  ;;  %v3610_v7 = vpack.c.bf16 %v716_v52, %v4458_v6 }
  0xb5   : > { %3652 = vmatpush1.bf16.msra.mxu1 %v3651_v21  ;;  %v718_v6 = vsel %vm715_vm5, %v3950_v53, %v3940_v47 }
  0xb6   : > { %3607 = vmatpush1.bf16.msra.mxu0 %v3606_v22  ;;  %v3953_v5 = vpop.permute.xlu1 %3952  ;;  %3653 = vmatprep.subr.bf16.mxu1 %v4339_v0  ;;  %v719_v10 = vsel %vm715_vm5, %v3940_v47, %v3944_v49  ;;  %v721_v20 = vsel %vm715_vm5, %v3945_v48, %v3949_v45  ;;  %v735_v56 = vsel %vm715_vm5, %v3944_v49, %v3950_v53 }
  0xb7   : > { %v710_v54 = vpop.permute.xlu0 %709  ;;  %3609 = vmatprep.subr.bf16.mxu0 %v3608_v51  ;;  %v3955_v21 = vunpack.i.h.bf16 %v3953_v5  ;;  %v3954_v55 = vunpack.i.l.bf16 %v3953_v5  ;;  %v3612_v9 = vpack.c.bf16 %v721_v20, %v719_v10 }
  0xb8   : > { %v736_v2 = vsel %vm715_vm5, %v3949_v45, %v710_v54  ;;  %v720_v3 = vsel %vm715_vm5, %v710_v54, %v3945_v48 }
  0xb9   : > { %3655 = vmatpush1.bf16.msra.mxu1 %v3654_v1  ;;  %v3657_v59 = vpack.c.bf16 %v736_v2, %v735_v56  ;;  %v3614_v62 = vpack.c.bf16 %v720_v3, %v718_v6  ;;  %v766_v63 = vsel %vm764_vm6, %v3954_v55, %v3955_v21 }
  0xba   : > { %3611 = vmatpush1.bf16.msra.mxu0 %v3610_v7  ;;  %v3963_v22 = vpop.permute.xlu1 %3962  ;;  %3656 = vmatprep.subr.bf16.mxu1 %v4339_v0 }
  0xbb   : > { %v3965_v57 = vunpack.i.h.bf16 %v3963_v22  ;;  %v3964_v58 = vunpack.i.l.bf16 %v3963_v22  ;;  %v3958_v13 = vpop.permute.xlu0 %3957  ;;  %3613 = vmatprep.subr.bf16.mxu0 %v3612_v9 }
  0xbc   : > { %v3960_v60 = vunpack.i.h.bf16 %v3958_v13  ;;  %v3959_v61 = vunpack.i.l.bf16 %v3958_v13 }
  0xbd   : > { %3658 = vmatpush1.bf16.msra.mxu1 %v3657_v59  ;;  %v783_v4 = vsel %vm764_vm6, %v3955_v21, %v3964_v58  ;;  %v765_v8 = vsel %vm764_vm6, %v3964_v58, %v3954_v55 }
  0xbe   : > { %3615 = vmatpush1.bf16.msra.mxu0 %v3614_v62  ;;  %v3973_v11 = vpop.permute.xlu1 %3972  ;;  %3659 = vmatprep.subr.bf16.mxu1 %v4339_v0  ;;  %v768_v12 = vsel %vm764_vm6, %v3959_v61, %v3960_v60  ;;  %v784_v14 = vsel %vm764_vm6, %v3960_v60, %v3965_v57  ;;  %v767_v15 = vsel %vm764_vm6, %v3965_v57, %v3959_v61 }
  0xbf   : > { %v3975_v16 = vunpack.i.h.bf16 %v3973_v11  ;;  %v3974_v17 = vunpack.i.l.bf16 %v3973_v11  ;;  %v3968_v18 = vpop.permute.xlu0 %3967  ;;  %v3616_v19 = vpack.c.bf16 %v768_v12, %v766_v63  ;;  %v3660_v23 = vpack.c.bf16 %v784_v14, %v783_v4  ;;  %v974_v14 = vld [vmem:[%s5679_s2] sm:$0xff] }
  0xc0   : > { %v3970_v24 = vunpack.i.h.bf16 %v3968_v18  ;;  %v3969_v25 = vunpack.i.l.bf16 %v3968_v18  ;;  %v3618_v26 = vpack.c.bf16 %v767_v15, %v765_v8  ;;  %v4349_v11 = vmov 0.0   ;;  %v976_v18 = vld [vmem:[%s5679_s2 + $0x10] sm:$0xff] }
  0xc1   : > { %3617 = vmatprep.subr.bf16.mxu0 %v3616_v19  ;;  %3661 = vmatpush1.bf16.msra.mxu1 %v3660_v23  ;;  %v815_v27 = vsel %vm5709_vm7, %v3974_v17, %v3975_v16  ;;  %v979_v19 = vld [vmem:[%s5679_s2 + $0x28] sm:$0xff]  ;;  %v978_v23 = vld [vmem:[%s5679_s2 + $0x20] sm:$0xff] }
  0xc2   : > { %3619 = vmatpush1.bf16.msra.mxu0 %v3618_v26  ;;  %v3978_v29 = vpop.permute.xlu1 %3977  ;;  %v770_v30 = vsel %vm764_vm6, %v3969_v25, %v3970_v24  ;;  %3662 = vmatprep.subr.bf16.mxu1 %v4339_v0 }
  0xc3   : > { %v3979_v31 = vunpack.i.l.bf16 %v3978_v29  ;;  %v759_v32 = vpop.permute.xlu0 %758  ;;  %v3620_v33 = vpack.c.bf16 %v815_v27, %v770_v30  ;;  %v3980_v43 = vunpack.i.h.bf16 %v3978_v29  ;;  %v469_v27 = vld [vmem:[%s5677_s0 + $0x8] sm:$0xff]  ;;  %v470_v29 = vld [vmem:[%s5677_s0 + $0x10] sm:$0xff] }
  0xc4   : > { %v769_v34 = vsel %vm764_vm6, %v759_v32, %v3969_v25  ;;  %v785_v35 = vsel %vm764_vm6, %v3970_v24, %v759_v32  ;;  %v1183_v24 = vlaneseq  ;;  %v468_v25 = vld [vmem:[%s5677_s0] sm:$0xff]  ;;  %vm472_vm10 = vcmp.gt.f32.partialorder %v469_v27, 0.5 }
  0xc5   : > { %3621 = vmatprep.subr.bf16.mxu0 %v3620_v33  ;;  %v814_v36 = vsel %vm5709_vm7, %v3979_v31, %v3974_v17  ;;  %v832_v37 = vsel %vm5709_vm7, %v3975_v16, %v3979_v31  ;;  %v977_v17 = vld [vmem:[%s5679_s2 + $0x18] sm:$0xff]  ;;  %vm471_vm9 = vcmp.gt.f32.partialorder %v468_v25, 0.5  ;;  %vm473_vm11 = vcmp.gt.f32.partialorder %v470_v29, 0.5 }
  0xc6   : > { %v3988_v38 = vpop.permute.xlu1 %3987  ;;  %v3622_v39 = vpack.c.bf16 %v814_v36, %v769_v34  ;;  %v3663_v40 = vpack.c.bf16 %v832_v37, %v785_v35  ;;  %v4687_v26 = vshrl.u32 %v1183_v24, 7  ;;  %v4697_v31 = vsel %vm471_vm9, 1, %v4348_v28 }
  0xc7   : > { %v3989_v41 = vunpack.i.l.bf16 %v3988_v38  ;;  %v3983_v42 = vpop.permute.xlu0 %3982  ;;  %v3990_v44 = vunpack.i.h.bf16 %v3988_v38  ;;  %v4700_v32 = vsel %vm472_vm10, 1, %v4348_v28  ;;  %v4703_v33 = vsel %vm473_vm11, 1, %v4348_v28 }
  0xc8   : > { %v3985_v45 = vunpack.i.h.bf16 %v3983_v42  ;;  %v3984_v46 = vunpack.i.l.bf16 %v3983_v42  ;;  %3623 = vmatpush1.bf16.msra.mxu0 %v3622_v39  ;;  %3664 = vmatpush1.bf16.msra.mxu1 %v3663_v40  ;;  %v1185_v30 = vsub.s32 0, %v4687_v26  ;;  %vm4350_vm9 = vmmov 1  }
  0xc9   : > { %3665 = vmatprep.subr.bf16.mxu1 %v4339_v0  ;;  %v816_v5 = vsel %vm5709_vm7, %v3990_v44, %v3980_v43 }
  0xca   : > { %v3993_v47 = vpop.permute.xlu1 %3992  ;;  %v817_v48 = vsel %vm5709_vm7, %v3980_v43, %v3984_v46  ;;  %v819_v49 = vsel %vm5709_vm7, %v3985_v45, %v3989_v41  ;;  %v833_v10 = vsel %vm5709_vm7, %v3984_v46, %v3990_v44  ;;  %v1186_v34 = vrot.slane %v4697_v31, %v1185_v30 }
  0xcb   : > { %v808_v50 = vpop.permute.xlu0 %807  ;;  %v3624_v51 = vpack.c.bf16 %v819_v49, %v817_v48  ;;  %v3995_v1 = vunpack.i.h.bf16 %v3993_v47  ;;  %v3994_v2 = vunpack.i.l.bf16 %v3993_v47  ;;  %v1190_v36 = vrot.slane %v4700_v32, %v1185_v30 }
  0xcc   : > { %v818_v52 = vsel %vm5709_vm7, %v808_v50, %v3985_v45  ;;  %v834_v53 = vsel %vm5709_vm7, %v3989_v41, %v808_v50  ;;  %v1194_v40 = vrot.slane %v4703_v33, %v1185_v30  ;;  %vm4708_vm12 = vcmp.eq.s32.totalorder %v1186_v34, 1 }
  0xcd   : > { %3625 = vmatprep.subr.bf16.mxu0 %v3624_v51  ;;  %v3626_v20 = vpack.c.bf16 %v818_v52, %v816_v5  ;;  %v3666_v54 = vpack.c.bf16 %v834_v53, %v833_v10  ;;  %v864_v13 = vsel %vm862_vm8, %v3994_v2, %v3995_v1  ;;  %vm4712_vm13 = vcmp.eq.s32.totalorder %v1190_v36, 1 }
  0xce   : > { %v4003_v7 = vpop.permute.xlu1 %4002  ;;  %vm4716_vm14 = vcmp.eq.s32.totalorder %v1194_v40, 1  ;;  %vm3696_vm15 = vmpackc.low %vm4712_vm13, %vm4712_vm13 }
  0xcf   : > { %v4005_v21 = vunpack.i.h.bf16 %v4003_v7  ;;  %v4004_v55 = vunpack.i.l.bf16 %v4003_v7  ;;  %v3998_v3 = vpop.permute.xlu0 %3997  ;;  %3627 = vmatpush1.bf16.msra.mxu0 %v3626_v20  ;;  %3667 = vmatpush1.bf16.msra.mxu1 %v3666_v54  ;;  %vm4919_vm10 = vmpackc.low %vm4350_vm9, %vm4712_vm13 }
  0xd0   : > { %v4000_v9 = vunpack.i.h.bf16 %v3998_v3  ;;  %v3999_v22 = vunpack.i.l.bf16 %v3998_v3  ;;  %3668 = vmatprep.subr.bf16.mxu1 %v4339_v0  ;;  %vm4944_vm11 = vmpackc.low %vm4350_vm9, %vm4716_vm14 }
  0xd1   : > { %v881_v56 = vsel %vm862_vm8, %v3995_v1, %v4004_v55  ;;  %v863_v57 = vsel %vm862_vm8, %v4004_v55, %v3994_v2 }
  0xd2   : > { %v861_v58 = vpop.permute.xlu1 %860  ;;  %v866_v59 = vsel %vm862_vm8, %v3999_v22, %v4000_v9  ;;  %v882_v6 = vsel %vm862_vm8, %v4000_v9, %v4005_v21  ;;  %v865_v60 = vsel %vm862_vm8, %v4005_v21, %v3999_v22 }
  0xd3   : > { %v859_v61 = vpop.permute.xlu0 %858  ;;  %v3628_v62 = vpack.c.bf16 %v866_v59, %v864_v13  ;;  %v3669_v63 = vpack.c.bf16 %v882_v6, %v881_v56  ;;  %v3630_v4 = vpack.c.bf16 %v865_v60, %v863_v57 }
  0xd4   : > { %v868_v8 = vsel %vm862_vm8, %v859_v61, %v861_v58 }
  0xd5   : > { %3629 = vmatprep.subr.bf16.mxu0 %v3628_v62  ;;  %3670 = vmatpush1.bf16.msra.mxu1 %v3669_v63 }
  0xd6   : > { %3631 = vmatpush1.bf16.msra.mxu0 %v3630_v4  ;;  %1143 = vmatprep.subr.mxu1 %v4349_v11 }
  0xd7   : > { %v857_v12 = vpop.permute.xlu0 %856  ;;  %1060 = vmatprep.subr.mxu0 %v868_v8 }
  0xd8   : > { %v883_v15 = vsel %vm862_vm8, %v861_v58, %v857_v12  ;;  %v867_v16 = vsel %vm862_vm8, %v857_v12, %v859_v61 }
  0xd9   : > { %1144 = vmatpush1.msra.mxu1 %v883_v15 }
  0xda   : > { %1061 = vmatpush1.msra.mxu0 %v867_v16  ;;  %1156 = vmatmul.mubr.f32.vlgmr.msra.gmra.mrb[0].mxu1 %v974_v14 }
  0xdb   : > { %1073 = vmatmul.mubr.f32.vlgmr.msra.gmra.mrb[0].mxu0 %v974_v14  ;;  %3462 = vmatprep.mubr.msk.f32.mxu1 %vm998_vm0, %v977_v17 }
  0xdc   : > { %3459 = vmatprep.mubr.msk.f32.mxu0 %vm998_vm0, %v977_v17  ;;  %3727 = vmatprep.subr.bf16.mxu1 %v4339_v0 }
  0xde   : > { %1161 = vmatmul.mubr.f32.gmra.mrb[2].mxu1 %v976_v18 }
  0xdf   : > { %1079 = vmatmul.mubr.f32.gmra.mrb[2].mxu0 %v976_v18  ;;  %3463 = vmatprep.mubr.msk.f32.mxu1 %vm998_vm0, %v979_v19 }
  0xe0   : > { %3460 = vmatprep.mubr.msk.f32.mxu0 %vm998_vm0, %v979_v19 }
  0xe2   : > { %1166 = vmatmul.mubr.f32.gmra.mrb[4].mxu1 %v978_v23 }
  0xe3   : > { %1085 = vmatmul.mubr.f32.gmra.mrb[4].mxu0 %v978_v23  ;;  %v986_v35 = vpop.permute.xlu1 %985 }
  0xe7   : > { %v996_v63 = vpop.permute.xlu1 %995 }
  0xe8   : > { %v991_v43 = vpop.permute.xlu0 %990 }
 0x1ad   : > { %v1157_v37 = vpop.f32.mrb[0].mxu1 }
 0x1ae   : > { %v1074_v38 = vpop.f32.mrb[0].mxu0  ;;  %v1159_v39 = vpop.f32.mrb[1].mxu1  ;;  %v1158_v28 = vadd.f32 %v1157_v37, %v986_v35 }
 0x1af   : > { %v1075_v41 = vadd.f32 %v1074_v38, %v986_v35  ;;  %v1076_v42 = vpop.f32.mrb[1].mxu0 }
 0x1b0   : > { %v1077_v45 = vadd.f32 %v1076_v42, %v986_v35  ;;  %v1173_v1 = vmax.f32 %v1158_v28, 0.0  ;;  %v1696_v42 = vld [vmem:[%s5682_s5] sm:$0xff] }
 0x1b1   : > { %v1171_v47 = vmax.f32 %v1075_v41, 0.0  ;;  %v1162_v48 = vpop.f32.mrb[2].mxu1  ;;  %v1691_v41 = vld [vmem:[%s5681_s4 + $0x8] sm:$0xff] }
 0x1b2   : > { %v1172_v49 = vmax.f32 %v1077_v45, 0.0  ;;  %v1080_v50 = vpop.f32.mrb[2].mxu0  ;;  %v1163_v51 = vadd.f32 %v1162_v48, %v991_v43  ;;  %v1164_v52 = vpop.f32.mrb[3].mxu1  ;;  %v1200_v60 = vsel %vm4716_vm14, %v1173_v1, 0.0  ;;  %3464 = vmatprep.mubr.msk.f32.mxu0 %vm998_vm0, %v1691_v41  ;;  %3467 = vmatprep.mubr.msk.f32.mxu1 %vm998_vm0, %v1691_v41  ;;  %v1698_v45 = vld [vmem:[%s5682_s5 + $0x10] sm:$0xff] }
 0x1b3   : > { %v1198_v5 = vsel %vm4708_vm12, %v1171_v47, 0.0  ;;  %v1081_v10 = vadd.f32 %v1080_v50, %v991_v43  ;;  %v1082_v20 = vpop.f32.mrb[3].mxu0 }
 0x1b4   : > { %v1199_v54 = vsel %vm4712_vm13, %v1172_v49, 0.0  ;;  %v1176_v2 = vmax.f32 %v1163_v51, 0.0  ;;  %v1083_v7 = vadd.f32 %v1082_v20, %v991_v43  ;;  %v1697_v43 = vld [vmem:[%s5682_s5 + $0x8] sm:$0xff] }
 0x1b5   : > { %v1174_v21 = vmax.f32 %v1081_v10, 0.0  ;;  %v1167_v55 = vpop.f32.mrb[4].mxu1  ;;  %v4008_v3 = vpack.i.bf16 %v1199_v54, %v1198_v5  ;;  %v4078_v15 = vpack.i.bf16 %v1200_v60, %v1199_v54 }
 0x1b6   : > { %v1203_v9 = vsel %vm4716_vm14, %v1176_v2, 0.0  ;;  %v4726_v22 = vpack.c.bf16 %v1176_v2, %v1173_v1  ;;  %v1175_v56 = vmax.f32 %v1083_v7, 0.0  ;;  %v1086_v57 = vpop.f32.mrb[4].mxu0  ;;  %v1169_v58 = vpop.f32.mrb[5].mxu1  ;;  %v4739_v12 = vadd.f32 %v1167_v55, %v996_v63 }
 0x1b7   : > { %v1201_v13 = vsel %vm4708_vm12, %v1174_v21, 0.0  ;;  %v4730_v59 = vpack.c.bf16 %v1174_v21, %v1171_v47  ;;  %v1088_v6 = vpop.f32.mrb[5].mxu0  ;;  %4009 = vrot.lane.b32.xlu1 %v4008_v3, %s4340_s19  ;;  %v4028_v8 = vpack.i.bf16 %v1203_v9, %v1200_v60  ;;  %v4750_v24 = vadd.f32 %v1086_v57, %v996_v63 }
 0x1b8   : > { %v1202_v61 = vsel %vm4712_vm13, %v1175_v56, 0.0  ;;  %v4737_v62 = vpack.c.bf16 %v1175_v56, %v1172_v49  ;;  %v4038_v14 = vpack.i.bf16 %v1201_v13, %v1200_v60  ;;  %v1179_v17 = vmax.f32 %v4739_v12, 0.0 }
 0x1b9   : > { %v4048_v4 = vpack.i.bf16 %v1202_v61, %v1201_v13  ;;  %v4088_v16 = vpack.i.bf16 %v1202_v61, %v1198_v5  ;;  %v4108_v18 = vpack.i.bf16 %v1203_v9, %v1202_v61  ;;  %v4113_v19 = vpack.i.bf16 %v1201_v13, %v1198_v5 }
 0x1ba   : > { %v1206_v23 = vsel %vm4716_vm14, %v1179_v17, 0.0  ;;  %v1177_v25 = vmax.f32 %v4750_v24, 0.0  ;;  %v4755_v27 = vadd.f32 %v1088_v6, %v996_v63 }
 0x1bb   : > { %4049 = vrot.lane.b32.xlu0 %v4048_v4, %s4340_s19  ;;  %4014 = vrot.lane.b32.xlu1 %v4008_v3, %s4341_s20  ;;  %v4093_v38 = vpack.i.bf16 %v1201_v13, %v1206_v23 }
 0x1bc   : > { %v1204_v29 = vsel %vm4708_vm12, %v1177_v25, 0.0  ;;  %v1178_v30 = vmax.f32 %v4755_v27, 0.0 }
 0x1bd   : > { %v4058_v34 = vpack.i.bf16 %v1204_v29, %v1202_v61 }
 0x1be   : > { %v1205_v35 = vsel %vm4712_vm13, %v1178_v30, 0.0 }
 0x1bf   : > { %4054 = vrot.lane.b32.xlu0 %v4048_v4, %s4342_s21  ;;  %4019 = vrot.lane.b32.xlu1 %v4008_v3, %s4342_s21  ;;  %v4063_v36 = vpack.i.bf16 %v1205_v35, %v1204_v29  ;;  %v4073_v37 = vpack.i.bf16 %v1203_v9, %v1205_v35  ;;  %v4133_v39 = vpack.i.bf16 %v1205_v35, %v1203_v9 }
 0x1c0   : > { %v4143_v40 = vpack.i.bf16 %v1206_v23, %v1205_v35 }
 0x1c3   : > { %1214 = vrot.lane.b32.xlu0 %v1206_v23, %s4340_s19  ;;  %4024 = vrot.lane.b32.xlu1 %v4008_v3, %s4343_s22 }
 0x1c7   : > { %1268 = vrot.lane.b32.xlu0 %v1206_v23, %s4341_s20  ;;  %4029 = vrot.lane.b32.xlu1 %v4028_v8, %s4340_s19 }
 0x1cb   : > { %1316 = vrot.lane.b32.xlu0 %v1206_v23, %s4342_s21  ;;  %4034 = vrot.lane.b32.xlu1 %v4028_v8, %s4342_s21 }
 0x1cf   : > { %4059 = vrot.lane.b32.xlu0 %v4058_v34, %s4341_s20  ;;  %4039 = vrot.lane.b32.xlu1 %v4038_v14, %s4341_s20 }
 0x1d3   : > { %4064 = vrot.lane.b32.xlu0 %v4063_v36, %s4340_s19  ;;  %4044 = vrot.lane.b32.xlu1 %v4038_v14, %s4343_s22  ;;  %s5719_s19 = smov 110  }
 0x1d7   : > { %4069 = vrot.lane.b32.xlu0 %v4058_v34, %s4343_s22  ;;  %4074 = vrot.lane.b32.xlu1 %v4073_v37, %s4341_s20 }
 0x1db   : > { %1364 = vrot.lane.b32.xlu0 %v1206_v23, %s4343_s22  ;;  %4079 = vrot.lane.b32.xlu1 %v4078_v15, %s4344_s23 }
 0x1df   : > { %4084 = vrot.lane.b32.xlu0 %v4063_v36, %s4342_s21  ;;  %1429 = vrot.lane.b32.xlu1 %v1204_v29, %s4344_s23  ;;  %s5720_s21 = smov 109  }
 0x1e3   : > { %4089 = vrot.lane.b32.xlu0 %v4088_v16, %s4344_s23  ;;  %4104 = vrot.lane.b32.xlu1 %v4073_v37, %s4343_s22 }
 0x1e7   : > { %4094 = vrot.lane.b32.xlu0 %v4093_v38, %s4344_s23  ;;  %4109 = vrot.lane.b32.xlu1 %v4108_v18, %s4345_s24 }
 0x1eb   : > { %4099 = vrot.lane.b32.xlu0 %v4078_v15, %s4345_s24  ;;  %1477 = vrot.lane.b32.xlu1 %v1204_v29, %s4345_s24 }
 0x1ef   : > { %4114 = vrot.lane.b32.xlu0 %v4113_v19, %s4345_s24  ;;  %4134 = vrot.lane.b32.xlu1 %v4133_v39, %s4344_s23 }
 0x1f3   : > { %4119 = vrot.lane.b32.xlu0 %v4078_v15, %s5719_s19  ;;  %1525 = vrot.lane.b32.xlu1 %v1204_v29, %s5719_s19 }
 0x1f7   : > { %4124 = vrot.lane.b32.xlu0 %v4088_v16, %s5719_s19  ;;  %4144 = vrot.lane.b32.xlu1 %v4143_v40, %s4345_s24 }
 0x1fb   : > { %4129 = vrot.lane.b32.xlu0 %v4093_v38, %s5719_s19  ;;  %4149 = vrot.lane.b32.xlu1 %v4133_v39, %s5719_s19 }
 0x1ff   : > { %4139 = vrot.lane.b32.xlu0 %v4078_v15, %s5720_s21  ;;  %4154 = vrot.lane.b32.xlu1 %v4108_v18, %s5720_s21 }
 0x203   : > { %4159 = vrot.lane.b32.xlu0 %v4113_v19, %s5720_s21  ;;  %1575 = vrot.lane.b32.xlu1 %v1205_v35, %s5720_s21 }
 0x207   : > { %1577 = vrot.lane.b32.xlu0 %v1206_v23, %s5720_s21  ;;  %1573 = vrot.lane.b32.xlu1 %v1204_v29, %s5720_s21  ;;  %s5700_s21 = smov 2  }
 0x20b   : > { %1701 = vperm.xlu0 %4007, %v1696_v42   ;;  %1706 = vperm.xlu1 %4006, %v1697_v43  }
 0x20f   : > { %1711 = vperm.xlu0 %4007, %v1698_v45  }
 0x229   : > { %v4010_v28 = vpop.permute.xlu1 %4009 }
 0x22a   : > { %v4012_v47 = vunpack.i.h.bf16 %v4010_v28  ;;  %v4011_v48 = vunpack.i.l.bf16 %v4010_v28 }
 0x22c   : > { %v1237_v5 = vsel %vm513_vm1, %v4011_v48, %v4012_v47 }
 0x22d   : > { %v4050_v49 = vpop.permute.xlu0 %4049  ;;  %v4015_v50 = vpop.permute.xlu1 %4014 }
 0x22e   : > { %v4052_v51 = vunpack.i.h.bf16 %v4050_v49  ;;  %v4051_v52 = vunpack.i.l.bf16 %v4050_v49  ;;  %v4017_v4 = vunpack.i.h.bf16 %v4015_v50  ;;  %v4016_v8 = vunpack.i.l.bf16 %v4015_v50 }
 0x230   : > { %v1239_v10 = vsel %vm513_vm1, %v4051_v52, %v4052_v51  ;;  %v1285_v23 = vsel %vm5697_vm2, %v4016_v8, %v4017_v4 }
 0x231   : > { %v4816_v20 = vpop.permute.xlu0 %4054  ;;  %v4818_v54 = vpop.permute.xlu1 %4019  ;;  %v3671_v1 = vpack.c.bf16 %v1239_v10, %v1237_v5 }
 0x232   : > { %v4057_v29 = vunpack.i.h.bf16 %v4816_v20  ;;  %v4056_v34 = vunpack.i.l.bf16 %v4816_v20  ;;  %v4022_v37 = vunpack.i.h.bf16 %v4818_v54  ;;  %v4021_v38 = vunpack.i.l.bf16 %v4818_v54 }
 0x233   : > { %3672 = vmatprep.subr.bf16.mxu0 %v3671_v1 }
 0x235   : > { %v1215_v2 = vpop.permute.xlu0 %1214  ;;  %v4820_v7 = vpop.permute.xlu1 %4024 }
 0x239   : > { %v1269_v21 = vpop.permute.xlu0 %1268  ;;  %v4030_v55 = vpop.permute.xlu1 %4029 }
 0x23a   : > { %v4032_v3 = vunpack.i.h.bf16 %v4030_v55  ;;  %v4031_v9 = vunpack.i.l.bf16 %v4030_v55 }
 0x23c   : > { %v1240_v56 = vsel %vm513_vm1, %v4052_v51, %v4032_v3  ;;  %v1253_v57 = vsel %vm513_vm1, %v4032_v3, %v4051_v52  ;;  %v1238_v58 = vsel %vm513_vm1, %v4012_v47, %v4031_v9  ;;  %v1252_v13 = vsel %vm513_vm1, %v4031_v9, %v4011_v48 }
 0x23d   : > { %v4826_v6 = vpop.permute.xlu0 %1316  ;;  %v4828_v60 = vpop.permute.xlu1 %4034  ;;  %v3673_v61 = vpack.c.bf16 %v1253_v57, %v1252_v13  ;;  %v3728_v63 = vpack.c.bf16 %v1240_v56, %v1238_v58 }
 0x23e   : > { %v4037_v41 = vunpack.i.h.bf16 %v4828_v60  ;;  %v4036_v52 = vunpack.i.l.bf16 %v4828_v60 }
 0x23f   : > { %3674 = vmatpush1.bf16.msra.mxu0 %v3673_v61  ;;  %3729 = vmatpush1.bf16.msra.mxu1 %v3728_v63  ;;  %v1333_v61 = vsel %vm611_vm3, %v4021_v38, %v4022_v37 }
 0x240   : > { %3730 = vmatprep.subr.bf16.mxu1 %v4339_v0  ;;  %v1336_v63 = vsel %vm611_vm3, %v4057_v29, %v4037_v41 }
 0x241   : > { %v4060_v14 = vpop.permute.xlu0 %4059  ;;  %v4040_v15 = vpop.permute.xlu1 %4039 }
 0x242   : > { %v4041_v16 = vunpack.i.l.bf16 %v4040_v15  ;;  %v4061_v39 = vunpack.i.l.bf16 %v4060_v14  ;;  %v4042_v40 = vunpack.i.h.bf16 %v4040_v15  ;;  %v4062_v28 = vunpack.i.h.bf16 %v4060_v14 }
 0x243   : > { %v1335_v14 = vsel %vm611_vm3, %v4056_v34, %v4057_v29  ;;  %v4027_v15 = vunpack.i.h.bf16 %v4820_v7 }
 0x244   : > { %v1286_v42 = vsel %vm5697_vm2, %v4017_v4, %v4041_v16  ;;  %v1300_v47 = vsel %vm5697_vm2, %v4041_v16, %v4016_v8  ;;  %v1287_v1 = vsel %vm5697_vm2, %v4042_v40, %v4061_v39  ;;  %v1302_v56 = vsel %vm5697_vm2, %v1269_v21, %v4062_v28 }
 0x245   : > { %v4065_v18 = vpop.permute.xlu0 %4064  ;;  %v4831_v19 = vpop.permute.xlu1 %4044  ;;  %v1334_v4 = vsel %vm611_vm3, %v4022_v37, %v4036_v52  ;;  %v1349_v16 = vsel %vm611_vm3, %v4037_v41, %v4056_v34  ;;  %v3683_v37 = vpack.c.bf16 %v1335_v14, %v1333_v61 }
 0x246   : > { %v4067_v35 = vunpack.i.h.bf16 %v4065_v18  ;;  %v4066_v36 = vunpack.i.l.bf16 %v4065_v18  ;;  %v1348_v18 = vsel %vm611_vm3, %v4036_v52, %v4021_v38 }
 0x248   : > { %v1242_v43 = vsel %vm513_vm1, %v4067_v35, %v1215_v2  ;;  %v1254_v45 = vsel %vm513_vm1, %v1215_v2, %v4066_v36  ;;  %v1241_v50 = vsel %vm513_vm1, %v4066_v36, %v4067_v35  ;;  %vm3747_vm1 = vmpackc.low %vm4716_vm14, %vm4716_vm14 }
 0x249   : > { %v4843_v48 = vpop.permute.xlu0 %4069  ;;  %v4075_v49 = vpop.permute.xlu1 %4074  ;;  %v3731_v51 = vpack.c.bf16 %v1286_v42, %v1242_v43  ;;  %v3677_v20 = vpack.c.bf16 %v1300_v47, %v1254_v45  ;;  %v3675_v54 = vpack.c.bf16 %v1285_v23, %v1241_v50  ;;  %v4046_v23 = vunpack.i.l.bf16 %v4831_v19 }
 0x24a   : > { %v4077_v5 = vunpack.i.h.bf16 %v4075_v49  ;;  %v4076_v10 = vunpack.i.l.bf16 %v4075_v49 }
 0x24b   : > { %3732 = vmatpush1.bf16.msra.mxu1 %v3731_v51  ;;  %3676 = vmatprep.subr.bf16.mxu0 %v3675_v54  ;;  %v1382_v34 = vsel %vm5710_vm4, %v4027_v15, %v4046_v23  ;;  %v4071_v51 = vunpack.i.l.bf16 %v4843_v48 }
 0x24c   : > { %v1288_v2 = vsel %vm5697_vm2, %v4061_v39, %v4077_v5  ;;  %v1290_v55 = vsel %vm5697_vm2, %v4076_v10, %v1269_v21  ;;  %v1301_v3 = vsel %vm5697_vm2, %v4077_v5, %v4042_v40  ;;  %3733 = vmatprep.subr.bf16.mxu1 %v4339_v0  ;;  %v1289_v9 = vsel %vm5697_vm2, %v4062_v28, %v4076_v10  ;;  %vm4955_vm2 = vmpackc.low %vm4350_vm9, %vm4708_vm12 }
 0x24d   : > { %v1365_v57 = vpop.permute.xlu0 %1364  ;;  %v4854_v58 = vpop.permute.xlu1 %4079  ;;  %v3679_v13 = vpack.c.bf16 %v1289_v9, %v1287_v1  ;;  %v3734_v60 = vpack.c.bf16 %v1290_v55, %v1288_v2  ;;  %3678 = vmatpush1.bf16.msra.mxu0 %v3677_v20  ;;  %v3681_v8 = vpack.c.bf16 %v1302_v56, %v1301_v3  ;;  %v4026_v21 = vunpack.i.l.bf16 %v4820_v7 }
 0x24e   : > { %v3737_v39 = vpack.c.bf16 %v1336_v63, %v1334_v4  ;;  %v3685_v7 = vpack.c.bf16 %v1349_v16, %v1348_v18  ;;  %v4047_v20 = vunpack.i.h.bf16 %v4831_v19  ;;  %v4081_v56 = vunpack.i.l.bf16 %v4854_v58 }
 0x24f   : > { %3680 = vmatprep.subr.bf16.mxu0 %v3679_v13  ;;  %3735 = vmatpush1.bf16.msra.mxu1 %v3734_v60  ;;  %v1381_v42 = vsel %vm5710_vm4, %v4026_v21, %v4027_v15  ;;  %v1396_v45 = vsel %vm5710_vm4, %v4046_v23, %v4026_v21 }
 0x250   : > { %3736 = vmatprep.subr.bf16.mxu1 %v4339_v0  ;;  %v1383_v13 = vsel %vm5710_vm4, %v4047_v20, %v4071_v51 }
 0x251   : > { %v4085_v35 = vpop.permute.xlu0 %4084  ;;  %v4866_v36 = vpop.permute.xlu1 %1429  ;;  %3682 = vmatpush1.bf16.msra.mxu0 %v3681_v8 }
 0x252   : > { %v4087_v29 = vunpack.i.h.bf16 %v4085_v35  ;;  %v4086_v40 = vunpack.i.l.bf16 %v4085_v35  ;;  %3684 = vmatprep.subr.bf16.mxu0 %v3683_v37 }
 0x253   : > { %3738 = vmatpush1.bf16.msra.mxu1 %v3737_v39 }
 0x254   : > { %v1338_v38 = vsel %vm611_vm3, %v4087_v29, %v4826_v6  ;;  %v1350_v41 = vsel %vm611_vm3, %v4826_v6, %v4086_v40  ;;  %3739 = vmatprep.subr.bf16.mxu1 %v4339_v0  ;;  %v1337_v43 = vsel %vm611_vm3, %v4086_v40, %v4087_v29  ;;  %v4072_v6 = vunpack.i.h.bf16 %v4843_v48  ;;  %vm3699_vm3 = vmpackc.low %vm4708_vm12, %vm4708_vm12 }
 0x255   : > { %v4877_v28 = vpop.permute.xlu0 %4089  ;;  %v4105_v47 = vpop.permute.xlu1 %4104  ;;  %v3687_v49 = vpack.c.bf16 %v1381_v42, %v1337_v43  ;;  %v3740_v50 = vpack.c.bf16 %v1382_v34, %v1338_v38  ;;  %3686 = vmatpush1.bf16.msra.mxu0 %v3685_v7  ;;  %v3689_v10 = vpack.c.bf16 %v1396_v45, %v1350_v41  ;;  %v4082_v48 = vunpack.i.h.bf16 %v4854_v58 }
 0x256   : > { %v4107_v52 = vunpack.i.h.bf16 %v4105_v47  ;;  %v4106_v5 = vunpack.i.l.bf16 %v4105_v47  ;;  %v1398_v19 = vsel %vm5710_vm4, %v1365_v57, %v4072_v6  ;;  %v4091_v4 = vunpack.i.l.bf16 %v4877_v28 }
 0x257   : > { %3688 = vmatprep.subr.bf16.mxu0 %v3687_v49  ;;  %3741 = vmatpush1.bf16.msra.mxu1 %v3740_v50  ;;  %v1436_v14 = vsel %vm715_vm5, %v4081_v56, %v4082_v48  ;;  %v4092_v7 = vunpack.i.h.bf16 %v4877_v28 }
 0x258   : > { %v1384_v54 = vsel %vm5710_vm4, %v4071_v51, %v4107_v52  ;;  %v1386_v1 = vsel %vm5710_vm4, %v4106_v5, %v1365_v57  ;;  %3742 = vmatprep.subr.bf16.mxu1 %v4339_v0  ;;  %v1397_v2 = vsel %vm5710_vm4, %v4107_v52, %v4047_v20  ;;  %v1385_v9 = vsel %vm5710_vm4, %v4072_v6, %v4106_v5 }
 0x259   : > { %v4886_v55 = vpop.permute.xlu0 %4094  ;;  %v4888_v3 = vpop.permute.xlu1 %4109  ;;  %3690 = vmatpush1.bf16.msra.mxu0 %v3689_v10  ;;  %v3691_v60 = vpack.c.bf16 %v1385_v9, %v1383_v13  ;;  %v3743_v61 = vpack.c.bf16 %v1386_v1, %v1384_v54  ;;  %v3693_v63 = vpack.c.bf16 %v1398_v19, %v1397_v2  ;;  %v1453_v58 = vsel %vm715_vm5, %v4082_v48, %v4091_v4 }
 0x25a   : > { %v1435_v21 = vsel %vm715_vm5, %v4091_v4, %v4081_v56  ;;  %v4097_v16 = vunpack.i.h.bf16 %v4886_v55  ;;  %v3701_v35 = vpack.c.bf16 %v1436_v14, %v1178_v30  ;;  %v3750_v27 = vpack.c.bf16 %v1453_v58, %v1179_v17 }
 0x25b   : > { %3692 = vmatprep.subr.bf16.mxu0 %v3691_v60  ;;  %3744 = vmatpush1.bf16.msra.mxu1 %v3743_v61  ;;  %v3704_v42 = vpack.c.bf16 %v1435_v21, %v1177_v25  ;;  %v4112_v34 = vunpack.i.h.bf16 %v4888_v3  ;;  %v4111_v38 = vunpack.i.l.bf16 %v4888_v3 }
 0x25c   : > { %3745 = vmatprep.subr.bf16.mxu1 %v4339_v0  ;;  %v1437_v24 = vsel %vm715_vm5, %v4097_v16, %v4092_v7 }
 0x25d   : > { %v4100_v8 = vpop.permute.xlu0 %4099  ;;  %v4899_v57 = vpop.permute.xlu1 %1477  ;;  %3694 = vmatpush1.bf16.msra.mxu0 %v3693_v63 }
 0x25e   : > { %3697 = vmatprep.subr.msk.bf16.mxu0 %vm3696_vm15, %v4737_v62  ;;  %v4096_v62 = vunpack.i.l.bf16 %v4886_v55  ;;  %v4102_v37 = vunpack.i.h.bf16 %v4100_v8  ;;  %v4101_v39 = vunpack.i.l.bf16 %v4100_v8  ;;  %v1486_v55 = vsel %vm764_vm6, %v4111_v38, %v4112_v34 }
 0x25f   : > { %3748 = vmatpush1.bf16.msk.msra.mxu1 %vm3747_vm1, %v4726_v22 }
 0x260   : > { %3749 = vmatprep.subr.bf16.mxu1 %v4339_v0  ;;  %v1455_v17 = vsel %vm715_vm5, %v4096_v62, %v4866_v36  ;;  %v1484_v47 = vsel %vm764_vm6, %v4101_v39, %v4102_v37 }
 0x261   : > { %v4115_v18 = vpop.permute.xlu0 %4114  ;;  %v4135_v23 = vpop.permute.xlu1 %4134  ;;  %3700 = vmatpush1.bf16.msk.msra.mxu0 %vm3699_vm3, %v4730_v59  ;;  %v3711_v48 = vpack.c.bf16 %v1486_v55, %v1484_v47 }
 0x262   : > { %v4137_v29 = vunpack.i.h.bf16 %v4135_v23  ;;  %v4136_v40 = vunpack.i.l.bf16 %v4135_v23  ;;  %v4116_v30 = vunpack.i.l.bf16 %v4115_v18  ;;  %3703 = vmatprep.subr.msk.bf16.mxu0 %vm4919_vm10, %v3701_v35  ;;  %v4117_v12 = vunpack.i.h.bf16 %v4115_v18 }
 0x263   : > { %3752 = vmatpush1.bf16.msk.msra.mxu1 %vm4944_vm11, %v3750_v27 }
 0x264   : > { %v1439_v41 = vsel %vm715_vm5, %v4866_v36, %v4137_v29  ;;  %v1454_v43 = vsel %vm715_vm5, %v4136_v40, %v4097_v16  ;;  %3753 = vmatprep.subr.bf16.mxu1 %v4339_v0  ;;  %v1483_v49 = vsel %vm764_vm6, %v4116_v30, %v4101_v39  ;;  %v1438_v50 = vsel %vm715_vm5, %v4092_v7, %v4136_v40 }
 0x265   : > { %v4120_v45 = vpop.permute.xlu0 %4119  ;;  %v1526_v28 = vpop.permute.xlu1 %1525  ;;  %v3754_v25 = vpack.c.bf16 %v1455_v17, %v1454_v43  ;;  %3706 = vmatpush1.bf16.msk.msra.mxu0 %vm4955_vm2, %v3704_v42  ;;  %v3709_v36 = vpack.c.bf16 %v1439_v41, %v1437_v24  ;;  %v1440_v51 = vsel %vm715_vm5, %v4137_v29, %v4096_v62  ;;  %v1485_v52 = vsel %vm764_vm6, %v4117_v12, %v4111_v38 }
 0x266   : > { %v1501_v5 = vsel %vm764_vm6, %v4102_v37, %v4116_v30  ;;  %v1502_v10 = vsel %vm764_vm6, %v4112_v34, %v4117_v12  ;;  %v3707_v20 = vpack.c.bf16 %v1440_v51, %v1438_v50  ;;  %v4122_v6 = vunpack.i.h.bf16 %v4120_v45 }
 0x267   : > { %v4121_v54 = vunpack.i.l.bf16 %v4120_v45  ;;  %3755 = vmatpush1.bf16.msra.mxu1 %v3754_v25  ;;  %v3713_v56 = vpack.c.bf16 %v1485_v52, %v1483_v49  ;;  %v3757_v13 = vpack.c.bf16 %v1502_v10, %v1501_v5 }
 0x268   : > { %3708 = vmatprep.subr.bf16.mxu0 %v3707_v20  ;;  %3756 = vmatprep.subr.bf16.mxu1 %v4339_v0 }
 0x269   : > { %v4125_v1 = vpop.permute.xlu0 %4124  ;;  %v4145_v2 = vpop.permute.xlu1 %4144  ;;  %3710 = vmatpush1.bf16.msra.mxu0 %v3709_v36  ;;  %v1532_v62 = vsel %vm5709_vm7, %v4121_v54, %v4122_v6 }
 0x26a   : > { %v4126_v3 = vunpack.i.l.bf16 %v4125_v1  ;;  %v4147_v9 = vunpack.i.h.bf16 %v4145_v2  ;;  %v4146_v19 = vunpack.i.l.bf16 %v4145_v2  ;;  %3712 = vmatprep.subr.bf16.mxu0 %v3711_v48  ;;  %v4127_v8 = vunpack.i.h.bf16 %v4125_v1 }
 0x26b   : > { %3758 = vmatpush1.bf16.msra.mxu1 %v3757_v13  ;;  %v1692_v13 = vld [vmem:[%s5681_s4 + $0x10] sm:$0xff] }
 0x26c   : > { %v1531_v60 = vsel %vm5709_vm7, %v4126_v3, %v4121_v54  ;;  %v1549_v61 = vsel %vm5709_vm7, %v4122_v6, %v4126_v3  ;;  %v1503_v63 = vsel %vm764_vm6, %v4147_v9, %v4899_v57  ;;  %v1487_v4 = vsel %vm764_vm6, %v4899_v57, %v4146_v19  ;;  %3759 = vmatprep.subr.bf16.mxu1 %v4339_v0 }
 0x26d   : > { %v3760_v14 = vpack.c.bf16 %v1549_v61, %v1503_v63  ;;  %v4130_v58 = vpop.permute.xlu0 %4129  ;;  %v4150_v21 = vpop.permute.xlu1 %4149  ;;  %v1488_v16 = vsel %vm764_vm6, %v4146_v19, %v4147_v9  ;;  %v3717_v39 = vpack.c.bf16 %v1531_v60, %v1487_v4  ;;  %3714 = vmatpush1.bf16.msra.mxu0 %v3713_v56  ;;  %v1690_v9 = vld [vmem:[%s5681_s4] sm:$0xff]  ;;  %v1693_v56 = vld [vmem:[%s5681_s4 + $0x18] sm:$0xff]  ;;  %v1695_v60 = vld [vmem:[%s5681_s4 + $0x28] sm:$0xff] }
 0x26e   : > { %v4132_v18 = vunpack.i.h.bf16 %v4130_v58  ;;  %v4131_v23 = vunpack.i.l.bf16 %v4130_v58  ;;  %v4152_v35 = vunpack.i.h.bf16 %v4150_v21  ;;  %v4151_v37 = vunpack.i.l.bf16 %v4150_v21  ;;  %v1694_v61 = vld [vmem:[%s5681_s4 + $0x20] sm:$0xff] }
 0x26f   : > { %v3715_v29 = vpack.c.bf16 %v1532_v62, %v1488_v16  ;;  %3761 = vmatpush1.bf16.msra.mxu1 %v3760_v14 }
 0x270   : > { %v1533_v57 = vsel %vm5709_vm7, %v4132_v18, %v4127_v8  ;;  %v1551_v40 = vsel %vm5709_vm7, %v4131_v23, %v1526_v28  ;;  %v1535_v27 = vsel %vm5709_vm7, %v1526_v28, %v4152_v35  ;;  %v1550_v30 = vsel %vm5709_vm7, %v4151_v37, %v4132_v18  ;;  %3762 = vmatprep.subr.bf16.mxu1 %v4339_v0 }
 0x271   : > { %v3763_v7 = vpack.c.bf16 %v1551_v40, %v1550_v30  ;;  %3716 = vmatprep.subr.bf16.mxu0 %v3715_v29  ;;  %v4140_v42 = vpop.permute.xlu0 %4139  ;;  %v4155_v34 = vpop.permute.xlu1 %4154  ;;  %v1534_v12 = vsel %vm5709_vm7, %v4127_v8, %v4151_v37  ;;  %v3721_v45 = vpack.c.bf16 %v1535_v27, %v1533_v57  ;;  %v1536_v24 = vsel %vm5709_vm7, %v4152_v35, %v4131_v23 }
 0x272   : > { %v4142_v17 = vunpack.i.h.bf16 %v4140_v42  ;;  %v4141_v38 = vunpack.i.l.bf16 %v4140_v42  ;;  %v4157_v41 = vunpack.i.h.bf16 %v4155_v34  ;;  %v4156_v43 = vunpack.i.l.bf16 %v4155_v34  ;;  %3718 = vmatpush1.bf16.msra.mxu0 %v3717_v39 }
 0x273   : > { %v3719_v28 = vpack.c.bf16 %v1536_v24, %v1534_v12  ;;  %3764 = vmatpush1.bf16.msra.mxu1 %v3763_v7 }
 0x274   : > { %v1580_v25 = vsel %vm862_vm8, %v4141_v38, %v4142_v17  ;;  %v1582_v47 = vsel %vm862_vm8, %v4156_v43, %v4157_v41  ;;  %3765 = vmatprep.subr.bf16.mxu1 %v4339_v0 }
 0x275   : > { %v4160_v49 = vpop.permute.xlu0 %4159  ;;  %v1576_v36 = vpop.permute.xlu1 %1575  ;;  %v3723_v50 = vpack.c.bf16 %v1582_v47, %v1580_v25  ;;  %3720 = vmatprep.subr.bf16.mxu0 %v3719_v28 }
 0x276   : > { %v4162_v51 = vunpack.i.h.bf16 %v4160_v49  ;;  %v4161_v52 = vunpack.i.l.bf16 %v4160_v49  ;;  %3722 = vmatpush1.bf16.msra.mxu0 %v3721_v45 }
 0x277   : > { %3724 = vmatprep.subr.bf16.mxu0 %v3723_v50 }
 0x278   : > { %v1579_v5 = vsel %vm862_vm8, %v4161_v52, %v4141_v38  ;;  %v1581_v10 = vsel %vm862_vm8, %v4162_v51, %v4156_v43  ;;  %v1597_v20 = vsel %vm862_vm8, %v4142_v17, %v4161_v52  ;;  %v1598_v6 = vsel %vm862_vm8, %v4157_v41, %v4162_v51 }
 0x279   : > { %v3725_v54 = vpack.c.bf16 %v1581_v10, %v1579_v5  ;;  %v3766_v1 = vpack.c.bf16 %v1598_v6, %v1597_v20  ;;  %v1578_v2 = vpop.permute.xlu0 %1577  ;;  %v1574_v3 = vpop.permute.xlu1 %1573 }
 0x27a   : > { %v1584_v55 = vsel %vm862_vm8, %v1576_v36, %v1578_v2  ;;  %v1583_v19 = vsel %vm862_vm8, %v1574_v3, %v1576_v36  ;;  %v1599_v48 = vsel %vm862_vm8, %v1578_v2, %v1574_v3 }
 0x27b   : > { %3726 = vmatpush1.bf16.msra.mxu0 %v3725_v54  ;;  %3767 = vmatpush1.bf16.msra.mxu1 %v3766_v1 }
 0x27c   : > { %1775 = vmatprep.subr.mxu0 %v1584_v55  ;;  %1858 = vmatprep.subr.mxu1 %v4349_v11 }
 0x27f   : > { %1776 = vmatpush1.msra.mxu0 %v1583_v19  ;;  %1859 = vmatpush1.msra.mxu1 %v1599_v48 }
 0x280   : > { %1788 = vmatmul.mubr.f32.vlgmr.msra.gmra.mrb[6].mxu0 %v1690_v9  ;;  %1871 = vmatmul.mubr.f32.vlgmr.msra.gmra.mrb[6].mxu1 %v1690_v9 }
 0x281   : > { %3465 = vmatprep.mubr.msk.f32.mxu0 %vm998_vm0, %v1693_v56  ;;  %3468 = vmatprep.mubr.msk.f32.mxu1 %vm998_vm0, %v1693_v56 }
 0x282   : > { %3788 = vmatprep.subr.bf16.mxu1 %v4339_v0 }
 0x284   : > { %1794 = vmatmul.mubr.f32.gmra.mrb[8].mxu0 %v1692_v13  ;;  %1876 = vmatmul.mubr.f32.gmra.mrb[8].mxu1 %v1692_v13 }
 0x285   : > { %3466 = vmatprep.mubr.msk.f32.mxu0 %vm998_vm0, %v1695_v60  ;;  %3469 = vmatprep.mubr.msk.f32.mxu1 %vm998_vm0, %v1695_v60 }
 0x288   : > { %1800 = vmatmul.mubr.f32.gmra.mrb[10].mxu0 %v1694_v61  ;;  %1881 = vmatmul.mubr.f32.gmra.mrb[10].mxu1 %v1694_v61 }
 0x289   : > { %2519 = vmatprep.mubr.f32.mxu0 %v4349_v11 }
 0x28a   : > { %v1702_v63 = vpop.permute.xlu0 %1701  ;;  %v1707_v18 = vpop.permute.xlu1 %1706 }
 0x28e   : > { %v1712_v12 = vpop.permute.xlu0 %1711 }
 0x353   : > { %v1789_v4 = vpop.f32.mrb[6].mxu0  ;;  %v1872_v8 = vpop.f32.mrb[6].mxu1 }
 0x354   : > { %v1790_v14 = vadd.f32 %v1789_v4, %v1702_v63  ;;  %v1791_v58 = vpop.f32.mrb[7].mxu0  ;;  %v1874_v21 = vpop.f32.mrb[7].mxu1  ;;  %v1873_v16 = vadd.f32 %v1872_v8, %v1702_v63 }
 0x355   : > { %v1792_v62 = vadd.f32 %v1791_v58, %v1702_v63 }
 0x356   : > { %v1886_v23 = vmax.f32 %v1790_v14, 0.0  ;;  %v1888_v7 = vmax.f32 %v1873_v16, 0.0 }
 0x357   : > { %v1887_v35 = vmax.f32 %v1792_v62, 0.0  ;;  %v1795_v37 = vpop.f32.mrb[8].mxu0  ;;  %v1877_v39 = vpop.f32.mrb[8].mxu1 }
 0x358   : > { %v5034_v29 = vsel %vm4708_vm12, %v1886_v23, 0.0  ;;  %v1796_v57 = vadd.f32 %v1795_v37, %v1707_v18  ;;  %v1878_v40 = vadd.f32 %v1877_v39, %v1707_v18  ;;  %v1797_v27 = vpop.f32.mrb[9].mxu0  ;;  %v1879_v30 = vpop.f32.mrb[9].mxu1  ;;  %v5053_v51 = vsel %vm4716_vm14, %v1888_v7, 0.0 }
 0x359   : > { %v5038_v42 = vsel %vm4712_vm13, %v1887_v35, 0.0  ;;  %v1798_v34 = vadd.f32 %v1797_v27, %v1707_v18 }
 0x35a   : > { %v1889_v17 = vmax.f32 %v1796_v57, 0.0  ;;  %v1891_v38 = vmax.f32 %v1878_v40, 0.0  ;;  %v4163_v41 = vpack.i.bf16 %v5038_v42, %v5034_v29 }
 0x35b   : > { %v1890_v43 = vmax.f32 %v1798_v34, 0.0  ;;  %v1801_v45 = vpop.f32.mrb[10].mxu0  ;;  %v1882_v24 = vpop.f32.mrb[10].mxu1 }
 0x35c   : > { %v5044_v28 = vsel %vm4708_vm12, %v1889_v17, 0.0  ;;  %v3771_v25 = vpack.c.bf16 %v1889_v17, %v1886_v23  ;;  %v5048_v47 = vsel %vm4716_vm14, %v1891_v38, 0.0  ;;  %v3789_v49 = vpack.c.bf16 %v1891_v38, %v1888_v7  ;;  %v1803_v36 = vpop.f32.mrb[11].mxu0  ;;  %4164 = vrot.lane.b32.xlu1 %v4163_v41, %s4344_s23  ;;  %v1884_v50 = vpop.f32.mrb[11].mxu1 }
 0x35d   : > { %v5057_v52 = vsel %vm4712_vm13, %v1890_v43, 0.0  ;;  %v3768_v5 = vpack.c.bf16 %v1890_v43, %v1887_v35  ;;  %v5059_v10 = vadd.f32 %v1801_v45, %v1712_v12  ;;  %v5061_v20 = vadd.f32 %v1803_v36, %v1712_v12 }
 0x35e   : > { %3791 = vmatpush3.bf16.msk.msra.mxu1 %vm3747_vm1, %v3789_v49  ;;  %v4168_v6 = vpack.i.bf16 %v5044_v28, %v5053_v51  ;;  %v4173_v54 = vpack.i.bf16 %v5048_v47, %v5057_v52  ;;  %v5073_v2 = vadd.f32 %v1882_v24, %v1712_v12 }
 0x35f   : > { %v1892_v1 = vmax.f32 %v5059_v10, 0.0  ;;  %3770 = vmatprep.subr.msk.bf16.mxu0 %vm3696_vm15, %v3768_v5  ;;  %3792 = vmatprep.subr.bf16.mxu1 %v4339_v0  ;;  %v1893_v55 = vmax.f32 %v5061_v20, 0.0  ;;  %vm5739_vm15 = vcmask 146432  }
 0x360   : > { %4169 = vrot.lane.b32.xlu0 %v4168_v6, %s4344_s23  ;;  %3773 = vmatpush1.bf16.msk.msra.mxu0 %vm3699_vm3, %v3771_v25  ;;  %v1894_v3 = vmax.f32 %v5073_v2, 0.0  ;;  %v1906_v25 = vsub.s32 1, %v4687_v26  ;;  %vm5740_vm1 = vmmov %vm5739_vm15 }
 0x361   : > { %4174 = vrot.lane.b32.xlu1 %v4173_v54, %s4344_s23  ;;  %v5094_v9 = vsel %vm4708_vm12, %v1892_v1, 0.0  ;;  %v5102_v19 = vsel %vm4712_vm13, %v1893_v55, 0.0  ;;  %vm5741_vm3 = vmmov %vm5740_vm1 }
 0x362   : > { %v5110_v48 = vsel %vm4716_vm14, %v1894_v3, 0.0  ;;  %v1911_v49 = vrot.slane %v4700_v32, %v1906_v25  ;;  %v1907_v36 = vrot.slane %v4697_v31, %v1906_v25  ;;  %vm5742_vm9 = vmmov %vm5740_vm1 }
 0x364   : > { %1940 = vrot.lane.b32.xlu0 %v5094_v9, %s4344_s23  ;;  %vm5141_vm0 = vcmp.eq.s32.totalorder %v1911_v49, 1  ;;  %vm5146_vm6 = vcmp.eq.s32.totalorder %v1907_v36, 1 }
 0x365   : > { %1942 = vrot.lane.b32.xlu1 %v5102_v19, %s4344_s23 }
 0x368   : > { %1944 = vrot.lane.b32.xlu0 %v5110_v48, %s4344_s23 }
 0x3ce   : > { %v4165_v44 = vpop.permute.xlu1 %4164 }
 0x3cf   : > { %v4167_v56 = vunpack.i.h.bf16 %v4165_v44  ;;  %v4166_v13 = vunpack.i.l.bf16 %v4165_v44 }
 0x3d1   : > { %v1946_v60 = vsel %vm715_vm5, %v4166_v13, %v4167_v56 }
 0x3d2   : > { %v4170_v46 = vpop.permute.xlu0 %4169  ;;  %v1967_v21 = vmax.f32 %v5034_v29, %v1946_v60 }
 0x3d3   : > { %v4172_v61 = vunpack.i.h.bf16 %v4170_v46  ;;  %v4171_v63 = vunpack.i.l.bf16 %v4170_v46  ;;  %v4175_v4 = vpop.permute.xlu1 %4174 }
 0x3d4   : > { %v4177_v8 = vunpack.i.h.bf16 %v4175_v4  ;;  %v4176_v14 = vunpack.i.l.bf16 %v4175_v4 }
 0x3d5   : > { %v1947_v58 = vsel %vm715_vm5, %v4167_v56, %v4171_v63  ;;  %v1964_v53 = vsel %vm715_vm5, %v4171_v63, %v4166_v13  ;;  %v1915_v56 = vrot.slane %v4703_v33, %v1906_v25 }
 0x3d6   : > { %v1965_v16 = vsel %vm715_vm5, %v4177_v8, %v4172_v61  ;;  %v1948_v62 = vsel %vm715_vm5, %v4172_v61, %v4176_v14  ;;  %v1949_v18 = vsel %vm715_vm5, %v4176_v14, %v4177_v8  ;;  %v1941_v23 = vpop.permute.xlu0 %1940  ;;  %v1968_v35 = vmax.f32 %v5038_v42, %v1947_v58 }
 0x3d7   : > { %v1969_v37 = vmax.f32 %v5053_v51, %v1964_v53  ;;  %v1972_v39 = vmax.f32 %v5048_v47, %v1965_v16  ;;  %v1970_v27 = vmax.f32 %v5044_v28, %v1948_v62  ;;  %v1971_v30 = vmax.f32 %v5057_v52, %v1949_v18  ;;  %v1943_v34 = vpop.permute.xlu1 %1942 }
 0x3d8   : > { %v4178_v57 = vpack.i.bf16 %v1968_v35, %v1967_v21  ;;  %v1950_v43 = vsel %vm715_vm5, %v1941_v23, %v1943_v34  ;;  %vm5156_vm8 = vcmp.eq.s32.totalorder %v1915_v56, 1 }
 0x3d9   : > { %v4183_v40 = vpack.i.bf16 %v1972_v39, %v1969_v37  ;;  %v4188_v41 = vpack.i.bf16 %v1971_v30, %v1970_v27  ;;  %v1973_v24 = vmax.f32 %v5094_v9, %v1950_v43 }
 0x3da   : > { %v1945_v7 = vpop.permute.xlu0 %1944  ;;  %4179 = vrot.lane.b32.xlu0 %v4178_v57, %s4343_s22 }
 0x3db   : > { %v1966_v12 = vsel %vm715_vm5, %v1945_v7, %v1941_v23  ;;  %4184 = vrot.lane.b32.xlu1 %v4183_v40, %s4343_s22  ;;  %v1951_v38 = vsel %vm715_vm5, %v1943_v34, %v1945_v7 }
 0x3dc   : > { %v1975_v17 = vmax.f32 %v5110_v48, %v1966_v12  ;;  %v1974_v45 = vmax.f32 %v5102_v19, %v1951_v38 }
 0x3de   : > { %1983 = vrot.lane.b32.xlu0 %v1975_v17, %s4343_s22 }
 0x3df   : > { %4189 = vrot.lane.b32.xlu1 %v4188_v41, %s4343_s22 }
 0x3e2   : > { %2004 = vrot.lane.b32.xlu0 %v1974_v45, %s4343_s22 }
 0x3e3   : > { %2002 = vrot.lane.b32.xlu1 %v1973_v24, %s4343_s22 }
 0x44c   : > { %v4180_v50 = vpop.permute.xlu0 %4179 }
 0x44d   : > { %v4182_v5 = vunpack.i.h.bf16 %v4180_v50  ;;  %v4181_v6 = vunpack.i.l.bf16 %v4180_v50  ;;  %v4185_v54 = vpop.permute.xlu1 %4184 }
 0x44e   : > { %v4186_v13 = vunpack.i.l.bf16 %v4185_v54  ;;  %v4187_v8 = vunpack.i.h.bf16 %v4185_v54 }
 0x44f   : > { %v2006_v46 = vsel %vm5710_vm4, %v4181_v6, %v4182_v5 }
 0x450   : > { %v2021_v61 = vsel %vm5710_vm4, %v4186_v13, %v4181_v6  ;;  %v1984_v63 = vpop.permute.xlu0 %1983  ;;  %v2025_v4 = vsel %vm5141_vm0, %v2006_v46, %v1968_v35  ;;  %v2007_v16 = vsel %vm5710_vm4, %v4182_v5, %v4186_v13 }
 0x451   : > { %v4190_v14 = vpop.permute.xlu1 %4189  ;;  %v2024_v58 = vsel %vm5146_vm6, %v2021_v61, %v1967_v21  ;;  %v2026_v21 = vsel %vm5156_vm8, %v2007_v16, %v1969_v37 }
 0x452   : > { %v4192_v62 = vunpack.i.h.bf16 %v4190_v14  ;;  %v4191_v18 = vunpack.i.l.bf16 %v4190_v14  ;;  %v4193_v23 = vpack.i.bf16 %v2025_v4, %v2024_v58 }
 0x454   : > { %v2008_v57 = vsel %vm5710_vm4, %v4191_v18, %v4192_v62  ;;  %v2009_v40 = vsel %vm5710_vm4, %v4192_v62, %v4187_v8  ;;  %v2022_v35 = vsel %vm5710_vm4, %v4187_v8, %v4191_v18  ;;  %4194 = vrot.lane.b32.xlu1 %v4193_v23, %s5719_s19  ;;  %v2005_v7 = vpop.permute.xlu0 %2004 }
 0x455   : > { %v2003_v34 = vpop.permute.xlu1 %2002  ;;  %v2027_v12 = vsel %vm5146_vm6, %v2022_v35, %v1970_v27  ;;  %v2028_v38 = vsel %vm5141_vm0, %v2008_v57, %v1971_v30  ;;  %v2029_v41 = vsel %vm5156_vm8, %v2009_v40, %v1972_v39  ;;  %v2011_v30 = vsel %vm5710_vm4, %v2005_v7, %v1984_v63 }
 0x456   : > { %v4198_v43 = vpack.i.bf16 %v2027_v12, %v2026_v21  ;;  %v4203_v25 = vpack.i.bf16 %v2029_v41, %v2028_v38  ;;  %v2010_v49 = vsel %vm5710_vm4, %v2003_v34, %v2005_v7  ;;  %v2023_v36 = vsel %vm5710_vm4, %v1984_v63, %v2003_v34 }
 0x457   : > { %v2030_v37 = vsel %vm5146_vm6, %v2023_v36, %v1973_v24  ;;  %v2031_v27 = vsel %vm5141_vm0, %v2010_v49, %v1974_v45  ;;  %v2032_v39 = vsel %vm5156_vm8, %v2011_v30, %v1975_v17  ;;  %vm2445_vm4 = vcmask 588800  }
 0x458   : > { %4199 = vrot.lane.b32.xlu0 %v4198_v43, %s5719_s19  ;;  %4204 = vrot.lane.b32.xlu1 %v4203_v25, %s5719_s19 }
 0x45c   : > { %2069 = vrot.lane.b32.xlu0 %v2030_v37, %s5719_s19  ;;  %2071 = vrot.lane.b32.xlu1 %v2031_v27, %s5719_s19 }
 0x460   : > { %2073 = vrot.lane.b32.xlu0 %v2032_v39, %s5719_s19 }
 0x4c6   : > { %v4195_v50 = vpop.permute.xlu1 %4194 }
 0x4c7   : > { %v4197_v5 = vunpack.i.h.bf16 %v4195_v50  ;;  %v4196_v6 = vunpack.i.l.bf16 %v4195_v50 }
 0x4c9   : > { %v2075_v54 = vsel %vm5709_vm7, %v4196_v6, %v4197_v5 }
 0x4ca   : > { %v4200_v24 = vpop.permute.xlu0 %4199  ;;  %v4205_v56 = vpop.permute.xlu1 %4204  ;;  %v2096_v63 = vmax.f32 %v2024_v58, %v2075_v54 }
 0x4cb   : > { %v4202_v13 = vunpack.i.h.bf16 %v4200_v24  ;;  %v4201_v45 = vunpack.i.l.bf16 %v4200_v24  ;;  %v4207_v46 = vunpack.i.h.bf16 %v4205_v56  ;;  %v4206_v61 = vunpack.i.l.bf16 %v4205_v56 }
 0x4cd   : > { %v2076_v8 = vsel %vm5709_vm7, %v4197_v5, %v4201_v45  ;;  %v2093_v14 = vsel %vm5709_vm7, %v4201_v45, %v4196_v6  ;;  %v2094_v17 = vsel %vm5709_vm7, %v4207_v46, %v4202_v13  ;;  %v2077_v16 = vsel %vm5709_vm7, %v4202_v13, %v4206_v61 }
 0x4ce   : > { %v2097_v62 = vmax.f32 %v2025_v4, %v2076_v8  ;;  %v2098_v18 = vmax.f32 %v2026_v21, %v2093_v14  ;;  %v2101_v23 = vmax.f32 %v2029_v41, %v2094_v17  ;;  %v2078_v57 = vsel %vm5709_vm7, %v4206_v61, %v4207_v46  ;;  %v2070_v40 = vpop.permute.xlu0 %2069  ;;  %v2072_v25 = vpop.permute.xlu1 %2071 }
 0x4cf   : > { %v2099_v35 = vmax.f32 %v2027_v12, %v2077_v16  ;;  %v2100_v7 = vmax.f32 %v2028_v38, %v2078_v57  ;;  %v2079_v4 = vsel %vm5709_vm7, %v2070_v40, %v2072_v25  ;;  %v2035_v41 = vsub.s32 2, %v4687_v26 }
 0x4d0   : > { %v4213_v34 = vpack.i.bf16 %v2101_v23, %v2098_v18  ;;  %v4208_v43 = vpack.i.bf16 %v2097_v62, %v2096_v63  ;;  %v2102_v12 = vmax.f32 %v2030_v37, %v2079_v4 }
 0x4d1   : > { %v4218_v30 = vpack.i.bf16 %v2100_v7, %v2099_v35  ;;  %v2036_v50 = vrot.slane %v4697_v31, %v2035_v41  ;;  %v2044_v5 = vrot.slane %v4703_v33, %v2035_v41 }
 0x4d2   : > { %v2074_v58 = vpop.permute.xlu0 %2073  ;;  %4214 = vrot.lane.b32.xlu1 %v4213_v34, %s4341_s20  ;;  %4209 = vrot.lane.b32.xlu0 %v4208_v43, %s4341_s20 }
 0x4d3   : > { %v2095_v49 = vsel %vm5709_vm7, %v2074_v58, %v2070_v40  ;;  %v2080_v21 = vsel %vm5709_vm7, %v2072_v25, %v2074_v58  ;;  %vm5206_vm12 = vcmp.eq.s32.totalorder %v2036_v50, 1  ;;  %vm5214_vm14 = vcmp.eq.s32.totalorder %v2044_v5, 1 }
 0x4d4   : > { %v2104_v36 = vmax.f32 %v2032_v39, %v2095_v49  ;;  %v2103_v38 = vmax.f32 %v2031_v27, %v2080_v21  ;;  %v2040_v39 = vrot.slane %v4700_v32, %v2035_v41 }
 0x4d6   : > { %4219 = vrot.lane.b32.xlu1 %v4218_v30, %s4341_s20  ;;  %2112 = vrot.lane.b32.xlu0 %v2104_v36, %s4341_s20  ;;  %vm5210_vm13 = vcmp.eq.s32.totalorder %v2040_v39, 1 }
 0x4da   : > { %2131 = vrot.lane.b32.xlu1 %v2102_v12, %s4341_s20  ;;  %2133 = vrot.lane.b32.xlu0 %v2103_v38, %s4341_s20 }
 0x544   : > { %v4215_v6 = vpop.permute.xlu1 %4214  ;;  %v4210_v27 = vpop.permute.xlu0 %4209 }
 0x545   : > { %v4216_v24 = vunpack.i.l.bf16 %v4215_v6  ;;  %v4212_v13 = vunpack.i.h.bf16 %v4210_v27  ;;  %v4211_v45 = vunpack.i.l.bf16 %v4210_v27  ;;  %v4217_v14 = vunpack.i.h.bf16 %v4215_v6 }
 0x547   : > { %v2136_v46 = vsel %vm5739_vm15, %v4212_v13, %v4216_v24  ;;  %v2135_v61 = vsel %vm5740_vm1, %v4211_v45, %v4212_v13  ;;  %v2150_v8 = vsel %vm5741_vm3, %v4216_v24, %v4211_v45  ;;  %vm5743_vm15 = vmmov %vm5740_vm1 }
 0x548   : > { %v2155_v17 = vsel %vm5214_vm14, %v2136_v46, %v2098_v18  ;;  %v2153_v16 = vsel %vm5206_vm12, %v2150_v8, %v2096_v63  ;;  %v2154_v57 = vsel %vm5210_vm13, %v2135_v61, %v2097_v62  ;;  %v4220_v40 = vpop.permute.xlu1 %4219  ;;  %v2113_v34 = vpop.permute.xlu0 %2112  ;;  %vm5744_vm3 = vmmov %vm5740_vm1 }
 0x549   : > { %v3793_v43 = vpack.c.bf16 %v2155_v17, %v1894_v3  ;;  %v3777_v25 = vpack.c.bf16 %v2153_v16, %v1892_v1  ;;  %v4222_v58 = vunpack.i.h.bf16 %v4220_v40  ;;  %v4221_v49 = vunpack.i.l.bf16 %v4220_v40 }
 0x54a   : > { %v4223_v30 = vpack.i.bf16 %v2154_v57, %v2153_v16  ;;  %v3774_v18 = vpack.c.bf16 %v2154_v57, %v1893_v55 }
 0x54b   : > { %v2137_v4 = vsel %vm5742_vm9, %v4221_v49, %v4222_v58  ;;  %v2138_v63 = vsel %vm5743_vm15, %v4222_v58, %v4217_v14  ;;  %v2151_v62 = vsel %vm5740_vm1, %v4217_v14, %v4221_v49  ;;  %3795 = vmatpush3.bf16.msk.msra.mxu1 %vm4944_vm11, %v3793_v43  ;;  %vm5745_vm11 = vmmov %vm5740_vm1 }
 0x54c   : > { %v2157_v2 = vsel %vm5210_vm13, %v2137_v4, %v2100_v7  ;;  %4224 = vrot.lane.b32.xlu1 %v4223_v30, %s5704_s16  ;;  %3776 = vmatprep.subr.msk.bf16.mxu0 %vm4919_vm10, %v3774_v18  ;;  %v2132_v10 = vpop.permute.xlu1 %2131  ;;  %v2156_v20 = vsel %vm5206_vm12, %v2151_v62, %v2099_v35  ;;  %v2158_v1 = vsel %vm5214_vm14, %v2138_v63, %v2101_v23  ;;  %v2134_v55 = vpop.permute.xlu0 %2133  ;;  %vm5746_vm9 = vmmov %vm5740_vm1  ;;  %vm5707_vm10 = vcmask 15360  }
 0x54d   : > { %v2152_v22 = vsel %vm5744_vm3, %v2113_v34, %v2132_v10  ;;  %v2139_v3 = vsel %vm5745_vm11, %v2132_v10, %v2134_v55  ;;  %v2140_v7 = vsel %vm5746_vm9, %v2134_v55, %v2113_v34  ;;  %3779 = vmatpush1.bf16.msk.msra.mxu0 %vm4955_vm2, %v3777_v25  ;;  %v4228_v21 = vpack.i.bf16 %v2156_v20, %v2155_v17 }
 0x54e   : > { %v2159_v15 = vsel %vm5206_vm12, %v2152_v22, %v2102_v12  ;;  %v2160_v35 = vsel %vm5210_vm13, %v2139_v3, %v2103_v38  ;;  %v2161_v23 = vsel %vm5214_vm14, %v2140_v7, %v2104_v36  ;;  %v4233_v41 = vpack.i.bf16 %v2158_v1, %v2157_v2  ;;  %3796 = vmatprep.subr.bf16.mxu1 %v4339_v0 }
 0x54f   : > { %v3782_v50 = vpack.c.bf16 %v2159_v15, %v2156_v20  ;;  %v3797_v39 = vpack.c.bf16 %v2161_v23, %v2158_v1  ;;  %4229 = vrot.lane.b32.xlu0 %v4228_v21, %s5704_s16  ;;  %v3780_v5 = vpack.c.bf16 %v2160_v35, %v2157_v2  ;;  %vm5708_vm2 = vcmask 1031168  }
 0x550   : > { %4234 = vrot.lane.b32.xlu1 %v4233_v41, %s5704_s16  ;;  %v2164_v3 = vsub.s32 3, %v4687_v26  ;;  %vm5706_vm11 = vcmask 752640   ;;  %vm4355_vm9 = vmmov 0  }
 0x551   : > { %3781 = vmatprep.subr.bf16.mxu0 %v3780_v5  ;;  %3798 = vmatpush3.bf16.msra.mxu1 %v3797_v39  ;;  %v3007_v5 = vld [vmem:[%s5686_s9] sm:$0xff] }
 0x552   : > { %3783 = vmatpush1.bf16.msra.mxu0 %v3782_v50  ;;  %3799 = vmatprep.subr.bf16.mxu1 %v4339_v0  ;;  %v2169_v7 = vrot.slane %v4700_v32, %v2164_v3  ;;  %v2165_v21 = vrot.slane %v4697_v31, %v2164_v3 }
 0x553   : > { %2198 = vrot.lane.b32.xlu0 %v2159_v15, %s5704_s16  ;;  %3548 = vmatprep.mubr.msk.f32.mxu1 %vm4355_vm9, %v4349_v11 }
 0x554   : > { %2200 = vrot.lane.b32.xlu1 %v2160_v35, %s5704_s16  ;;  %vm5283_vm15 = vcmp.eq.s32.totalorder %v2169_v7, 1  ;;  %vm5288_vm1 = vcmp.eq.s32.totalorder %v2165_v21, 1 }
 0x557   : > { %2202 = vrot.lane.b32.xlu0 %v2161_v23, %s5704_s16  ;;  %s5759_s16 = smul.u32 72, %s5790_s30  ;;  %s5767_s30 = smov 126  }
 0x5be   : > { %v4225_v59 = vpop.permute.xlu1 %4224 }
 0x5bf   : > { %v4227_v36 = vunpack.i.h.bf16 %v4225_v59  ;;  %v4226_v12 = vunpack.i.l.bf16 %v4225_v59 }
 0x5c1   : > { %v2205_v38 = vsel %vm5708_vm2, %v4226_v12, %v4227_v36  ;;  %v4230_v6 = vpop.permute.xlu0 %4229 }
 0x5c2   : > { %v4232_v27 = vunpack.i.h.bf16 %v4230_v6  ;;  %v4231_v24 = vunpack.i.l.bf16 %v4230_v6  ;;  %v4235_v13 = vpop.permute.xlu1 %4234  ;;  %v2226_v61 = vmax.f32 %v2153_v16, %v2205_v38 }
 0x5c3   : > { %v4237_v45 = vunpack.i.h.bf16 %v4235_v13  ;;  %v4236_v46 = vunpack.i.l.bf16 %v4235_v13 }
 0x5c4   : > { %v2206_v8 = vsel %vm5708_vm2, %v4227_v36, %v4231_v24  ;;  %v2223_v14 = vsel %vm5708_vm2, %v4231_v24, %v4226_v12 }
 0x5c5   : > { %v2227_v40 = vmax.f32 %v2154_v57, %v2206_v8  ;;  %v2228_v34 = vmax.f32 %v2155_v17, %v2223_v14  ;;  %v2224_v43 = vsel %vm5708_vm2, %v4237_v45, %v4232_v27  ;;  %v2207_v25 = vsel %vm5708_vm2, %v4232_v27, %v4236_v46  ;;  %v2199_v58 = vpop.permute.xlu0 %2198 }
 0x5c6   : > { %v2231_v49 = vmax.f32 %v2158_v1, %v2224_v43  ;;  %v2208_v30 = vsel %vm5708_vm2, %v4236_v46, %v4237_v45  ;;  %v2229_v4 = vmax.f32 %v2156_v20, %v2207_v25  ;;  %v2201_v16 = vpop.permute.xlu1 %2200 }
 0x5c7   : > { %v4238_v18 = vpack.i.bf16 %v2227_v40, %v2226_v61  ;;  %v2230_v63 = vmax.f32 %v2157_v2, %v2208_v30  ;;  %v2209_v1 = vsel %vm5708_vm2, %v2199_v58, %v2201_v16 }
 0x5c8   : > { %v4243_v62 = vpack.i.bf16 %v2231_v49, %v2228_v34  ;;  %v2232_v20 = vmax.f32 %v2159_v15, %v2209_v1  ;;  %v2173_v15 = vrot.slane %v4703_v33, %v2164_v3 }
 0x5c9   : > { %v2203_v10 = vpop.permute.xlu0 %2202  ;;  %4239 = vrot.lane.b32.xlu0 %v4238_v18, %s5700_s21  ;;  %v4248_v22 = vpack.i.bf16 %v2230_v63, %v2229_v4 }
 0x5ca   : > { %v2225_v57 = vsel %vm5708_vm2, %v2203_v10, %v2199_v58  ;;  %4244 = vrot.lane.b32.xlu1 %v4243_v62, %s5700_s21  ;;  %v2210_v55 = vsel %vm5708_vm2, %v2201_v16, %v2203_v10  ;;  %vm5298_vm3 = vcmp.eq.s32.totalorder %v2173_v15, 1 }
 0x5cb   : > { %v2234_v17 = vmax.f32 %v2161_v23, %v2225_v57  ;;  %v2233_v2 = vmax.f32 %v2160_v35, %v2210_v55 }
 0x5cd   : > { %2242 = vrot.lane.b32.xlu0 %v2234_v17, %s5700_s21 }
 0x5ce   : > { %4249 = vrot.lane.b32.xlu1 %v4248_v22, %s5700_s21 }
 0x5d1   : > { %2263 = vrot.lane.b32.xlu0 %v2233_v2, %s5700_s21 }
 0x5d2   : > { %2261 = vrot.lane.b32.xlu1 %v2232_v20, %s5700_s21 }
 0x63b   : > { %v4240_v23 = vpop.permute.xlu0 %4239 }
 0x63c   : > { %v4245_v41 = vpop.permute.xlu1 %4244  ;;  %v4242_v50 = vunpack.i.h.bf16 %v4240_v23  ;;  %v4241_v39 = vunpack.i.l.bf16 %v4240_v23 }
 0x63d   : > { %v4246_v35 = vunpack.i.l.bf16 %v4245_v41  ;;  %v4247_v27 = vunpack.i.h.bf16 %v4245_v41 }
 0x63e   : > { %v2266_v36 = vsel %vm5707_vm10, %v4241_v39, %v4242_v50 }
 0x63f   : > { %v2281_v12 = vsel %vm5707_vm10, %v4246_v35, %v4241_v39  ;;  %v2243_v38 = vpop.permute.xlu0 %2242  ;;  %v2285_v6 = vsel %vm5283_vm15, %v2266_v36, %v2227_v40  ;;  %v2267_v46 = vsel %vm5707_vm10, %v4242_v50, %v4246_v35 }
 0x640   : > { %v4250_v24 = vpop.permute.xlu1 %4249  ;;  %v2284_v13 = vsel %vm5288_vm1, %v2281_v12, %v2226_v61  ;;  %v2286_v18 = vsel %vm5298_vm3, %v2267_v46, %v2228_v34 }
 0x641   : > { %v4252_v8 = vunpack.i.h.bf16 %v4250_v24  ;;  %v4251_v14 = vunpack.i.l.bf16 %v4250_v24  ;;  %v4253_v43 = vpack.i.bf16 %v2285_v6, %v2284_v13 }
 0x643   : > { %v2268_v25 = vsel %vm5707_vm10, %v4251_v14, %v4252_v8  ;;  %v2269_v58 = vsel %vm5707_vm10, %v4252_v8, %v4247_v27  ;;  %v2282_v40 = vsel %vm5707_vm10, %v4247_v27, %v4251_v14  ;;  %4254 = vrot.lane.b32.xlu1 %v4253_v43, %s5698_s25  ;;  %v2264_v61 = vpop.permute.xlu0 %2263 }
 0x644   : > { %v2262_v30 = vpop.permute.xlu1 %2261  ;;  %v2287_v62 = vsel %vm5288_vm1, %v2282_v40, %v2229_v4  ;;  %v2288_v10 = vsel %vm5283_vm15, %v2268_v25, %v2230_v63  ;;  %v2289_v16 = vsel %vm5298_vm3, %v2269_v58, %v2231_v49  ;;  %v2271_v63 = vsel %vm5707_vm10, %v2264_v61, %v2243_v38 }
 0x645   : > { %v4258_v57 = vpack.i.bf16 %v2287_v62, %v2286_v18  ;;  %v4263_v55 = vpack.i.bf16 %v2289_v16, %v2288_v10  ;;  %v2283_v22 = vsel %vm5707_vm10, %v2243_v38, %v2262_v30  ;;  %v2270_v1 = vsel %vm5707_vm10, %v2262_v30, %v2264_v61 }
 0x646   : > { %v2290_v34 = vsel %vm5288_vm1, %v2283_v22, %v2232_v20  ;;  %v2291_v4 = vsel %vm5283_vm15, %v2270_v1, %v2233_v2  ;;  %v2292_v49 = vsel %vm5298_vm3, %v2271_v63, %v2234_v17  ;;  %v2428_v22 = vld [vmem:[%s5684_s7 + $0x8] sm:$0xff]  ;;  %v2429_v1 = vld [vmem:[%s5684_s7 + $0x10] sm:$0xff]  ;;  %v2295_v63 = vsub.s32 4, %v4687_v26 }
 0x647   : > { %4259 = vrot.lane.b32.xlu0 %v4258_v57, %s5698_s25  ;;  %4264 = vrot.lane.b32.xlu1 %v4263_v55, %s5698_s25  ;;  %v2427_v55 = vld [vmem:[%s5684_s7] sm:$0xff] }
 0x64b   : > { %2329 = vrot.lane.b32.xlu0 %v2290_v34, %s5698_s25  ;;  %2331 = vrot.lane.b32.xlu1 %v2291_v4, %s5698_s25 }
 0x64f   : > { %2333 = vrot.lane.b32.xlu0 %v2292_v49, %s5698_s25 }
 0x6b5   : > { %v4255_v3 = vpop.permute.xlu1 %4254 }
 0x6b6   : > { %v4257_v7 = vunpack.i.h.bf16 %v4255_v3  ;;  %v4256_v21 = vunpack.i.l.bf16 %v4255_v3 }
 0x6b8   : > { %v2336_v20 = vsel %vm5706_vm11, %v4256_v21, %v4257_v7 }
 0x6b9   : > { %v4260_v23 = vpop.permute.xlu0 %4259  ;;  %v4265_v41 = vpop.permute.xlu1 %4264  ;;  %v5334_v38 = vmax.f32 %v2284_v13, %v2336_v20 }
 0x6ba   : > { %v4262_v2 = vunpack.i.h.bf16 %v4260_v23  ;;  %v4261_v50 = vunpack.i.l.bf16 %v4260_v23  ;;  %v4267_v39 = vunpack.i.h.bf16 %v4265_v41  ;;  %v4266_v15 = vunpack.i.l.bf16 %v4265_v41  ;;  %v3167_v41 = vld [vmem:[%s5689_s12] sm:$0xff] }
 0x6bc   : > { %v2337_v35 = vsel %vm5706_vm11, %v4257_v7, %v4261_v50  ;;  %v2354_v36 = vsel %vm5706_vm11, %v4261_v50, %v4256_v21  ;;  %v2355_v17 = vsel %vm5706_vm11, %v4267_v39, %v4262_v2  ;;  %v2338_v12 = vsel %vm5706_vm11, %v4262_v2, %v4266_v15 }
 0x6bd   : > { %v2358_v27 = vmax.f32 %v2285_v6, %v2337_v35  ;;  %v2339_v24 = vsel %vm5706_vm11, %v4266_v15, %v4267_v39  ;;  %v2330_v46 = vpop.permute.xlu0 %2329  ;;  %v5337_v8 = vmax.f32 %v2287_v62, %v2338_v12  ;;  %v2332_v43 = vpop.permute.xlu1 %2331  ;;  %v5339_v25 = vmax.f32 %v2286_v18, %v2354_v36 }
 0x6be   : > { %v2361_v14 = vmax.f32 %v2288_v10, %v2339_v24  ;;  %v5341_v58 = vmax.f32 %v2289_v16, %v2355_v17  ;;  %v2340_v61 = vsel %vm5706_vm11, %v2330_v46, %v2332_v43  ;;  %v2296_v7 = vrot.slane %v4697_v31, %v2295_v63 }
 0x6bf   : > { %v4268_v40 = vpack.i.bf16 %v2358_v27, %v5334_v38  ;;  %v5352_v18 = vmax.f32 %v2290_v34, %v2340_v61  ;;  %v2635_v34 = vld [vmem:[%s5688_s11] sm:$0xff]  ;;  %v2304_v2 = vrot.slane %v4703_v33, %v2295_v63 }
 0x6c0   : > { %v4273_v30 = vpack.i.bf16 %v2361_v14, %v5337_v8  ;;  %v4278_v6 = vpack.i.bf16 %v5341_v58, %v5339_v25  ;;  %vm5388_vm2 = vcmp.eq.s32.totalorder %v2296_v7, 1 }
 0x6c1   : > { %v2334_v13 = vpop.permute.xlu0 %2333  ;;  %4269 = vrot.lane.b32.xlu1 %v4268_v40, %s5702_s26  ;;  %vm5394_vm7 = vcmp.eq.s32.totalorder %v2304_v2, 1 }
 0x6c2   : > { %4274 = vrot.lane.b32.xlu0 %v4273_v30, %s5702_s26  ;;  %v2341_v62 = vsel %vm5706_vm11, %v2332_v43, %v2334_v13  ;;  %v2356_v10 = vsel %vm5706_vm11, %v2334_v13, %v2330_v46  ;;  %vm5711_vm11 = vcmask 293888  }
 0x6c3   : > { %v2364_v16 = vmax.f32 %v2291_v4, %v2341_v62  ;;  %v2365_v57 = vmax.f32 %v2292_v49, %v2356_v10  ;;  %v2636_v4 = vld [vmem:[%s5688_s11 + $0x8] sm:$0xff]  ;;  %v2300_v49 = vrot.slane %v4700_v32, %v2295_v63 }
 0x6c5   : > { %4279 = vrot.lane.b32.xlu1 %v4278_v6, %s5702_s26  ;;  %vm5379_vm10 = vcmp.eq.s32.totalorder %v2300_v49, 1 }
 0x6c6   : > { %2392 = vrot.lane.b32.xlu0 %v5352_v18, %s5702_s26 }
 0x6c9   : > { %2394 = vrot.lane.b32.xlu1 %v2364_v16, %s5702_s26 }
 0x6ca   : > { %2373 = vrot.lane.b32.xlu0 %v2365_v57, %s5702_s26  ;;  %s5520_s26 = scalar_lea.vmem %s5691_s14, %s5759_s16 }
 0x6cd   : > { %2432 = vperm.xlu1 %4006, %v2427_v55  }
 0x6ce   : > { %2437 = vperm.xlu0 %4007, %v2428_v22  }
 0x6d1   : > { %2442 = vperm.xlu1 %4006, %v2429_v1  }
 0x6d2   : > { %2639 = vperm.xlu0 %4007, %v2635_v34  }
 0x6d5   : > { %2644 = vperm.xlu1 %4006, %v2636_v4   ;;  %v2425_v4 = vld [vmem:[%s5683_s6 + $0x8] sm:$0xff] }
 0x733   : > { %v4270_v3 = vpop.permute.xlu1 %4269 }
 0x734   : > { %v4275_v21 = vpop.permute.xlu0 %4274  ;;  %v4272_v20 = vunpack.i.h.bf16 %v4270_v3  ;;  %v4271_v23 = vunpack.i.l.bf16 %v4270_v3 }
 0x735   : > { %v4277_v50 = vunpack.i.h.bf16 %v4275_v21  ;;  %v4276_v39 = vunpack.i.l.bf16 %v4275_v21 }
 0x736   : > { %v2397_v15 = vsel %vm5711_vm11, %v4271_v23, %v4272_v20 }
 0x737   : > { %v2399_v26 = vsel %vm5711_vm11, %v4276_v39, %v4277_v50  ;;  %v4280_v32 = vpop.permute.xlu1 %4279  ;;  %v2416_v35 = vsel %vm5379_vm10, %v2397_v15, %v2358_v27 }
 0x738   : > { %v2393_v36 = vpop.permute.xlu0 %2392  ;;  %v4282_v17 = vunpack.i.h.bf16 %v4280_v32  ;;  %v4281_v12 = vunpack.i.l.bf16 %v4280_v32  ;;  %v2419_v33 = vsel %vm5379_vm10, %v2399_v26, %v2361_v14 }
 0x739   : > { %v3784_v46 = vpack.c.bf16 %v2419_v33, %v2416_v35 }
 0x73a   : > { %v2400_v43 = vsel %vm5711_vm11, %v4277_v50, %v4282_v17  ;;  %v2413_v40 = vsel %vm5711_vm11, %v4282_v17, %v4276_v39  ;;  %v2398_v27 = vsel %vm5711_vm11, %v4272_v20, %v4281_v12  ;;  %v2412_v30 = vsel %vm5711_vm11, %v4281_v12, %v4271_v23 }
 0x73b   : > { %3785 = vmatprep.subr.bf16.mxu0 %v3784_v46  ;;  %v2395_v61 = vpop.permute.xlu1 %2394  ;;  %v2415_v13 = vsel %vm5388_vm2, %v2412_v30, %v5334_v38  ;;  %v2418_v14 = vsel %vm5388_vm2, %v2413_v40, %v5337_v8  ;;  %v2417_v6 = vsel %vm5394_vm7, %v2398_v27, %v5339_v25  ;;  %v2420_v62 = vsel %vm5394_vm7, %v2400_v43, %v5341_v58  ;;  %v2424_v25 = vld [vmem:[%s5683_s6] sm:$0xff] }
 0x73c   : > { %v2374_v10 = vpop.permute.xlu0 %2373  ;;  %v2401_v55 = vsel %vm5711_vm11, %v2393_v36, %v2395_v61  ;;  %v3786_v22 = vpack.c.bf16 %v2418_v14, %v2415_v13  ;;  %v3800_v1 = vpack.c.bf16 %v2420_v62, %v2417_v6 }
 0x73d   : > { %v2422_v38 = vsel %vm5379_vm10, %v2401_v55, %v2364_v16  ;;  %v2414_v34 = vsel %vm5711_vm11, %v2374_v10, %v2393_v36  ;;  %v2402_v8 = vsel %vm5711_vm11, %v2395_v61, %v2374_v10  ;;  %vm5712_vm11 = vcmask 130048  }
 0x73e   : > { %3787 = vmatpush1.bf16.msra.mxu0 %v3786_v22  ;;  %3801 = vmatpush3.bf16.msra.mxu1 %v3800_v1  ;;  %v2421_v58 = vsel %vm5388_vm2, %v2414_v34, %v5352_v18  ;;  %v2423_v16 = vsel %vm5394_vm7, %v2402_v8, %v2365_v57  ;;  %v2426_v18 = vld [vmem:[%s5683_s6 + $0x10] sm:$0xff]  ;;  %v2633_v57 = vld [vmem:[%s5687_s10] sm:$0xff] }
 0x73f   : > { %2471 = vmatprep.subr.mxu0 %v2422_v38  ;;  %3546 = vmatprep.subr.mxu1 %v4349_v11 }
 0x742   : > { %2472 = vmatpush1.msra.mxu0 %v2421_v58  ;;  %3547 = vmatpush3.msra.mxu1 %v2423_v16 }
 0x743   : > { %3476 = vmatmul.mubr.msk.f32.vlgmr.msra.gmra.mrb[12].mxu0 %vm2445_vm4, %v2424_v25  ;;  %3549 = vmatmul.mubr.msk.f32.vlgmr.msra.gmra.mrb[12].mxu1 %vm2445_vm4, %v2424_v25 }
 0x744   : > { %2525 = vmatprep.mubr.f32.mxu0 %v4349_v11  ;;  %3551 = vmatprep.mubr.msk.f32.mxu1 %vm4355_vm9, %v4349_v11 }
 0x747   : > { %3477 = vmatmul.mubr.msk.f32.gmra.mrb[14].mxu0 %vm2445_vm4, %v2425_v4  ;;  %3552 = vmatmul.mubr.msk.f32.gmra.mrb[14].mxu1 %vm2445_vm4, %v2425_v4 }
 0x748   : > { %2531 = vmatprep.mubr.f32.mxu0 %v4349_v11  ;;  %3554 = vmatprep.mubr.msk.f32.mxu1 %vm4355_vm9, %v4349_v11 }
 0x74b   : > { %3478 = vmatmul.mubr.msk.f32.gmra.mrb[16].mxu0 %vm2445_vm4, %v2426_v18  ;;  %3555 = vmatmul.mubr.msk.f32.gmra.mrb[16].mxu1 %vm2445_vm4, %v2426_v18  ;;  %vm5760_vm4 = vcmask 7168  }
 0x74c   : > { %2718 = vmatprep.mubr.f32.mxu0 %v4349_v11  ;;  %3561 = vmatprep.mubr.msk.f32.mxu1 %vm5712_vm11, %v2633_v57  ;;  %v2433_v63 = vpop.permute.xlu1 %2432 }
 0x74d   : > { %v2438_v39 = vpop.permute.xlu0 %2437 }
 0x750   : > { %v2443_v32 = vpop.permute.xlu1 %2442 }
 0x816   : > { %v2521_v49 = vpop.f32.mrb[12].mxu0  ;;  %v2604_v3 = vpop.f32.mrb[12].mxu1 }
 0x817   : > { %v2523_v7 = vpop.f32.mrb[13].mxu0  ;;  %v3550_v21 = vpop.f32.mrb[13].mxu1  ;;  %v5451_v15 = vadd.f32 %v2521_v49, %v2433_v63  ;;  %v5453_v26 = vadd.f32 %v2604_v3, %v2433_v63  ;;  %v2634_v3 = vld [vmem:[%s5687_s10 + $0x8] sm:$0xff] }
 0x818   : > { %v5459_v17 = vadd.f32 %v2523_v7, %v2433_v63  ;;  %v2640_v7 = vpop.permute.xlu0 %2639  ;;  %v2645_v21 = vpop.permute.xlu1 %2644 }
 0x819   : > { %v2618_v61 = vmax.f32 %v5451_v15, 0.0  ;;  %v2620_v13 = vmax.f32 %v5453_v26, 0.0 }
 0x81a   : > { %v2527_v20 = vpop.f32.mrb[14].mxu0  ;;  %v2609_v23 = vpop.f32.mrb[14].mxu1  ;;  %v2619_v22 = vmax.f32 %v5459_v17, 0.0 }
 0x81b   : > { %v2529_v2 = vpop.f32.mrb[15].mxu0  ;;  %v3553_v50 = vpop.f32.mrb[15].mxu1  ;;  %v5455_v35 = vadd.f32 %v2527_v20, %v2438_v39  ;;  %v5457_v36 = vadd.f32 %v2609_v23, %v2438_v39 }
 0x81c   : > { %v5461_v12 = vadd.f32 %v2529_v2, %v2438_v39 }
 0x81d   : > { %v2621_v6 = vmax.f32 %v5455_v35, 0.0  ;;  %v2623_v62 = vmax.f32 %v5457_v36, 0.0  ;;  %v3168_v36 = vld [vmem:[%s5689_s12 + $0x8] sm:$0xff] }
 0x81e   : > { %v2533_v33 = vpop.f32.mrb[16].mxu0  ;;  %v2614_v46 = vpop.f32.mrb[16].mxu1  ;;  %v2622_v1 = vmax.f32 %v5461_v12, 0.0 }
 0x81f   : > { %v2534_v43 = vadd.f32 %v2533_v33, %v2443_v32  ;;  %v2615_v40 = vadd.f32 %v2614_v46, %v2443_v32  ;;  %v2535_v27 = vpop.f32.mrb[17].mxu0  ;;  %v3556_v30 = vpop.f32.mrb[17].mxu1 }
 0x820   : > { %v2536_v14 = vadd.f32 %v2535_v27, %v2443_v32 }
 0x821   : > { %v2624_v10 = vmax.f32 %v2534_v43, 0.0  ;;  %v2626_v55 = vmax.f32 %v2615_v40, 0.0 }
 0x822   : > { %v2625_v38 = vmax.f32 %v2536_v14, 0.0 }
 0x823   : > { %v5471_v34 = vsub.f32 %v2618_v61, %v2624_v10  ;;  %v5475_v8 = vsub.f32 %v2621_v6, %v2624_v10  ;;  %v5479_v25 = vsub.f32 %v2620_v13, %v2626_v55  ;;  %v5483_v58 = vsub.f32 %v2623_v62, %v2626_v55 }
 0x824   : > { %v5487_v16 = vsub.f32 %v2619_v22, %v2625_v38  ;;  %v5491_v4 = vsub.f32 %v2622_v1, %v2625_v38 }
 0x825   : > { %v3806_v18 = vpack.c.bf16 %v5483_v58, %v5479_v25  ;;  %v3804_v49 = vpack.c.bf16 %v5475_v8, %v5471_v34 }
 0x826   : > { %v3802_v63 = vpack.c.bf16 %v5491_v4, %v5487_v16 }
 0x827   : > { %3807 = vmatprep.subr.bf16.mxu1 %v3806_v18 }
 0x828   : > { %3803 = vmatprep.subr.bf16.mxu0 %v3802_v63  ;;  %3809 = vmatpush3.bf16.msra.mxu1 %v3806_v18 }
 0x829   : > { %3805 = vmatpush1.bf16.msra.mxu0 %v3804_v49 }
 0x82a   : > { %3814 = vmatprep.subr.bf16.mxu0 %v4339_v0 }
 0x82b   : > { %3562 = vmatmul.mubr.msk.f32.vlgmr.msra.gmra.mrb[18].mxu1 %vm5712_vm11, %v2634_v3 }
 0x82c   : > { %3485 = vmatmul.mubr.msk.f32.vlgmr.msra.gmra.mrb[18].mxu0 %vm5712_vm11, %v2633_v57  ;;  %3081 = vmatprep.mubr.f32.mxu1 %v4349_v11 }
 0x82d   : > { %2724 = vmatprep.mubr.f32.mxu0 %v4349_v11 }
 0x830   : > { %3486 = vmatmul.mubr.msk.f32.gmra.mrb[20].mxu0 %vm5712_vm11, %v2634_v3  ;;  %vm5762_vm11 = vmmov %vm5760_vm4 }
 0x831   : > { %3570 = vmatprep.mubr.msk.f32.mxu0 %vm4355_vm9, %v4349_v11  ;;  %vm5761_vm9 = vmmov %vm5760_vm4 }
 0x8fe   : > { %v3563_v20 = vpop.f32.mrb[18].mxu1 }
 0x8ff   : > { %v2803_v23 = vadd.f32 %v3563_v20, %v2645_v21  ;;  %v2720_v2 = vpop.f32.mrb[18].mxu0  ;;  %v2797_v50 = vpop.f32.mrb[19].mxu1 }
 0x900   : > { %v2721_v0 = vadd.f32 %v2720_v2, %v2640_v7  ;;  %v2798_v39 = vadd.f32 %v2797_v50, %v2640_v7  ;;  %v2722_v32 = vpop.f32.mrb[19].mxu0 }
 0x901   : > { %v2811_v33 = vsub.f32 0.0, %v2803_v23  ;;  %v2723_v57 = vadd.f32 %v2722_v32, %v2640_v7 }
 0x902   : > { %v2806_v46 = vsub.f32 0.0, %v2721_v0  ;;  %v2808_v43 = vsub.f32 0.0, %v2798_v39 }
 0x903   : > { %v2822_v40 = vmul.f32 1.442695, %v2811_v33  ;;  %v2807_v27 = vsub.f32 0.0, %v2723_v57  ;;  %v2726_v30 = vpop.f32.mrb[20].mxu0 }
 0x904   : > { %v2812_v14 = vmul.f32 1.442695, %v2806_v46  ;;  %v2816_v10 = vmul.f32 1.442695, %v2808_v43  ;;  %v2727_v55 = vadd.f32 %v2726_v30, %v2645_v21  ;;  %v2728_v38 = vpop.f32.mrb[21].mxu0 }
 0x905   : > { %4283 = vpow2.f32 %v2822_v40  ;;  %v2814_v18 = vmul.f32 1.442695, %v2807_v27  ;;  %v2729_v63 = vadd.f32 %v2728_v38, %v2645_v21 }
 0x906   : > { %4285 = vpow2.f32 %v2812_v14  ;;  %v2809_v49 = vsub.f32 0.0, %v2727_v55 }
 0x907   : > { %4287 = vpow2.f32 %v2816_v10  ;;  %v2810_v3 = vsub.f32 0.0, %v2729_v63 }
 0x908   : > { %4289 = vpow2.f32 %v2814_v18  ;;  %v2818_v20 = vmul.f32 1.442695, %v2809_v49 }
 0x909   : > { %v2820_v23 = vmul.f32 1.442695, %v2810_v3 }
 0x90a   : > { %4291 = vpow2.f32 %v2818_v20 }
 0x90b   : > { %4293 = vpow2.f32 %v2820_v23 }
 0x90f   : > { %v4284_v7 = vpop.eup %4283 }
 0x910   : > { %v4286_v2 = vpop.eup %4285  ;;  %v2829_v50 = vadd.f32 1.0, %v4284_v7 }
 0x911   : > { %v4288_v0 = vpop.eup %4287  ;;  %v2824_v39 = vadd.f32 1.0, %v4286_v2 }
 0x912   : > { %v4290_v32 = vpop.eup %4289  ;;  %4295 = vrcp.f32 %v2829_v50  ;;  %v2826_v33 = vadd.f32 1.0, %v4288_v0 }
 0x913   : > { %4297 = vrcp.f32 %v2824_v39  ;;  %v2825_v57 = vadd.f32 1.0, %v4290_v32 }
 0x914   : > { %v4292_v21 = vpop.eup %4291  ;;  %4299 = vrcp.f32 %v2826_v33 }
 0x915   : > { %v4294_v46 = vpop.eup %4293  ;;  %4301 = vrcp.f32 %v2825_v57  ;;  %v2827_v43 = vadd.f32 1.0, %v4292_v21 }
 0x916   : > { %v2828_v40 = vadd.f32 1.0, %v4294_v46 }
 0x917   : > { %4303 = vrcp.f32 %v2827_v43 }
 0x918   : > { %4305 = vrcp.f32 %v2828_v40 }
 0x91c   : > { %v4296_v27 = vpop.eup %4295 }
 0x91d   : > { %v4298_v30 = vpop.eup %4297  ;;  %v2850_v3 = vmul.f32 %v4296_v27, %v5483_v58 }
 0x91e   : > { %v4300_v14 = vpop.eup %4299  ;;  %v2842_v10 = vmul.f32 %v4298_v30, %v5471_v34 }
 0x91f   : > { %v4302_v55 = vpop.eup %4301  ;;  %v2844_v38 = vmul.f32 %v4300_v14, %v5479_v25 }
 0x920   : > { %v2843_v18 = vmul.f32 %v4302_v55, %v5487_v16  ;;  %v2845_v34 = vadd.f32 %v2842_v10, %v5094_v9 }
 0x921   : > { %v4304_v63 = vpop.eup %4303  ;;  %v2847_v49 = vadd.f32 %v2844_v38, %v5110_v48 }
 0x922   : > { %v4306_v20 = vpop.eup %4305  ;;  %v2848_v25 = vmul.f32 %v4304_v63, %v5475_v8  ;;  %v2846_v16 = vadd.f32 %v2843_v18, %v5102_v19 }
 0x923   : > { %v2849_v48 = vmul.f32 %v4306_v20, %v5491_v4  ;;  %v2853_v23 = vadd.f32 %v2850_v3, %v2847_v49 }
 0x924   : > { %v2851_v58 = vadd.f32 %v2848_v25, %v2845_v34 }
 0x925   : > { %v2852_v7 = vadd.f32 %v2849_v48, %v2846_v16  ;;  %3395 = vst [vmem:[%s5520_s26 + $0x40] sm:$0xff] %v2853_v23 }
 0x926   : > { %2857 = vrot.lane.b32.xlu0 %v2851_v58, %s4344_s23  ;;  %3393 = vst [vmem:[%s5520_s26 + $0x30] sm:$0xff] %v2851_v58 }
 0x927   : > { %2859 = vrot.lane.b32.xlu1 %v2852_v7, %s4344_s23  ;;  %3394 = vst [vmem:[%s5520_s26 + $0x38] sm:$0xff] %v2852_v7 }
 0x92a   : > { %2861 = vrot.lane.b32.xlu0 %v2853_v23, %s4344_s23  ;;  %s5781_s23 = smov 36  }
 0x998   : > { %v2858_v2 = vpop.permute.xlu0 %2857 }
 0x999   : > { %v2860_v9 = vpop.permute.xlu1 %2859 }
 0x99a   : > { %v2863_v8 = vsel %vm715_vm5, %v2858_v2, %v2860_v9 }
 0x99b   : > { %v2870_v50 = vmax.f32 %v2851_v58, %v2863_v8 }
 0x99c   : > { %v2862_v19 = vpop.permute.xlu0 %2861 }
 0x99d   : > { %v2869_v4 = vsel %vm715_vm5, %v2862_v19, %v2858_v2  ;;  %2879 = vrot.lane.b32.xlu0 %v2870_v50, %s4343_s22  ;;  %v2864_v39 = vsel %vm715_vm5, %v2860_v9, %v2862_v19  ;;  %vm5763_vm5 = vcmask 900096  }
 0x99e   : > { %v2872_v0 = vmax.f32 %v2853_v23, %v2869_v4  ;;  %v2871_v32 = vmax.f32 %v2852_v7, %v2864_v39 }
 0x9a0   : > { %2874 = vrot.lane.b32.xlu1 %v2872_v0, %s4343_s22 }
 0x9a4   : > { %2881 = vrot.lane.b32.xlu1 %v2871_v32, %s4343_s22  ;;  %s5775_s22 = smov 92  }
 0xa0f   : > { %v2880_v33 = vpop.permute.xlu0 %2879 }
 0xa12   : > { %v2875_v57 = vpop.permute.xlu1 %2874 }
 0xa13   : > { %v2888_v21 = vsel %vm5760_vm4, %v2875_v57, %v2880_v33 }
 0xa14   : > { %v2889_v46 = vsel %vm5146_vm6, %v2888_v21, %v2870_v50  ;;  %vm5764_vm6 = vmmov %vm5763_vm5 }
 0xa15   : > { %2895 = vrot.lane.b32.xlu0 %v2889_v46, %s5719_s19 }
 0xa16   : > { %v2882_v43 = vpop.permute.xlu1 %2881 }
 0xa17   : > { %v2883_v40 = vsel %vm5761_vm9, %v2880_v33, %v2882_v43  ;;  %v2884_v27 = vsel %vm5762_vm11, %v2882_v43, %v2875_v57  ;;  %vm5765_vm11 = vmmov %vm5763_vm5  ;;  %vm5774_vm9 = vcmask 15360  }
 0xa18   : > { %v2891_v30 = vsel %vm5156_vm8, %v2884_v27, %v2872_v0  ;;  %v2890_v14 = vsel %vm5141_vm0, %v2883_v40, %v2871_v32  ;;  %vm5766_vm0 = vcmask 146432  }
 0xa19   : > { %2899 = vrot.lane.b32.xlu0 %v2891_v30, %s5719_s19  ;;  %2897 = vrot.lane.b32.xlu1 %v2890_v14, %s5719_s19  ;;  %vm5768_vm8 = vmmov %vm5766_vm0 }
 0xa1a   : > { %vm5769_vm4 = vmmov %vm5766_vm0 }
 0xa87   : > { %v2896_v10 = vpop.permute.xlu0 %2895 }
 0xa8b   : > { %v2900_v60 = vpop.permute.xlu0 %2899  ;;  %v2898_v55 = vpop.permute.xlu1 %2897 }
 0xa8c   : > { %v2907_v38 = vsel %vm5763_vm5, %v2900_v60, %v2896_v10  ;;  %v2901_v18 = vsel %vm5764_vm6, %v2896_v10, %v2898_v55  ;;  %v2902_v3 = vsel %vm5765_vm11, %v2898_v55, %v2900_v60  ;;  %vm5776_vm5 = vmmov %vm5774_vm9 }
 0xa8d   : > { %v2910_v63 = vmax.f32 %v2891_v30, %v2907_v38  ;;  %v2908_v49 = vmax.f32 %v2889_v46, %v2901_v18  ;;  %v2909_v44 = vmax.f32 %v2890_v14, %v2902_v3  ;;  %vm5777_vm6 = vmmov %vm5776_vm5  ;;  %v3170_v3 = vld [vmem:[%s5690_s13 + $0x8] sm:$0xff] }
 0xa8f   : > { %2912 = vrot.lane.b32.xlu1 %v2910_v63, %s4341_s20  ;;  %2917 = vrot.lane.b32.xlu0 %v2908_v49, %s4341_s20 }
 0xa93   : > { %2919 = vrot.lane.b32.xlu1 %v2909_v44, %s4341_s20  ;;  %s5773_s20 = smov 2  }
 0xb01   : > { %v2918_v53 = vpop.permute.xlu0 %2917  ;;  %v2913_v20 = vpop.permute.xlu1 %2912 }
 0xb02   : > { %v2926_v34 = vsel %vm5766_vm0, %v2913_v20, %v2918_v53 }
 0xb03   : > { %v2927_v25 = vsel %vm5206_vm12, %v2926_v34, %v2908_v49  ;;  %vm5770_vm12 = vcmask 1031168  }
 0xb04   : > { %2933 = vrot.lane.b32.xlu0 %v2927_v25, %s5767_s30  ;;  %v3812_v19 = vpack.c.bf16 %v2927_v25, %v2851_v58 }
 0xb05   : > { %v2920_v16 = vpop.permute.xlu1 %2919 }
 0xb06   : > { %v2921_v48 = vsel %vm5768_vm8, %v2918_v53, %v2920_v16  ;;  %v2922_v2 = vsel %vm5769_vm4, %v2920_v16, %v2913_v20  ;;  %vm3013_vm4 = vcmask 195584  }
 0xb07   : > { %v2929_v9 = vsel %vm5214_vm14, %v2922_v2, %v2910_v63  ;;  %v2928_v8 = vsel %vm5210_vm13, %v2921_v48, %v2909_v44  ;;  %vm5771_vm14 = vmmov %vm5770_vm12  ;;  %v3169_v44 = vld [vmem:[%s5690_s13] sm:$0xff] }
 0xb08   : > { %2937 = vrot.lane.b32.xlu0 %v2929_v9, %s5767_s30  ;;  %v3815_v50 = vpack.c.bf16 %v2929_v9, %v2853_v23  ;;  %2935 = vrot.lane.b32.xlu1 %v2928_v8, %s5767_s30  ;;  %v3810_v54 = vpack.c.bf16 %v2928_v8, %v2852_v7  ;;  %vm5772_vm13 = vmmov %vm5770_vm12 }
 0xb0a   : > { %3811 = vmatprep.subr.bf16.mxu1 %v3810_v54  ;;  %3816 = vmatpush3.bf16.msra.mxu0 %v3815_v50 }
 0xb0b   : > { %3813 = vmatpush1.bf16.msra.mxu1 %v3812_v19  ;;  %3568 = vmatprep.subr.mxu0 %v4349_v11 }
 0xb76   : > { %v2934_v4 = vpop.permute.xlu0 %2933 }
 0xb7a   : > { %v2938_v0 = vpop.permute.xlu0 %2937  ;;  %v2936_v39 = vpop.permute.xlu1 %2935 }
 0xb7b   : > { %v2945_v56 = vsel %vm5770_vm12, %v2938_v0, %v2934_v4  ;;  %v2939_v37 = vsel %vm5771_vm14, %v2934_v4, %v2936_v39  ;;  %v2940_v23 = vsel %vm5772_vm13, %v2936_v39, %v2938_v0 }
 0xb7c   : > { %v2948_v32 = vmax.f32 %v2929_v9, %v2945_v56  ;;  %v2946_v33 = vmax.f32 %v2927_v25, %v2939_v37  ;;  %v2947_v58 = vmax.f32 %v2928_v8, %v2940_v23  ;;  %v3006_v9 = vld [vmem:[%s5685_s8] sm:$0xff] }
 0xb7e   : > { %2950 = vrot.lane.b32.xlu1 %v2948_v32, %s5773_s20  ;;  %2955 = vrot.lane.b32.xlu0 %v2946_v33, %s5773_s20 }
 0xb82   : > { %2957 = vrot.lane.b32.xlu1 %v2947_v58, %s5773_s20 }
 0xbf0   : > { %v2956_v7 = vpop.permute.xlu0 %2955  ;;  %v2951_v57 = vpop.permute.xlu1 %2950 }
 0xbf1   : > { %v2964_v21 = vsel %vm5774_vm9, %v2951_v57, %v2956_v7 }
 0xbf2   : > { %v2965_v46 = vsel %vm5288_vm1, %v2964_v21, %v2946_v33  ;;  %vm5778_vm1 = vcmask 752640  }
 0xbf3   : > { %2971 = vrot.lane.b32.xlu0 %v2965_v46, %s5775_s22  ;;  %vm5779_vm11 = vmmov %vm5778_vm1 }
 0xbf4   : > { %v2958_v43 = vpop.permute.xlu1 %2957  ;;  %vm5780_vm0 = vmmov %vm5778_vm1 }
 0xbf5   : > { %v2959_v40 = vsel %vm5776_vm5, %v2956_v7, %v2958_v43  ;;  %v2960_v27 = vsel %vm5777_vm6, %v2958_v43, %v2951_v57 }
 0xbf6   : > { %v2967_v30 = vsel %vm5298_vm3, %v2960_v27, %v2948_v32  ;;  %v2966_v14 = vsel %vm5283_vm15, %v2959_v40, %v2947_v58  ;;  %vm5782_vm15 = vcmask 293888  }
 0xbf7   : > { %2975 = vrot.lane.b32.xlu0 %v2967_v30, %s5775_s22  ;;  %2973 = vrot.lane.b32.xlu1 %v2966_v14, %s5775_s22  ;;  %vm5783_vm3 = vmmov %vm5782_vm15 }
 0xbf8   : > { %vm5784_vm8 = vmmov %vm5783_vm3 }
 0xc65   : > { %v2972_v10 = vpop.permute.xlu0 %2971 }
 0xc69   : > { %v2976_v59 = vpop.permute.xlu0 %2975  ;;  %v2974_v60 = vpop.permute.xlu1 %2973 }
 0xc6a   : > { %v2977_v55 = vsel %vm5778_vm1, %v2972_v10, %v2974_v60  ;;  %v2978_v38 = vsel %vm5779_vm11, %v2974_v60, %v2976_v59  ;;  %v2983_v49 = vsel %vm5780_vm0, %v2976_v59, %v2972_v10 }
 0xc6b   : > { %v2984_v18 = vmax.f32 %v2965_v46, %v2977_v55  ;;  %v2985_v63 = vmax.f32 %v2966_v14, %v2978_v38  ;;  %v2986_v45 = vmax.f32 %v2967_v30, %v2983_v49 }
 0xc6d   : > { %2995 = vrot.lane.b32.xlu0 %v2985_v63, %s5781_s23  ;;  %2993 = vrot.lane.b32.xlu1 %v2984_v18, %s5781_s23 }
 0xc71   : > { %3010 = vperm.xlu0 %4007, %v3007_v5   ;;  %2988 = vrot.lane.b32.xlu1 %v2986_v45, %s5781_s23 }
 0xc75   : > { %3178 = vperm.xlu0 %4007, %v3170_v3   ;;  %3173 = vperm.xlu1 %4006, %v3169_v44  }
 0xcdf   : > { %v2996_v53 = vpop.permute.xlu0 %2995  ;;  %v2994_v20 = vpop.permute.xlu1 %2993 }
 0xce0   : > { %v2997_v34 = vsel %vm5782_vm15, %v2994_v20, %v2996_v53 }
 0xce1   : > { %v3004_v25 = vsel %vm5379_vm10, %v2997_v34, %v2985_v63  ;;  %vm5785_vm10 = vcmask 130048  }
 0xce2   : > { %3021 = vmatprep.subr.mxu1 %v3004_v25 }
 0xce3   : > { %v2989_v16 = vpop.permute.xlu1 %2988 }
 0xce4   : > { %v2998_v48 = vsel %vm5783_vm3, %v2996_v53, %v2989_v16  ;;  %v3002_v2 = vsel %vm5784_vm8, %v2989_v16, %v2994_v20 }
 0xce5   : > { %v3003_v8 = vsel %vm5388_vm2, %v3002_v2, %v2984_v18  ;;  %v3005_v50 = vsel %vm5394_vm7, %v2998_v48, %v2986_v45  ;;  %vm5786_vm7 = vmmov %vm5785_vm10 }
 0xce6   : > { %3022 = vmatpush1.msra.mxu1 %v3003_v8  ;;  %3569 = vmatpush3.msra.mxu0 %v3005_v50  ;;  %vm5787_vm2 = vmmov %vm5786_vm7 }
 0xce7   : > { %3489 = vmatmul.mubr.msk.f32.vlgmr.msra.gmra.mrb[20].mxu1 %vm3013_vm4, %v3006_v9  ;;  %3571 = vmatmul.mubr.msk.f32.vlgmr.msra.gmra.mrb[22].mxu0 %vm3013_vm4, %v3006_v9  ;;  %vm5788_vm12 = vmmov %vm5787_vm2 }
 0xce8   : > { %3251 = vmatprep.mubr.f32.mxu1 %v4349_v11  ;;  %3577 = vmatprep.mubr.msk.f32.mxu0 %vm5785_vm10, %v3167_v41 }
 0xcf0   : > { %v3011_v54 = vpop.permute.xlu0 %3010 }
 0xcf4   : > { %v3179_v17 = vpop.permute.xlu0 %3178  ;;  %v3174_v12 = vpop.permute.xlu1 %3173 }
 0xdba   : > { %v3083_v19 = vpop.f32.mrb[20].mxu1  ;;  %v3154_v4 = vpop.f32.mrb[22].mxu0 }
 0xdbb   : > { %v3084_v31 = vadd.f32 %v3083_v19, %v3011_v54  ;;  %v3155_v0 = vadd.f32 %v3154_v4, %v3011_v54  ;;  %v3085_v39 = vpop.f32.mrb[21].mxu1  ;;  %v3572_v24 = vpop.f32.mrb[23].mxu0 }
 0xdbc   : > { %v3086_v56 = vadd.f32 %v3085_v39, %v3011_v54 }
 0xdbd   : > { %v3158_v37 = vmax.f32 %v3084_v31, 0.0  ;;  %v3160_v32 = vmax.f32 %v3155_v0, 0.0 }
 0xdbe   : > { %v3159_v33 = vmax.f32 %v3086_v56, 0.0 }
 0xdbf   : > { %v5621_v23 = vsub.f32 %v3158_v37, %v2618_v61  ;;  %v5625_v58 = vsub.f32 %v3158_v37, %v2621_v6  ;;  %v5629_v7 = vsub.f32 %v3160_v32, %v2620_v13  ;;  %v5633_v57 = vsub.f32 %v3160_v32, %v2623_v62 }
 0xdc0   : > { %v5637_v21 = vsub.f32 %v3159_v33, %v2619_v22  ;;  %v5641_v15 = vsub.f32 %v3159_v33, %v2622_v1 }
 0xdc1   : > { %v3821_v35 = vpack.c.bf16 %v5633_v57, %v5629_v7  ;;  %v3819_v61 = vpack.c.bf16 %v5625_v58, %v5621_v23 }
 0xdc2   : > { %v3817_v26 = vpack.c.bf16 %v5641_v15, %v5637_v21 }
 0xdc3   : > { %3822 = vmatprep.subr.bf16.mxu0 %v3821_v35 }
 0xdc4   : > { %3818 = vmatprep.subr.bf16.mxu1 %v3817_v26  ;;  %3824 = vmatpush3.bf16.msra.mxu0 %v3821_v35 }
 0xdc5   : > { %3820 = vmatpush1.bf16.msra.mxu1 %v3819_v61 }
 0xdc7   : > { %3578 = vmatmul.mubr.msk.f32.vlgmr.msra.gmra.mrb[24].mxu0 %vm5786_vm7, %v3168_v36 }
 0xdc8   : > { %3491 = vmatmul.mubr.msk.f32.vlgmr.msra.gmra.mrb[22].mxu1 %vm5787_vm2, %v3167_v41 }
 0xdc9   : > { %3257 = vmatprep.mubr.f32.mxu1 %v4349_v11 }
 0xdcc   : > { %3492 = vmatmul.mubr.msk.f32.gmra.mrb[24].mxu1 %vm5788_vm12, %v3168_v36 }
 0xe9a   : > { %v3579_v13 = vpop.f32.mrb[24].mxu0 }
 0xe9b   : > { %v3336_v6 = vadd.f32 %v3579_v13, %v3179_v17  ;;  %v3253_v62 = vpop.f32.mrb[22].mxu1  ;;  %v3330_v22 = vpop.f32.mrb[25].mxu0 }
 0xe9c   : > { %v3254_v1 = vadd.f32 %v3253_v62, %v3174_v12  ;;  %v3331_v46 = vadd.f32 %v3330_v22, %v3174_v12  ;;  %v3255_v43 = vpop.f32.mrb[23].mxu1 }
 0xe9d   : > { %v3344_v40 = vsub.f32 0.0, %v3336_v6  ;;  %v3256_v27 = vadd.f32 %v3255_v43, %v3174_v12 }
 0xe9e   : > { %v3339_v30 = vsub.f32 0.0, %v3254_v1  ;;  %v3341_v14 = vsub.f32 0.0, %v3331_v46 }
 0xe9f   : > { %v3355_v10 = vmul.f32 1.442695, %v3344_v40  ;;  %v3340_v59 = vsub.f32 0.0, %v3256_v27  ;;  %v3259_v60 = vpop.f32.mrb[24].mxu1 }
 0xea0   : > { %v3345_v55 = vmul.f32 1.442695, %v3339_v30  ;;  %v3349_v11 = vmul.f32 1.442695, %v3341_v14  ;;  %v3260_v38 = vadd.f32 %v3259_v60, %v3179_v17  ;;  %v3261_v18 = vpop.f32.mrb[25].mxu1 }
 0xea1   : > { %4307 = vpow2.f32 %v3355_v10  ;;  %v3347_v63 = vmul.f32 1.442695, %v3340_v59  ;;  %v3262_v49 = vadd.f32 %v3261_v18, %v3179_v17 }
 0xea2   : > { %4309 = vpow2.f32 %v3345_v55  ;;  %v3342_v5 = vsub.f32 0.0, %v3260_v38 }
 0xea3   : > { %4311 = vpow2.f32 %v3349_v11  ;;  %v3343_v45 = vsub.f32 0.0, %v3262_v49 }
 0xea4   : > { %4313 = vpow2.f32 %v3347_v63  ;;  %v3351_v3 = vmul.f32 1.442695, %v3342_v5 }
 0xea5   : > { %v3353_v44 = vmul.f32 1.442695, %v3343_v45 }
 0xea6   : > { %4315 = vpow2.f32 %v3351_v3 }
 0xea7   : > { %4317 = vpow2.f32 %v3353_v44 }
 0xeab   : > { %v4308_v53 = vpop.eup %4307 }
 0xeac   : > { %v4310_v20 = vpop.eup %4309  ;;  %v3362_v34 = vadd.f32 1.0, %v4308_v53 }
 0xead   : > { %v4312_v25 = vpop.eup %4311  ;;  %v3357_v16 = vadd.f32 1.0, %v4310_v20 }
 0xeae   : > { %v4314_v48 = vpop.eup %4313  ;;  %4319 = vrcp.f32 %v3362_v34  ;;  %v3359_v2 = vadd.f32 1.0, %v4312_v25 }
 0xeaf   : > { %4321 = vrcp.f32 %v3357_v16  ;;  %v3358_v9 = vadd.f32 1.0, %v4314_v48 }
 0xeb0   : > { %v4316_v8 = vpop.eup %4315  ;;  %4323 = vrcp.f32 %v3359_v2 }
 0xeb1   : > { %v4318_v50 = vpop.eup %4317  ;;  %4325 = vrcp.f32 %v3358_v9  ;;  %v3360_v41 = vadd.f32 1.0, %v4316_v8 }
 0xeb2   : > { %v3361_v54 = vadd.f32 1.0, %v4318_v50 }
 0xeb3   : > { %4327 = vrcp.f32 %v3360_v41 }
 0xeb4   : > { %4329 = vrcp.f32 %v3361_v54 }
 0xeb8   : > { %v4320_v19 = vpop.eup %4319 }
 0xeb9   : > { %v4322_v4 = vpop.eup %4321  ;;  %v3383_v31 = vmul.f32 %v4320_v19, %v5633_v57 }
 0xeba   : > { %v4324_v0 = vpop.eup %4323  ;;  %v3375_v39 = vmul.f32 %v4322_v4, %v5621_v23 }
 0xebb   : > { %v4326_v24 = vpop.eup %4325  ;;  %v3386_v56 = vadd.f32 %v3383_v31, %v5048_v47  ;;  %v3377_v37 = vmul.f32 %v4324_v0, %v5629_v7 }
 0xebc   : > { %v3378_v32 = vadd.f32 %v3375_v39, %v5034_v29  ;;  %v3376_v33 = vmul.f32 %v4326_v24, %v5637_v21 }
 0xebd   : > { %v4328_v35 = vpop.eup %4327  ;;  %3392 = vst [vmem:[%s5520_s26 + $0x28] sm:$0xff] %v3386_v56  ;;  %v3380_v26 = vadd.f32 %v3377_v37, %v5053_v51 }
 0xebe   : > { %v4330_v57 = vpop.eup %4329  ;;  %3387 = vst [vmem:[%s5520_s26] sm:$0xff] %v3378_v32  ;;  %v3379_v61 = vadd.f32 %v3376_v33, %v5038_v42  ;;  %v3381_v23 = vmul.f32 %v4328_v35, %v5625_v58 }
 0xebf   : > { %3389 = vst [vmem:[%s5520_s26 + $0x10] sm:$0xff] %v3380_v26  ;;  %v3382_v47 = vmul.f32 %v4330_v57, %v5641_v15 }
 0xec0   : > { %3388 = vst [vmem:[%s5520_s26 + $0x8] sm:$0xff] %v3379_v61  ;;  %v3384_v7 = vadd.f32 %v3381_v23, %v5044_v28 }
 0xec1   : > { %v3385_v29 = vadd.f32 %v3382_v47, %v5057_v52 }
 0xec2   : > { %3390 = vst [vmem:[%s5520_s26 + $0x18] sm:$0xff] %v3384_v7 }
 0xec3   : > { %3391 = vst [vmem:[%s5520_s26 + $0x20] sm:$0xff] %v3385_v29 }
 0xec4 PF: > { %s24_s29 = sadd.s32 1, %s4337_s29  }
 0xec5   : > { %p21_p4 = scmp.ge.s32.totalorder %s24_s29, 4  }
 0xec7   :  { %23 = sbr.rel (!%p21_p4) target bundleno = 1 (0x1), region = 106 }

</bundles_post_ra>
